<compile_context>
chip_gen: v7x
topology: tpu7x:2x2x1
jax: 0.10.0
libtpu: 0.0.40
codegen_flags: <defaults>
</compile_context>

<pallas_src>
import functools

import jax
import jax.numpy as jnp
from jax.experimental import pallas as pl
from jax.experimental.pallas import tpu as pltpu


_LANE = 128


def _round_up(x, m):
    return ((x + m - 1) // m) * m


def _pad2d(x, rows, cols):
    pr, pc = rows - x.shape[0], cols - x.shape[1]
    if pr == 0 and pc == 0:
        return x
    return jnp.pad(x, ((0, pr), (0, pc)))


def _pick_tile(padded_dim, preferred=256):
    # padded_dim is a multiple of 128; use 256-wide MXU tiles (v6e/v7x) when they
    # divide evenly, otherwise fall back to 128 (always fine, saturates v5e MXU).
    if padded_dim % preferred == 0:
        return preferred
    return _LANE


def _vmem_limit_bytes(block_bytes):
    try:
        cap = int(pltpu.get_tpu_info().vmem_capacity_bytes)
    except Exception:
        cap = 128 * 1024 * 1024
    cap = int(cap * 0.85)                       # headroom for Mosaic internal scratch
    want = max(2 * int(block_bytes), 32 * 1024 * 1024)
    return int(min(cap, want))


# ---------------------------------------------------------------------------
# Kernels
# ---------------------------------------------------------------------------

def _agg_norm_linear_kernel(a_ref, h_ref, norm_ref, w_ref, b_ref, out_ref, acc_ref,
                            *, apply_relu):
    """out[i] = act(((sum_k A[i,k] @ H[k]) * norm[i]) @ W + b)."""
    k = pl.program_id(1)

    @pl.when(k == 0)
    def _():
        acc_ref[...] = jnp.zeros_like(acc_ref)

    # TODO(synk): DGL's sparse block message passing (copy_src + fn.sum) is realised
    # as a dense padded block-adjacency matmul; a gather/segment-sum variant driven by
    # prefetched neighbour lists would avoid O(dst*src) work for very sparse blocks.
    acc_ref[...] += jnp.dot(a_ref[...], h_ref[...],
                            preferred_element_type=jnp.float32)

    @pl.when(k == pl.num_programs(1) - 1)
    def _():
        z = acc_ref[...] * norm_ref[...]                       # f32 elementwise
        out = jnp.dot(z.astype(w_ref.dtype), w_ref[...],
                      preferred_element_type=jnp.float32) + b_ref[...]
        if apply_relu:
            out = jnp.maximum(out, 0.0)
        out_ref[...] = out.astype(out_ref.dtype)


def _agg_norm_bias_kernel(a_ref, z_ref, norm_ref, b_ref, out_ref, acc_ref,
                          *, apply_relu):
    """out[i] = act((sum_k A[i,k] @ Z[k]) * norm[i] + b), with Z = H @ W precomputed."""
    k = pl.program_id(1)

    @pl.when(k == 0)
    def _():
        acc_ref[...] = jnp.zeros_like(acc_ref)

    acc_ref[...] += jnp.dot(a_ref[...], z_ref[...],
                            preferred_element_type=jnp.float32)

    @pl.when(k == pl.num_programs(1) - 1)
    def _():
        out = acc_ref[...] * norm_ref[...] + b_ref[...]
        if apply_relu:
            out = jnp.maximum(out, 0.0)
        out_ref[...] = out.astype(out_ref.dtype)


def _linear_kernel(h_ref, w_ref, out_ref):
    """Z = H @ W (no bias / activation; those are applied after aggregation)."""
    out_ref[...] = jnp.dot(h_ref[...], w_ref[...],
                           preferred_element_type=jnp.float32).astype(out_ref.dtype)


# ---------------------------------------------------------------------------
# Per-layer pallas_call builders
# ---------------------------------------------------------------------------

def _itemsize(x):
    return jnp.dtype(x.dtype).itemsize


def _layer_agg_linear(a, h, norm, w, b, *, apply_relu, out_dtype):
    p_dst, p_src = a.shape
    fin, fout = w.shape
    tm, tk = _pick_tile(p_dst), _pick_tile(p_src)
    nm, nk = p_dst // tm, p_src // tk

    block_bytes = (2 * tm * tk * _itemsize(a) + 2 * tk * fin * _itemsize(h)
                   + 2 * tm * 8 * 4 + 2 * fin * fout * _itemsize(w)
                   + 2 * 8 * fout * 4 + 2 * tm * fout * jnp.dtype(out_dtype).itemsize
                   + tm * fin * 4)
    flops = 2 * (p_dst * p_src * fin + p_dst * fin * fout)
    bytes_accessed = int(a.size * _itemsize(a) + h.size * _itemsize(h) + norm.size * 4
                         + w.size * _itemsize(w) + b.size * 4
                         + p_dst * fout * jnp.dtype(out_dtype).itemsize)

    return pl.pallas_call(
        functools.partial(_agg_norm_linear_kernel, apply_relu=apply_relu),
        out_shape=jax.ShapeDtypeStruct((p_dst, fout), out_dtype),
        grid_spec=pltpu.PrefetchScalarGridSpec(
            num_scalar_prefetch=0,
            grid=(nm, nk),
            in_specs=[
                pl.BlockSpec((tm, tk), lambda i, k: (i, k)),      # A tile (streamed)
                pl.BlockSpec((tk, fin), lambda i, k: (k, 0)),     # H tile (streamed over k)
                pl.BlockSpec((tm, 1), lambda i, k: (i, 0)),       # norm (per dst tile)
                pl.BlockSpec((fin, fout), lambda i, k: (0, 0)),   # W (resident)
                pl.BlockSpec((1, fout), lambda i, k: (0, 0)),     # b (resident)
            ],
            out_specs=pl.BlockSpec((tm, fout), lambda i, k: (i, 0)),
            scratch_shapes=[pltpu.VMEM((tm, fin), jnp.float32)],
        ),
        compiler_params=pltpu.CompilerParams(
            dimension_semantics=("parallel", "arbitrary"),
            vmem_limit_bytes=_vmem_limit_bytes(block_bytes),
        ),
        cost_estimate=pl.CostEstimate(flops=flops, transcendentals=0,
                                      bytes_accessed=bytes_accessed),
    )(a, h, norm, w, b)


def _layer_agg_bias(a, z, norm, b, *, apply_relu, out_dtype):
    p_dst, p_src = a.shape
    fout = z.shape[1]
    tm, tk = _pick_tile(p_dst), _pick_tile(p_src)
    nm, nk = p_dst // tm, p_src // tk

    block_bytes = (2 * tm * tk * _itemsize(a) + 2 * tk * fout * _itemsize(z)
                   + 2 * tm * 8 * 4 + 2 * 8 * fout * 4
                   + 2 * tm * fout * jnp.dtype(out_dtype).itemsize + tm * fout * 4)
    flops = 2 * p_dst * p_src * fout
    bytes_accessed = int(a.size * _itemsize(a) + z.size * _itemsize(z) + norm.size * 4
                         + b.size * 4 + p_dst * fout * jnp.dtype(out_dtype).itemsize)

    return pl.pallas_call(
        functools.partial(_agg_norm_bias_kernel, apply_relu=apply_relu),
        out_shape=jax.ShapeDtypeStruct((p_dst, fout), out_dtype),
        grid_spec=pltpu.PrefetchScalarGridSpec(
            num_scalar_prefetch=0,
            grid=(nm, nk),
            in_specs=[
                pl.BlockSpec((tm, tk), lambda i, k: (i, k)),
                pl.BlockSpec((tk, fout), lambda i, k: (k, 0)),
                pl.BlockSpec((tm, 1), lambda i, k: (i, 0)),
                pl.BlockSpec((1, fout), lambda i, k: (0, 0)),
            ],
            out_specs=pl.BlockSpec((tm, fout), lambda i, k: (i, 0)),
            scratch_shapes=[pltpu.VMEM((tm, fout), jnp.float32)],
        ),
        compiler_params=pltpu.CompilerParams(
            dimension_semantics=("parallel", "arbitrary"),
            vmem_limit_bytes=_vmem_limit_bytes(block_bytes),
        ),
        cost_estimate=pl.CostEstimate(flops=flops, transcendentals=0,
                                      bytes_accessed=bytes_accessed),
    )(a, z, norm, b)


def _layer_linear(h, w, *, out_dtype):
    p_src, fin = h.shape
    fout = w.shape[1]
    tm = _pick_tile(p_src)
    nm = p_src // tm

    block_bytes = (2 * tm * fin * _itemsize(h) + 2 * fin * fout * _itemsize(w)
                   + 2 * tm * fout * jnp.dtype(out_dtype).itemsize)
    flops = 2 * p_src * fin * fout
    bytes_accessed = int(h.size * _itemsize(h) + w.size * _itemsize(w)
                         + p_src * fout * jnp.dtype(out_dtype).itemsize)

    return pl.pallas_call(
        _linear_kernel,
        out_shape=jax.ShapeDtypeStruct((p_src, fout), out_dtype),
        grid_spec=pltpu.PrefetchScalarGridSpec(
            num_scalar_prefetch=0,
            grid=(nm,),
            in_specs=[
                pl.BlockSpec((tm, fin), lambda i: (i, 0)),
                pl.BlockSpec((fin, fout), lambda i: (0, 0)),
            ],
            out_specs=pl.BlockSpec((tm, fout), lambda i: (i, 0)),
        ),
        compiler_params=pltpu.CompilerParams(
            dimension_semantics=("parallel",),
            vmem_limit_bytes=_vmem_limit_bytes(block_bytes),
        ),
        cost_estimate=pl.CostEstimate(flops=flops, transcendentals=0,
                                      bytes_accessed=bytes_accessed),
    )(h, w)


# ---------------------------------------------------------------------------
# Forward pass over all NodeUpdate layers
# ---------------------------------------------------------------------------

def gcn_infer_forward(features, adjs, norms, ws_pad, bs_pad, *,
                      n_classes, compute_dtype=jnp.float32):
    n_layers = len(ws_pad)
    assert len(adjs) == n_layers and len(norms) == n_layers

    # Node counts per NodeFlow layer: src of block 0, then dst of every block.
    node_counts = [adjs[0].shape[1]] + [a.shape[0] for a in adjs]
    p_nodes = [_round_up(n, _LANE) for n in node_counts]
    fp = [ws_pad[0].shape[0]] + [w.shape[1] for w in ws_pad]   # padded feature widths

    # Pre-cast H in the wrapper (bf16 halves HBM->VMEM traffic; MXU acc stays f32).
    h = _pad2d(features.astype(jnp.float32), p_nodes[0], fp[0]).astype(compute_dtype)

    for i in range(n_layers):
        p_dst, p_src = p_nodes[i + 1], p_nodes[i]
        fin, fout = fp[i], fp[i + 1]

        # TODO(synk): int8 0/1 adjacency would further quarter DMA on v5e/v6e (not v7x).
        a = _pad2d(adjs[i].astype(jnp.float32), p_dst, p_src).astype(compute_dtype)
        norm = _pad2d(norms[i].astype(jnp.float32), p_dst, 1)
        w = ws_pad[i].astype(compute_dtype)
        b = bs_pad[i]

        apply_relu = i < n_layers - 1
        out_dtype = jnp.float32 if i == n_layers - 1 else compute_dtype

        # Reassociation decided from full padded MXU cost (not just feature widths).
        cost_agg_first = p_dst * p_src * fin + p_dst * fin * fout
        cost_lin_first = p_src * fin * fout + p_dst * p_src * fout
        if cost_lin_first < cost_agg_first:
            # norm * (A @ (H @ W)) + b  -- identical math, fewer MXU cycles.
            z = _layer_linear(h, w, out_dtype=compute_dtype)
            h = _layer_agg_bias(a, z, norm, b, apply_relu=apply_relu,
                                out_dtype=out_dtype)
        else:
            h = _layer_agg_linear(a, h, norm, w, b, apply_relu=apply_relu,
                                  out_dtype=out_dtype)

    # Strip padding: true dst-node count of the last block, true class count.
    return h[:node_counts[-1], :n_classes]


class GCNInferPallas:
    """Mirrors GCNInfer: n_layers+1 NodeUpdate layers, relu on all but the last."""

    def __init__(self, in_feats, n_hidden, n_classes, n_layers, key):
        dims = [(in_feats, n_hidden)]
        dims += [(n_hidden, n_hidden) for _ in range(1, n_layers)]
        dims += [(n_hidden, n_classes)]

        self.params = []       # raw PyTorch-layout (out, in) weights, for reference math
        self.ws_t_pad = []     # pre-transposed + 128-padded (in_pad, out_pad), f32
        self.bs_pad = []       # (1, out_pad), f32
        for li, (fi, fo) in enumerate(dims):
            kw, kb = jax.random.split(jax.random.fold_in(key, li))
            bound = 1.0 / jnp.sqrt(jnp.float32(fi))
            w = jax.random.uniform(kw, (fo, fi), jnp.float32, -bound, bound)
            b = jax.random.uniform(kb, (fo,), jnp.float32, -bound, bound)
            self.params.append((w, b))
            fi_p, fo_p = _round_up(fi, _LANE), _round_up(fo, _LANE)
            self.ws_t_pad.append(_pad2d(w.T, fi_p, fo_p))
            self.bs_pad.append(_pad2d(b.reshape(1, fo), 1, fo_p))

        self.n_update_layers = len(dims)
        self.n_classes = n_classes
        self._forward = jax.jit(gcn_infer_forward,
                                static_argnames=("n_classes", "compute_dtype"))

    def __call__(self, features, adjs, norms, compute_dtype=jnp.float32):
        return self._forward(features, tuple(adjs), tuple(norms),
                             tuple(self.ws_t_pad), tuple(self.bs_pad),
                             n_classes=self.n_classes, compute_dtype=compute_dtype)


if __name__ == "__main__":
    # Synthetic NodeFlow-like problem (node counts shrink layer to layer).
    IN_FEATS, N_HIDDEN, N_CLASSES, N_LAYERS = 64, 256, 10, 2   # -> 3 NodeUpdate layers
    node_counts = [280, 260, 144, 72]                          # NodeFlow layer sizes
    density = 0.15

    key = jax.random.PRNGKey(0)
    k_feat, k_adj, k_norm, k_param = jax.random.split(key, 4)

    features = jax.random.normal(k_feat, (node_counts[0], IN_FEATS), jnp.float32)

    adjs, norms = [], []
    for i in range(N_LAYERS + 1):
        dst, src = node_counts[i + 1], node_counts[i]
        ka = jax.random.fold_in(k_adj, i)
        adjs.append((jax.random.uniform(ka, (dst, src)) < density).astype(jnp.float32))
        kn = jax.random.fold_in(k_norm, i)
        norms.append(jax.random.uniform(kn, (dst, 1), jnp.float32, 0.1, 1.0))

    model = GCNInferPallas(IN_FEATS, N_HIDDEN, N_CLASSES, N_LAYERS, k_param)

    out = jax.block_until_ready(model(features, adjs, norms))

    # Pure-JAX reference (exact module semantics).
    h_ref = features
    for i, (w, b) in enumerate(model.params):
        z = (adjs[i] @ h_ref) * norms[i]
        z = z @ w.T + b
        if i < model.n_update_layers - 1:
            z = jnp.maximum(z, 0.0)
        h_ref = z

    assert out.shape == (node_counts[-1], N_CLASSES)
    scale = jnp.maximum(jnp.max(jnp.abs(h_ref)), 1.0)
    assert jnp.max(jnp.abs(out - h_ref)) / scale < 2e-3

    # bf16 matmul path (A / W / H pre-cast in the wrapper, f32 MXU accumulation).
    out_bf16 = jax.block_until_ready(model(features, adjs, norms,
                                           compute_dtype=jnp.bfloat16))
    assert out_bf16.shape == (node_counts[-1], N_CLASSES)
    assert jnp.max(jnp.abs(out_bf16 - h_ref)) / scale < 1e-1

    print("KERNEL_OK")
</pallas_src>

<mosaic_0001>
module attributes {stable_mosaic.version = 11 : i64} {
  func.func @_agg_norm_linear_kernel(%arg0: i32, %arg1: i32, %arg2: memref<128x128xf32, #tpu.memory_space<vmem>>, %arg3: memref<128x128xf32, #tpu.memory_space<vmem>>, %arg4: memref<128x1xf32, #tpu.memory_space<vmem>>, %arg5: memref<128x256xf32, #tpu.memory_space<vmem>>, %arg6: memref<1x256xf32, #tpu.memory_space<vmem>>, %arg7: memref<128x256xf32, #tpu.memory_space<vmem>>, %arg8: memref<128x128xf32, #tpu.memory_space<vmem>>) attributes {dimension_semantics = [#tpu.dimension_semantics<parallel>, #tpu.dimension_semantics<arbitrary>], iteration_bounds = array<i64: 3, 3>, scalar_prefetch = 0 : i64, scratch_operands = 1 : i64, tpu.core_type = #tpu.core_type<tc>, window_params = [{transform_indices = @transform_0, window_bounds = array<i64: 128, 128>}, {transform_indices = @transform_1, window_bounds = array<i64: 128, 128>}, {transform_indices = @transform_2, window_bounds = array<i64: 128, 1>}, {pipeline_mode = #tpu.pipeline_mode<synchronous>, transform_indices = @transform_3, window_bounds = array<i64: 128, 256>}, {pipeline_mode = #tpu.pipeline_mode<synchronous>, transform_indices = @transform_4, window_bounds = array<i64: 1, 256>}, {transform_indices = @transform_5, window_bounds = array<i64: 128, 256>}]} {
    %c0_i32 = arith.constant 0 : i32
    %0 = arith.cmpi eq, %arg1, %c0_i32 : i32
    %1 = arith.extui %0 : i1 to i32
    %c0_i32_0 = arith.constant 0 : i32
    %2 = arith.cmpi ne, %1, %c0_i32_0 : i32
    scf.if %2 {
      %cst_9 = arith.constant 0.000000e+00 : f32
      %12 = vector.broadcast %cst_9 : f32 to vector<128x128xf32>
      %c0_10 = arith.constant 0 : index
      %c0_11 = arith.constant 0 : index
      %13 = vector.load %arg8[%c0_10, %c0_11] : memref<128x128xf32, #tpu.memory_space<vmem>>, vector<128x128xf32>
      tpu.vector_store %arg8[%c0_10, %c0_11], %12 {strides = array<i32>} : memref<128x128xf32, #tpu.memory_space<vmem>>, vector<128x128xf32>,
    } else {
    }
    %c0 = arith.constant 0 : index
    %c0_1 = arith.constant 0 : index
    %3 = vector.load %arg8[%c0, %c0_1] : memref<128x128xf32, #tpu.memory_space<vmem>>, vector<128x128xf32>
    %c0_2 = arith.constant 0 : index
    %c0_3 = arith.constant 0 : index
    %4 = vector.load %arg2[%c0_2, %c0_3] : memref<128x128xf32, #tpu.memory_space<vmem>>, vector<128x128xf32>
    %c0_4 = arith.constant 0 : index
    %c0_5 = arith.constant 0 : index
    %5 = vector.load %arg3[%c0_4, %c0_5] : memref<128x128xf32, #tpu.memory_space<vmem>>, vector<128x128xf32>
    %cst = arith.constant dense<0.000000e+00> : vector<128x128xf32>
    %6 = tpu.matmul %4, %5, %cst {dimension_numbers = #tpu.dot_dimension_numbers<[1], [0], [0], [1], [0, 0, 1, 1], [], []>} : vector<128x128xf32>, vector<128x128xf32>, vector<128x128xf32> -> vector<128x128xf32>
    %7 = arith.addf %3, %6 : vector<128x128xf32>
    %c0_6 = arith.constant 0 : index
    %c0_7 = arith.constant 0 : index
    %8 = vector.load %arg8[%c0_6, %c0_7] : memref<128x128xf32, #tpu.memory_space<vmem>>, vector<128x128xf32>
    tpu.vector_store %arg8[%c0_6, %c0_7], %7 {strides = array<i32>} : memref<128x128xf32, #tpu.memory_space<vmem>>, vector<128x128xf32>,
    %c2_i32 = arith.constant 2 : i32
    %9 = arith.cmpi eq, %arg1, %c2_i32 : i32
    %10 = arith.extui %9 : i1 to i32
    %c0_i32_8 = arith.constant 0 : i32
    %11 = arith.cmpi ne, %10, %c0_i32_8 : i32
    scf.if %11 {
      %c0_9 = arith.constant 0 : index
      %c0_10 = arith.constant 0 : index
      %12 = vector.load %arg8[%c0_9, %c0_10] : memref<128x128xf32, #tpu.memory_space<vmem>>, vector<128x128xf32>
      %c0_11 = arith.constant 0 : index
      %c0_12 = arith.constant 0 : index
      %13 = vector.load %arg4[%c0_11, %c0_12] : memref<128x1xf32, #tpu.memory_space<vmem>>, vector<128x1xf32>
      %14 = vector.broadcast %13 : vector<128x1xf32> to vector<128x128xf32>
      %15 = arith.mulf %12, %14 : vector<128x128xf32>
      %c0_13 = arith.constant 0 : index
      %c0_14 = arith.constant 0 : index
      %16 = vector.load %arg5[%c0_13, %c0_14] : memref<128x256xf32, #tpu.memory_space<vmem>>, vector<128x256xf32>
      %cst_15 = arith.constant dense<0.000000e+00> : vector<128x256xf32>
      %17 = tpu.matmul %15, %16, %cst_15 {dimension_numbers = #tpu.dot_dimension_numbers<[1], [0], [0], [1], [0, 0, 1, 1], [], []>} : vector<128x128xf32>, vector<128x256xf32>, vector<128x256xf32> -> vector<128x256xf32>
      %c0_16 = arith.constant 0 : index
      %c0_17 = arith.constant 0 : index
      %18 = vector.load %arg6[%c0_16, %c0_17] : memref<1x256xf32, #tpu.memory_space<vmem>>, vector<1x256xf32>
      %19 = vector.broadcast %18 : vector<1x256xf32> to vector<128x256xf32>
      %20 = arith.addf %17, %19 : vector<128x256xf32>
      %cst_18 = arith.constant 0.000000e+00 : f32
      %21 = vector.broadcast %cst_18 : f32 to vector<128x256xf32>
      %22 = arith.maximumf %20, %21 : vector<128x256xf32>
      %c0_19 = arith.constant 0 : index
      %c0_20 = arith.constant 0 : index
      %23 = vector.load %arg7[%c0_19, %c0_20] : memref<128x256xf32, #tpu.memory_space<vmem>>, vector<128x256xf32>
      tpu.vector_store %arg7[%c0_19, %c0_20], %22 {strides = array<i32>} : memref<128x256xf32, #tpu.memory_space<vmem>>, vector<128x256xf32>,
    } else {
    }
    return
  }
  func.func @transform_0(%arg0: i32, %arg1: i32) -> (i32, i32) {
    %c0_i32 = arith.constant 0 : i32
    return %arg0, %arg1 : i32, i32
  }
  func.func @transform_1(%arg0: i32, %arg1: i32) -> (i32, i32) {
    %c0_i32 = arith.constant 0 : i32
    %c0_i32_0 = arith.constant 0 : i32
    return %arg1, %c0_i32 : i32, i32
  }
  func.func @transform_2(%arg0: i32, %arg1: i32) -> (i32, i32) {
    %c0_i32 = arith.constant 0 : i32
    %c0_i32_0 = arith.constant 0 : i32
    return %arg0, %c0_i32 : i32, i32
  }
  func.func @transform_3(%arg0: i32, %arg1: i32) -> (i32, i32) {
    %c0_i32 = arith.constant 0 : i32
    %c0_i32_0 = arith.constant 0 : i32
    %c0_i32_1 = arith.constant 0 : i32
    return %c0_i32, %c0_i32_0 : i32, i32
  }
  func.func @transform_4(%arg0: i32, %arg1: i32) -> (i32, i32) {
    %c0_i32 = arith.constant 0 : i32
    %c0_i32_0 = arith.constant 0 : i32
    %c0_i32_1 = arith.constant 0 : i32
    return %c0_i32, %c0_i32_0 : i32, i32
  }
  func.func @transform_5(%arg0: i32, %arg1: i32) -> (i32, i32) {
    %c0_i32 = arith.constant 0 : i32
    %c0_i32_0 = arith.constant 0 : i32
    return %arg0, %c0_i32 : i32, i32
  }
}

module attributes {stable_mosaic.version = 11 : i64} {
  func.func @_agg_norm_linear_kernel(%arg0: i32, %arg1: i32, %arg2: memref<256x128xf32, #tpu.memory_space<vmem>>, %arg3: memref<128x256xf32, #tpu.memory_space<vmem>>, %arg4: memref<256x1xf32, #tpu.memory_space<vmem>>, %arg5: memref<256x256xf32, #tpu.memory_space<vmem>>, %arg6: memref<1x256xf32, #tpu.memory_space<vmem>>, %arg7: memref<256x256xf32, #tpu.memory_space<vmem>>, %arg8: memref<256x256xf32, #tpu.memory_space<vmem>>) attributes {dimension_semantics = [#tpu.dimension_semantics<parallel>, #tpu.dimension_semantics<arbitrary>], iteration_bounds = array<i64: 1, 3>, scalar_prefetch = 0 : i64, scratch_operands = 1 : i64, tpu.core_type = #tpu.core_type<tc>, window_params = [{transform_indices = @transform_0, window_bounds = array<i64: 256, 128>}, {transform_indices = @transform_1, window_bounds = array<i64: 128, 256>}, {transform_indices = @transform_2, window_bounds = array<i64: 256, 1>}, {pipeline_mode = #tpu.pipeline_mode<synchronous>, transform_indices = @transform_3, window_bounds = array<i64: 256, 256>}, {pipeline_mode = #tpu.pipeline_mode<synchronous>, transform_indices = @transform_4, window_bounds = array<i64: 1, 256>}, {transform_indices = @transform_5, window_bounds = array<i64: 256, 256>}]} {
    %c0_i32 = arith.constant 0 : i32
    %0 = arith.cmpi eq, %arg1, %c0_i32 : i32
    %1 = arith.extui %0 : i1 to i32
    %c0_i32_0 = arith.constant 0 : i32
    %2 = arith.cmpi ne, %1, %c0_i32_0 : i32
    scf.if %2 {
      %cst_9 = arith.constant 0.000000e+00 : f32
      %12 = vector.broadcast %cst_9 : f32 to vector<256x256xf32>
      %c0_10 = arith.constant 0 : index
      %c0_11 = arith.constant 0 : index
      %13 = vector.load %arg8[%c0_10, %c0_11] : memref<256x256xf32, #tpu.memory_space<vmem>>, vector<256x256xf32>
      tpu.vector_store %arg8[%c0_10, %c0_11], %12 {strides = array<i32>} : memref<256x256xf32, #tpu.memory_space<vmem>>, vector<256x256xf32>,
    } else {
    }
    %c0 = arith.constant 0 : index
    %c0_1 = arith.constant 0 : index
    %3 = vector.load %arg8[%c0, %c0_1] : memref<256x256xf32, #tpu.memory_space<vmem>>, vector<256x256xf32>
    %c0_2 = arith.constant 0 : index
    %c0_3 = arith.constant 0 : index
    %4 = vector.load %arg2[%c0_2, %c0_3] : memref<256x128xf32, #tpu.memory_space<vmem>>, vector<256x128xf32>
    %c0_4 = arith.constant 0 : index
    %c0_5 = arith.constant 0 : index
    %5 = vector.load %arg3[%c0_4, %c0_5] : memref<128x256xf32, #tpu.memory_space<vmem>>, vector<128x256xf32>
    %cst = arith.constant dense<0.000000e+00> : vector<256x256xf32>
    %6 = tpu.matmul %4, %5, %cst {dimension_numbers = #tpu.dot_dimension_numbers<[1], [0], [0], [1], [0, 0, 1, 1], [], []>} : vector<256x128xf32>, vector<128x256xf32>, vector<256x256xf32> -> vector<256x256xf32>
    %7 = arith.addf %3, %6 : vector<256x256xf32>
    %c0_6 = arith.constant 0 : index
    %c0_7 = arith.constant 0 : index
    %8 = vector.load %arg8[%c0_6, %c0_7] : memref<256x256xf32, #tpu.memory_space<vmem>>, vector<256x256xf32>
    tpu.vector_store %arg8[%c0_6, %c0_7], %7 {strides = array<i32>} : memref<256x256xf32, #tpu.memory_space<vmem>>, vector<256x256xf32>,
    %c2_i32 = arith.constant 2 : i32
    %9 = arith.cmpi eq, %arg1, %c2_i32 : i32
    %10 = arith.extui %9 : i1 to i32
    %c0_i32_8 = arith.constant 0 : i32
    %11 = arith.cmpi ne, %10, %c0_i32_8 : i32
    scf.if %11 {
      %c0_9 = arith.constant 0 : index
      %c0_10 = arith.constant 0 : index
      %12 = vector.load %arg8[%c0_9, %c0_10] : memref<256x256xf32, #tpu.memory_space<vmem>>, vector<256x256xf32>
      %c0_11 = arith.constant 0 : index
      %c0_12 = arith.constant 0 : index
      %13 = vector.load %arg4[%c0_11, %c0_12] : memref<256x1xf32, #tpu.memory_space<vmem>>, vector<256x1xf32>
      %14 = vector.broadcast %13 : vector<256x1xf32> to vector<256x256xf32>
      %15 = arith.mulf %12, %14 : vector<256x256xf32>
      %c0_13 = arith.constant 0 : index
      %c0_14 = arith.constant 0 : index
      %16 = vector.load %arg5[%c0_13, %c0_14] : memref<256x256xf32, #tpu.memory_space<vmem>>, vector<256x256xf32>
      %cst_15 = arith.constant dense<0.000000e+00> : vector<256x256xf32>
      %17 = tpu.matmul %15, %16, %cst_15 {dimension_numbers = #tpu.dot_dimension_numbers<[1], [0], [0], [1], [0, 0, 1, 1], [], []>} : vector<256x256xf32>, vector<256x256xf32>, vector<256x256xf32> -> vector<256x256xf32>
      %c0_16 = arith.constant 0 : index
      %c0_17 = arith.constant 0 : index
      %18 = vector.load %arg6[%c0_16, %c0_17] : memref<1x256xf32, #tpu.memory_space<vmem>>, vector<1x256xf32>
      %19 = vector.broadcast %18 : vector<1x256xf32> to vector<256x256xf32>
      %20 = arith.addf %17, %19 : vector<256x256xf32>
      %cst_18 = arith.constant 0.000000e+00 : f32
      %21 = vector.broadcast %cst_18 : f32 to vector<256x256xf32>
      %22 = arith.maximumf %20, %21 : vector<256x256xf32>
      %c0_19 = arith.constant 0 : index
      %c0_20 = arith.constant 0 : index
      %23 = vector.load %arg7[%c0_19, %c0_20] : memref<256x256xf32, #tpu.memory_space<vmem>>, vector<256x256xf32>
      tpu.vector_store %arg7[%c0_19, %c0_20], %22 {strides = array<i32>} : memref<256x256xf32, #tpu.memory_space<vmem>>, vector<256x256xf32>,
    } else {
    }
    return
  }
  func.func @transform_0(%arg0: i32, %arg1: i32) -> (i32, i32) {
    %c0_i32 = arith.constant 0 : i32
    return %arg0, %arg1 : i32, i32
  }
  func.func @transform_1(%arg0: i32, %arg1: i32) -> (i32, i32) {
    %c0_i32 = arith.constant 0 : i32
    %c0_i32_0 = arith.constant 0 : i32
    return %arg1, %c0_i32 : i32, i32
  }
  func.func @transform_2(%arg0: i32, %arg1: i32) -> (i32, i32) {
    %c0_i32 = arith.constant 0 : i32
    %c0_i32_0 = arith.constant 0 : i32
    return %arg0, %c0_i32 : i32, i32
  }
  func.func @transform_3(%arg0: i32, %arg1: i32) -> (i32, i32) {
    %c0_i32 = arith.constant 0 : i32
    %c0_i32_0 = arith.constant 0 : i32
    %c0_i32_1 = arith.constant 0 : i32
    return %c0_i32, %c0_i32_0 : i32, i32
  }
  func.func @transform_4(%arg0: i32, %arg1: i32) -> (i32, i32) {
    %c0_i32 = arith.constant 0 : i32
    %c0_i32_0 = arith.constant 0 : i32
    %c0_i32_1 = arith.constant 0 : i32
    return %c0_i32, %c0_i32_0 : i32, i32
  }
  func.func @transform_5(%arg0: i32, %arg1: i32) -> (i32, i32) {
    %c0_i32 = arith.constant 0 : i32
    %c0_i32_0 = arith.constant 0 : i32
    return %arg0, %c0_i32 : i32, i32
  }
}

module attributes {stable_mosaic.version = 11 : i64} {
  func.func @_agg_norm_linear_kernel(%arg0: i32, %arg1: i32, %arg2: memref<128x256xf32, #tpu.memory_space<vmem>>, %arg3: memref<256x256xf32, #tpu.memory_space<vmem>>, %arg4: memref<128x1xf32, #tpu.memory_space<vmem>>, %arg5: memref<256x128xf32, #tpu.memory_space<vmem>>, %arg6: memref<1x128xf32, #tpu.memory_space<vmem>>, %arg7: memref<128x128xf32, #tpu.memory_space<vmem>>, %arg8: memref<128x256xf32, #tpu.memory_space<vmem>>) attributes {dimension_semantics = [#tpu.dimension_semantics<parallel>, #tpu.dimension_semantics<arbitrary>], iteration_bounds = array<i64: 1, 1>, scalar_prefetch = 0 : i64, scratch_operands = 1 : i64, tpu.core_type = #tpu.core_type<tc>, window_params = [{transform_indices = @transform_0, window_bounds = array<i64: 128, 256>}, {transform_indices = @transform_1, window_bounds = array<i64: 256, 256>}, {transform_indices = @transform_2, window_bounds = array<i64: 128, 1>}, {pipeline_mode = #tpu.pipeline_mode<synchronous>, transform_indices = @transform_3, window_bounds = array<i64: 256, 128>}, {pipeline_mode = #tpu.pipeline_mode<synchronous>, transform_indices = @transform_4, window_bounds = array<i64: 1, 128>}, {transform_indices = @transform_5, window_bounds = array<i64: 128, 128>}]} {
    %c0_i32 = arith.constant 0 : i32
    %0 = arith.cmpi eq, %arg1, %c0_i32 : i32
    %1 = arith.extui %0 : i1 to i32
    %c0_i32_0 = arith.constant 0 : i32
    %2 = arith.cmpi ne, %1, %c0_i32_0 : i32
    scf.if %2 {
      %cst_10 = arith.constant 0.000000e+00 : f32
      %12 = vector.broadcast %cst_10 : f32 to vector<128x256xf32>
      %c0_11 = arith.constant 0 : index
      %c0_12 = arith.constant 0 : index
      %13 = vector.load %arg8[%c0_11, %c0_12] : memref<128x256xf32, #tpu.memory_space<vmem>>, vector<128x256xf32>
      tpu.vector_store %arg8[%c0_11, %c0_12], %12 {strides = array<i32>} : memref<128x256xf32, #tpu.memory_space<vmem>>, vector<128x256xf32>,
    } else {
    }
    %c0 = arith.constant 0 : index
    %c0_1 = arith.constant 0 : index
    %3 = vector.load %arg8[%c0, %c0_1] : memref<128x256xf32, #tpu.memory_space<vmem>>, vector<128x256xf32>
    %c0_2 = arith.constant 0 : index
    %c0_3 = arith.constant 0 : index
    %4 = vector.load %arg2[%c0_2, %c0_3] : memref<128x256xf32, #tpu.memory_space<vmem>>, vector<128x256xf32>
    %c0_4 = arith.constant 0 : index
    %c0_5 = arith.constant 0 : index
    %5 = vector.load %arg3[%c0_4, %c0_5] : memref<256x256xf32, #tpu.memory_space<vmem>>, vector<256x256xf32>
    %cst = arith.constant dense<0.000000e+00> : vector<128x256xf32>
    %6 = tpu.matmul %4, %5, %cst {dimension_numbers = #tpu.dot_dimension_numbers<[1], [0], [0], [1], [0, 0, 1, 1], [], []>} : vector<128x256xf32>, vector<256x256xf32>, vector<128x256xf32> -> vector<128x256xf32>
    %7 = arith.addf %3, %6 : vector<128x256xf32>
    %c0_6 = arith.constant 0 : index
    %c0_7 = arith.constant 0 : index
    %8 = vector.load %arg8[%c0_6, %c0_7] : memref<128x256xf32, #tpu.memory_space<vmem>>, vector<128x256xf32>
    tpu.vector_store %arg8[%c0_6, %c0_7], %7 {strides = array<i32>} : memref<128x256xf32, #tpu.memory_space<vmem>>, vector<128x256xf32>,
    %c0_i32_8 = arith.constant 0 : i32
    %9 = arith.cmpi eq, %arg1, %c0_i32_8 : i32
    %10 = arith.extui %9 : i1 to i32
    %c0_i32_9 = arith.constant 0 : i32
    %11 = arith.cmpi ne, %10, %c0_i32_9 : i32
    scf.if %11 {
      %c0_10 = arith.constant 0 : index
      %c0_11 = arith.constant 0 : index
      %12 = vector.load %arg8[%c0_10, %c0_11] : memref<128x256xf32, #tpu.memory_space<vmem>>, vector<128x256xf32>
      %c0_12 = arith.constant 0 : index
      %c0_13 = arith.constant 0 : index
      %13 = vector.load %arg4[%c0_12, %c0_13] : memref<128x1xf32, #tpu.memory_space<vmem>>, vector<128x1xf32>
      %14 = vector.broadcast %13 : vector<128x1xf32> to vector<128x256xf32>
      %15 = arith.mulf %12, %14 : vector<128x256xf32>
      %c0_14 = arith.constant 0 : index
      %c0_15 = arith.constant 0 : index
      %16 = vector.load %arg5[%c0_14, %c0_15] : memref<256x128xf32, #tpu.memory_space<vmem>>, vector<256x128xf32>
      %cst_16 = arith.constant dense<0.000000e+00> : vector<128x128xf32>
      %17 = tpu.matmul %15, %16, %cst_16 {dimension_numbers = #tpu.dot_dimension_numbers<[1], [0], [0], [1], [0, 0, 1, 1], [], []>} : vector<128x256xf32>, vector<256x128xf32>, vector<128x128xf32> -> vector<128x128xf32>
      %c0_17 = arith.constant 0 : index
      %c0_18 = arith.constant 0 : index
      %18 = vector.load %arg6[%c0_17, %c0_18] : memref<1x128xf32, #tpu.memory_space<vmem>>, vector<1x128xf32>
      %19 = vector.broadcast %18 : vector<1x128xf32> to vector<128x128xf32>
      %20 = arith.addf %17, %19 : vector<128x128xf32>
      %c0_19 = arith.constant 0 : index
      %c0_20 = arith.constant 0 : index
      %21 = vector.load %arg7[%c0_19, %c0_20] : memref<128x128xf32, #tpu.memory_space<vmem>>, vector<128x128xf32>
      tpu.vector_store %arg7[%c0_19, %c0_20], %20 {strides = array<i32>} : memref<128x128xf32, #tpu.memory_space<vmem>>, vector<128x128xf32>,
    } else {
    }
    return
  }
  func.func @transform_0(%arg0: i32, %arg1: i32) -> (i32, i32) {
    %c0_i32 = arith.constant 0 : i32
    return %arg0, %arg1 : i32, i32
  }
  func.func @transform_1(%arg0: i32, %arg1: i32) -> (i32, i32) {
    %c0_i32 = arith.constant 0 : i32
    %c0_i32_0 = arith.constant 0 : i32
    return %arg1, %c0_i32 : i32, i32
  }
  func.func @transform_2(%arg0: i32, %arg1: i32) -> (i32, i32) {
    %c0_i32 = arith.constant 0 : i32
    %c0_i32_0 = arith.constant 0 : i32
    return %arg0, %c0_i32 : i32, i32
  }
  func.func @transform_3(%arg0: i32, %arg1: i32) -> (i32, i32) {
    %c0_i32 = arith.constant 0 : i32
    %c0_i32_0 = arith.constant 0 : i32
    %c0_i32_1 = arith.constant 0 : i32
    return %c0_i32, %c0_i32_0 : i32, i32
  }
  func.func @transform_4(%arg0: i32, %arg1: i32) -> (i32, i32) {
    %c0_i32 = arith.constant 0 : i32
    %c0_i32_0 = arith.constant 0 : i32
    %c0_i32_1 = arith.constant 0 : i32
    return %c0_i32, %c0_i32_0 : i32, i32
  }
  func.func @transform_5(%arg0: i32, %arg1: i32) -> (i32, i32) {
    %c0_i32 = arith.constant 0 : i32
    %c0_i32_0 = arith.constant 0 : i32
    return %arg0, %c0_i32 : i32, i32
  }
}

</mosaic_0001>

<bundles_post_ra>
// kernel: gcn_infer_forward.3
= control target key start
LH: loop header
LB: loop body
LE: loop exit
PB: predicated region body
PF: predicated region fallthrough
CT: control target
= control target key end

     0   :  { %s1489_s18 = smov 0   ;;  %s1491_s19 = smov 0   ;;  %s1843_s0 = inlined_call_operand.vmem [shape: f32[384,384], index: 0, kind: input, shape index: {}]   ;;  %s1844_s1 = inlined_call_operand.vmem [shape: f32[384,128], index: 1, kind: input, shape index: {}]   ;;  %s1845_s2 = inlined_call_operand.vmem [shape: f32[384,1], index: 2, kind: input, shape index: {}]   ;;  %s1846_s3 = inlined_call_operand.vmem [shape: f32[128,256], index: 3, kind: input, shape index: {}]   ;;  %s1847_s4 = inlined_call_operand.vmem [shape: f32[1,256], index: 4, kind: input, shape index: {}]   ;;  %s1848_s5 = inlined_call_operand.vmem [shape: f32[384,256], index: 5, kind: output, shape index: {}]  }
   0x1   :  { %s1493_s20 = smov 0   ;;  %s1495_s21 = smov 0  }
   0x2   :  { %s1497_s22 = smov 0   ;;  %s1499_s23 = smov 0  }
   0x3   :  { %s1501_s24 = smov 0  }
   0x4 LB: > { %s24_s25 = sadd.s32 1, %s1446_s22  ;;  %s27_s26 = sadd.s32 1, %s1450_s23  ;;  %s1454_s24 = sphi %s1501_s24, %s15_s24   ;;  %s1450_s23 = sphi %s1499_s23, %s1854_s23   ;;  %s1446_s22 = sphi %s1497_s22, %s1853_s22   ;;  %s1442_s21 = sphi %s1495_s21, %s1852_s21   ;;  %s1438_s20 = sphi %s1493_s20, %s1851_s20   ;;  %s1434_s19 = sphi %s1491_s19, %s1850_s19   ;;  %s1430_s18 = sphi %s1489_s18, %s1849_s18  }
   0x5   : > { %p25_p0 = scmp.ge.s32.totalorder %s24_s25, 3  ;;  %p43_p1 = scmp.ne.s32.totalorder %s1434_s19, %s1430_s18 }
   0x6   : > { %p44_p2 = scmp.eq.s32.totalorder %s1454_s24, 0  ;;  %s36_s30 = sadd.s32 1, %s1434_s19 }
   0x7   : > { %s1856_s25 = smov (%p25_p0, %s24_s25), 0  ;;  %s1858_s26 = smov (!%p25_p0, %s27_s26), %s1450_s23 }
   0x8   : > { %p45_p3 = por %p44_p2, %p43_p1  ;;  %p29_p4 = scmp.ge.s32.totalorder %s1858_s26, 3 }
   0x9   : > { %s32_s27 = ssub.s32 %s1446_s22, %s1856_s25  ;;  %p1135_p6 = scmp.ge.s32.totalorder %s1454_s24, 9 }
   0xa   : > { %s1860_s26 = smov (%p29_p4, %s1858_s26), 0 }
   0xb   : > { %s31_s28 = ssub.s32 %s1450_s23, %s1860_s26  ;;  %195 = sbr.rel (%p1135_p6) target bundleno = 33 (0x21), region = 24 }
   0xc   : > { %s33_s29 = sor.u32 %s32_s27, %s31_s28 }
   0xd   : > { %p34_p5 = scmp.eq.s32.totalorder %s33_s29, 0 }
   0xf   : > { %s1540_s6 = scalar_select %p34_p5, %s1434_s19, %s36_s30  }
  0x12   : > { %198 = sbr.rel (!%p45_p3) target bundleno = 33 (0x21), region = 28  ;;  %s200_s7 = sand.u32 (%p45_p3), 1, %s1434_s19  }
  0x13   : > { %s1338_s8 = smul.u32 (%p45_p3), 48, %s1450_s23  ;;  %s1136_s9 = sshll.u32 (%p45_p3), %s200_s7, 7 }
  0x14   : > { %s202_s15 = scalar_lea.vmem (%p45_p3), [#allocation3], %s1136_s9 }
  0x15   : > { %s205_s10 = sadd.s32 (%p45_p3), %s1446_s22, %s1338_s8 }
  0x16   : > { %s1139_s11 = sshll.u32 (%p45_p3), %s205_s10, 3 }
  0x17   : > { %s1549_s14 = scalar_lea.vmem (%p45_p3), %s1843_s0, %s1139_s11 }
  0x18   : > { %v265_v0 = vld [vmem:[%s1549_s14] sm:$0xff] (%p45_p3)  ;;  %v267_v1 = vld [vmem:[%s1549_s14 + $0x18] sm:$0xff] (%p45_p3)  ;;  %v269_v2 = vld [vmem:[%s1549_s14 + $0x30] sm:$0xff] (%p45_p3) }
  0x19   : > { %266 = vst [vmem:[%s202_s15] sm:$0xff] %v265_v0  ;;  %268 = vst [vmem:[%s202_s15 + $0x8] sm:$0xff] %v267_v1  ;;  %v271_v3 = vld [vmem:[%s1549_s14 + $0x48] sm:$0xff]  ;;  %v273_v4 = vld [vmem:[%s1549_s14 + $0x60] sm:$0xff] }
  0x1a   : > { %270 = vst [vmem:[%s202_s15 + $0x10] sm:$0xff] %v269_v2  ;;  %v275_v5 = vld [vmem:[%s1549_s14 + $0x78] sm:$0xff]  ;;  %272 = vst [vmem:[%s202_s15 + $0x18] sm:$0xff] %v271_v3  ;;  %v277_v6 = vld [vmem:[%s1549_s14 + $0x90] sm:$0xff] }
  0x1b   : > { %274 = vst [vmem:[%s202_s15 + $0x20] sm:$0xff] %v273_v4  ;;  %276 = vst [vmem:[%s202_s15 + $0x28] sm:$0xff] %v275_v5  ;;  %v279_v7 = vld [vmem:[%s1549_s14 + $0xa8] sm:$0xff]  ;;  %v281_v8 = vld [vmem:[%s1549_s14 + $0xc0] sm:$0xff] }
  0x1c   : > { %278 = vst [vmem:[%s202_s15 + $0x30] sm:$0xff] %v277_v6  ;;  %280 = vst [vmem:[%s202_s15 + $0x38] sm:$0xff] %v279_v7  ;;  %v283_v9 = vld [vmem:[%s1549_s14 + $0xd8] sm:$0xff]  ;;  %v285_v10 = vld [vmem:[%s1549_s14 + $0xf0] sm:$0xff] }
  0x1d   : > { %282 = vst [vmem:[%s202_s15 + $0x40] sm:$0xff] %v281_v8  ;;  %v287_v11 = vld [vmem:[%s1549_s14 + $0x108] sm:$0xff]  ;;  %284 = vst [vmem:[%s202_s15 + $0x48] sm:$0xff] %v283_v9  ;;  %v289_v12 = vld [vmem:[%s1549_s14 + $0x120] sm:$0xff] }
  0x1e   : > { %286 = vst [vmem:[%s202_s15 + $0x50] sm:$0xff] %v285_v10  ;;  %288 = vst [vmem:[%s202_s15 + $0x58] sm:$0xff] %v287_v11  ;;  %v291_v13 = vld [vmem:[%s1549_s14 + $0x138] sm:$0xff]  ;;  %v293_v14 = vld [vmem:[%s1549_s14 + $0x150] sm:$0xff] }
  0x1f   : > { %290 = vst [vmem:[%s202_s15 + $0x60] sm:$0xff] %v289_v12  ;;  %292 = vst [vmem:[%s202_s15 + $0x68] sm:$0xff] %v291_v13  ;;  %v295_v15 = vld [vmem:[%s1549_s14 + $0x168] sm:$0xff] }
  0x20   : > { %294 = vst [vmem:[%s202_s15 + $0x70] sm:$0xff] %v293_v14  ;;  %296 = vst [vmem:[%s202_s15 + $0x78] sm:$0xff] %v295_v15 }
  0x21 PF: > { %p1140_p7 = scmp.ge.s32.totalorder %s1454_s24, 1  ;;  %p319_p8 = scmp.lt.s32.totalorder %s1454_s24, 10 }
  0x23   : > { %p320_p9 = pnand %p1140_p7, %p319_p8 }
  0x24   : > { %s326_s16 = sand.u32 (!%p320_p9), 1, %s1430_s18   ;;  %s1142_s17 = sshll.u32 (!%p320_p9), %s1438_s20, 4 }
  0x25   : > { %323 = sbr.rel (%p320_p9) target bundleno = 671 (0x29f), region = 74  ;;  %s1141_s27 = sshll.u32 (!%p320_p9), %s326_s16, 7 }
  0x26   : > { %p366_p10 = scmp.lt.s32.totalorder (!%p320_p9), %s1142_s17, 47  ;;  %s1144_s28 = sshll.u32 (!%p320_p9), %s1442_s21, 4 }
  0x27   : > { %p372_p11 = scmp.lt.s32.totalorder (!%p320_p9), %s1144_s28, 47  ;;  %s1587_s15 = scalar_lea.vmem (!%p320_p9), [#allocation3], %s1141_s27 }
  0x28   : > { %p1149_p12 = scmp.ne.s32.totalorder (!%p320_p9), %s1438_s20, 0 }
  0x2c   : > { %s1862_s17 = smov (!%p366_p10, %s1142_s17), 47  ;;  %s1864_s28 = smov (!%p372_p11, %s1144_s28), 47 }
  0x2d   : > { %s1143_s29 = sshll.u32 %s1862_s17, 3  ;;  %s1145_s9 = sshll.u32 %s1864_s28, 3  ;;  %v1456_v16 = vmov (!%p1149_p12), 0.0  }
  0x2e   : > { %s1575_s8 = scalar_lea.vmem %s1844_s1, %s1143_s29  ;;  %s1153_s10 = sshll.u32 %s1864_s28, 4  ;;  %388 = vst [vmem:[#allocation2] sm:$0xff] (!%p1149_p12), %v1456_v16  ;;  %389 = vst [vmem:[#allocation2 + $0x8] sm:$0xff] (!%p1149_p12), %v1456_v16 }
  0x2f   : > { %s1580_s13 = scalar_lea.vmem %s1845_s2, %s1145_s9  ;;  %s1585_s21 = scalar_lea.vmem %s1848_s5, %s1153_s10  ;;  %390 = vst [vmem:[#allocation2 + $0x10] sm:$0xff] (!%p1149_p12), %v1456_v16  ;;  %391 = vst [vmem:[#allocation2 + $0x18] sm:$0xff] (!%p1149_p12), %v1456_v16 }
  0x30   : > { %387 = sbr.rel (%p1149_p12) target bundleno = 55 (0x37), region = 82  ;;  %392 = vst [vmem:[#allocation2 + $0x20] sm:$0xff] (!%p1149_p12), %v1456_v16  ;;  %393 = vst [vmem:[#allocation2 + $0x28] sm:$0xff] (!%p1149_p12), %v1456_v16 }
  0x31   : > { %394 = vst [vmem:[#allocation2 + $0x30] sm:$0xff] (!%p1149_p12), %v1456_v16  ;;  %395 = vst [vmem:[#allocation2 + $0x38] sm:$0xff] (!%p1149_p12), %v1456_v16 }
  0x32   : > { %396 = vst [vmem:[#allocation2 + $0x40] sm:$0xff] (!%p1149_p12), %v1456_v16  ;;  %397 = vst [vmem:[#allocation2 + $0x48] sm:$0xff] (!%p1149_p12), %v1456_v16 }
  0x33   : > { %398 = vst [vmem:[#allocation2 + $0x50] sm:$0xff] (!%p1149_p12), %v1456_v16  ;;  %399 = vst [vmem:[#allocation2 + $0x58] sm:$0xff] (!%p1149_p12), %v1456_v16 }
  0x34   : > { %400 = vst [vmem:[#allocation2 + $0x60] sm:$0xff] (!%p1149_p12), %v1456_v16  ;;  %401 = vst [vmem:[#allocation2 + $0x68] sm:$0xff] (!%p1149_p12), %v1456_v16 }
  0x35   : > { %402 = vst [vmem:[#allocation2 + $0x70] sm:$0xff] (!%p1149_p12), %v1456_v16  ;;  %403 = vst [vmem:[#allocation2 + $0x78] sm:$0xff] (!%p1149_p12), %v1456_v16 }
  0x37 PF: > { %v436_v17 = vld [vmem:[%s1575_s8] sm:$0xff]  ;;  %v437_v18 = vld [vmem:[%s1575_s8 + $0x8] sm:$0xff]  ;;  %v438_v19 = vld [vmem:[%s1575_s8 + $0x10] sm:$0xff]  ;;  %p1150_p13 = scmp.ne.s32.totalorder %s1438_s20, 2 }
  0x38   : > { %v1242_v20 = vpack.c.bf16 %v437_v18, %v436_v17  ;;  %v439_v21 = vld [vmem:[%s1575_s8 + $0x18] sm:$0xff]  ;;  %v440_v23 = vld [vmem:[%s1575_s8 + $0x20] sm:$0xff]  ;;  %v441_v24 = vld [vmem:[%s1575_s8 + $0x28] sm:$0xff] }
  0x39   : > { %v1246_v22 = vpack.c.bf16 %v439_v21, %v438_v19  ;;  %v1250_v25 = vpack.c.bf16 %v441_v24, %v440_v23  ;;  %v420_v26 = vld [vmem:[%s1587_s15] sm:$0xff]  ;;  %v442_v28 = vld [vmem:[%s1575_s8 + $0x30] sm:$0xff]  ;;  %v443_v29 = vld [vmem:[%s1575_s8 + $0x38] sm:$0xff] }
  0x3a   : > { %1243 = vmatprep.subr.bf16.mxu0 %v1242_v20  ;;  %1306 = vmatprep.subr.bf16.mxu1 %v1242_v20  ;;  %v428_v27 = vld [vmem:[%s1587_s15 + $0x40] sm:$0xff]  ;;  %v1254_v30 = vpack.c.bf16 %v443_v29, %v442_v28  ;;  %v445_v32 = vld [vmem:[%s1575_s8 + $0x48] sm:$0xff]  ;;  %v446_v34 = vld [vmem:[%s1575_s8 + $0x50] sm:$0xff] }
  0x3b   : > { %1245 = vmatpush3.bf16.msra.mxu0 %v1242_v20  ;;  %1314 = vmatpush3.bf16.msra.mxu1 %v1242_v20  ;;  %v444_v31 = vld [vmem:[%s1575_s8 + $0x40] sm:$0xff]  ;;  %v447_v35 = vld [vmem:[%s1575_s8 + $0x58] sm:$0xff]  ;;  %v449_v38 = vld [vmem:[%s1575_s8 + $0x68] sm:$0xff] }
  0x3c   : > { %1247 = vmatprep.subr.bf16.mxu0 %v1246_v22  ;;  %1307 = vmatprep.subr.bf16.mxu1 %v1246_v22  ;;  %v1258_v33 = vpack.c.bf16 %v445_v32, %v444_v31  ;;  %v1262_v36 = vpack.c.bf16 %v447_v35, %v446_v34  ;;  %v448_v37 = vld [vmem:[%s1575_s8 + $0x60] sm:$0xff]  ;;  %v450_v40 = vld [vmem:[%s1575_s8 + $0x70] sm:$0xff]  ;;  %v451_v41 = vld [vmem:[%s1575_s8 + $0x78] sm:$0xff] }
  0x3d   : > { %1218 = vmatprep.mubr.f32.mxu0 %v420_v26  ;;  %1230 = vmatprep.mubr.f32.mxu1 %v428_v27  ;;  %v1266_v39 = vpack.c.bf16 %v449_v38, %v448_v37  ;;  %v1270_v42 = vpack.c.bf16 %v451_v41, %v450_v40  ;;  %v421_v43 = vld [vmem:[%s1587_s15 + $0x8] sm:$0xff]  ;;  %v422_v45 = vld [vmem:[%s1587_s15 + $0x10] sm:$0xff]  ;;  %v423_v47 = vld [vmem:[%s1587_s15 + $0x18] sm:$0xff] }
  0x3e   : > { %v429_v44 = vld [vmem:[%s1587_s15 + $0x48] sm:$0xff]  ;;  %v430_v46 = vld [vmem:[%s1587_s15 + $0x50] sm:$0xff]  ;;  %v431_v48 = vld [vmem:[%s1587_s15 + $0x58] sm:$0xff] }
  0x3f   : > { %1249 = vmatpush3.bf16.msra.mxu0 %v1246_v22  ;;  %1315 = vmatpush3.bf16.msra.mxu1 %v1246_v22  ;;  %v424_v49 = vld [vmem:[%s1587_s15 + $0x20] sm:$0xff]  ;;  %v425_v51 = vld [vmem:[%s1587_s15 + $0x28] sm:$0xff]  ;;  %v426_v53 = vld [vmem:[%s1587_s15 + $0x30] sm:$0xff] }
  0x40   : > { %1251 = vmatprep.subr.bf16.mxu0 %v1250_v25  ;;  %1308 = vmatprep.subr.bf16.mxu1 %v1250_v25  ;;  %v432_v50 = vld [vmem:[%s1587_s15 + $0x60] sm:$0xff]  ;;  %v433_v52 = vld [vmem:[%s1587_s15 + $0x68] sm:$0xff]  ;;  %v434_v54 = vld [vmem:[%s1587_s15 + $0x70] sm:$0xff] }
  0x41   : > { %v427_v55 = vld [vmem:[%s1587_s15 + $0x38] sm:$0xff]  ;;  %v405_v57 = vld [vmem:[#allocation2 + $0x8] sm:$0xff]  ;;  %v404_v59 = vld [vmem:[#allocation2] sm:$0xff] }
  0x42   : > { %v435_v56 = vld [vmem:[%s1587_s15 + $0x78] sm:$0xff]  ;;  %v413_v58 = vld [vmem:[#allocation2 + $0x48] sm:$0xff]  ;;  %v412_v60 = vld [vmem:[#allocation2 + $0x40] sm:$0xff] }
  0x43   : > { %1253 = vmatpush3.bf16.msra.mxu0 %v1250_v25  ;;  %1316 = vmatpush3.bf16.msra.mxu1 %v1250_v25  ;;  %v407_v5 = vld [vmem:[#allocation2 + $0x18] sm:$0xff]  ;;  %v406_v7 = vld [vmem:[#allocation2 + $0x10] sm:$0xff]  ;;  %v409_v17 = vld [vmem:[#allocation2 + $0x28] sm:$0xff] }
  0x44   : > { %1255 = vmatprep.subr.bf16.mxu0 %v1254_v30  ;;  %1309 = vmatprep.subr.bf16.mxu1 %v1254_v30  ;;  %v415_v6 = vld [vmem:[#allocation2 + $0x58] sm:$0xff]  ;;  %v414_v8 = vld [vmem:[#allocation2 + $0x50] sm:$0xff]  ;;  %v417_v18 = vld [vmem:[#allocation2 + $0x68] sm:$0xff] }
  0x45   : > { %v408_v19 = vld [vmem:[#allocation2 + $0x20] sm:$0xff]  ;;  %v411_v29 = vld [vmem:[#allocation2 + $0x38] sm:$0xff]  ;;  %v410_v31 = vld [vmem:[#allocation2 + $0x30] sm:$0xff] }
  0x46   : > { %v416_v20 = vld [vmem:[#allocation2 + $0x60] sm:$0xff]  ;;  %v418_v32 = vld [vmem:[#allocation2 + $0x70] sm:$0xff]  ;;  %v650_v41 = vld [vmem:[%s1580_s13 + $0x8] sm:$0xff] (!%p1150_p13) }
  0x47   : > { %1257 = vmatpush3.bf16.msra.mxu0 %v1254_v30  ;;  %1317 = vmatpush3.bf16.msra.mxu1 %v1254_v30  ;;  %v419_v30 = vld [vmem:[#allocation2 + $0x78] sm:$0xff] }
  0x48   : > { %1259 = vmatprep.subr.bf16.mxu0 %v1258_v33  ;;  %1310 = vmatprep.subr.bf16.mxu1 %v1258_v33 }
  0x4b   : > { %1261 = vmatpush3.bf16.msra.mxu0 %v1258_v33  ;;  %1318 = vmatpush3.bf16.msra.mxu1 %v1258_v33 }
  0x4c   : > { %1263 = vmatprep.subr.bf16.mxu0 %v1262_v36  ;;  %1311 = vmatprep.subr.bf16.mxu1 %v1262_v36 }
  0x4f   : > { %1265 = vmatpush3.bf16.msra.mxu0 %v1262_v36  ;;  %1319 = vmatpush3.bf16.msra.mxu1 %v1262_v36 }
  0x50   : > { %1267 = vmatprep.subr.bf16.mxu0 %v1266_v39  ;;  %1312 = vmatprep.subr.bf16.mxu1 %v1266_v39 }
  0x53   : > { %1269 = vmatpush3.bf16.msra.mxu0 %v1266_v39  ;;  %1320 = vmatpush3.bf16.msra.mxu1 %v1266_v39 }
  0x54   : > { %1271 = vmatprep.subr.bf16.mxu0 %v1270_v42  ;;  %1313 = vmatprep.subr.bf16.mxu1 %v1270_v42 }
  0x57   : > { %1273 = vmatpush3.bf16.msra.mxu0 %v1270_v42  ;;  %1321 = vmatpush3.bf16.msra.mxu1 %v1270_v42  ;;  %v649_v42 = vld [vmem:[%s1580_s13] sm:$0xff] (!%p1150_p13) }
  0x5a   : > { %1219 = vmatmul.mubr.f32.vlgmr.msra.gmra.mrb[0].mxu0 %v421_v43  ;;  %1231 = vmatmul.mubr.f32.vlgmr.msra.gmra.mrb[0].mxu1 %v429_v44  ;;  %v1457_v43 = vmov (!%p1150_p13), 0   ;;  %v658_v44 = vld [vmem:[%s1580_s13 + $0x48] sm:$0xff] (!%p1150_p13) }
  0x5b   : > { %1221 = vmatprep.mubr.f32.mxu0 %v422_v45  ;;  %1233 = vmatprep.mubr.f32.mxu1 %v430_v46  ;;  %v657_v45 = vld [vmem:[%s1580_s13 + $0x40] sm:$0xff] (!%p1150_p13)  ;;  %v1458_v46 = vmov (!%p1150_p13), 0.0  }
  0x5c   : > { %1399 = vset.pattern.permute.xlu1 (!%p1150_p13), %v1457_v43  ;;  %1398 = vset.pattern.permute.xlu0 (!%p1150_p13), %v1457_v43 }
  0x5d   : > { %672 = vperm.xlu1 (!%p1150_p13), %1399, %v650_v41   ;;  %667 = vperm.xlu0 (!%p1150_p13), %1398, %v649_v42   ;;  %v791_v41 = vld [vmem:[%s1846_s3 + $0xf0] sm:$0xff] (!%p1150_p13) }
  0x5e   : > { %1222 = vmatmul.mubr.f32.gmra.mrb[2].mxu0 %v423_v47  ;;  %1234 = vmatmul.mubr.f32.gmra.mrb[2].mxu1 %v431_v48  ;;  %v659_v47 = vld [vmem:[%s1580_s13 + $0x50] sm:$0xff] (!%p1150_p13) }
  0x5f   : > { %1224 = vmatprep.mubr.f32.mxu0 %v424_v49  ;;  %1236 = vmatprep.mubr.f32.mxu1 %v432_v50  ;;  %v651_v48 = vld [vmem:[%s1580_s13 + $0x10] sm:$0xff] (!%p1150_p13)  ;;  %v762_v49 = vld [vmem:[%s1846_s3 + $0x8] sm:$0xff] (!%p1150_p13)  ;;  %v764_v50 = vld [vmem:[%s1846_s3 + $0x18] sm:$0xff] (!%p1150_p13) }
  0x61   : > { %712 = vperm.xlu1 (!%p1150_p13), %1399, %v658_v44   ;;  %707 = vperm.xlu0 (!%p1150_p13), %1398, %v657_v45  }
  0x62   : > { %1225 = vmatmul.mubr.f32.gmra.mrb[4].mxu0 %v425_v51  ;;  %1237 = vmatmul.mubr.f32.gmra.mrb[4].mxu1 %v433_v52  ;;  %v1274_v51 = vpack.c.bf16 (!%p1150_p13), %v764_v50, %v762_v49  ;;  %v761_v52 = vld [vmem:[%s1846_s3] sm:$0xff] (!%p1150_p13) }
  0x63   : > { %1227 = vmatprep.mubr.f32.mxu0 %v426_v53  ;;  %1239 = vmatprep.mubr.f32.mxu1 %v434_v54  ;;  %v763_v53 = vld [vmem:[%s1846_s3 + $0x10] sm:$0xff] (!%p1150_p13)  ;;  %v766_v54 = vld [vmem:[%s1846_s3 + $0x28] sm:$0xff] (!%p1150_p13) }
  0x64   : > { %1275 = vmatprep.subr.bf16.mxu0 (!%p1150_p13), %v1274_v51  ;;  %1322 = vmatprep.subr.bf16.mxu1 (!%p1150_p13), %v1274_v51 }
  0x65   : > { %717 = vperm.xlu1 (!%p1150_p13), %1399, %v659_v47   ;;  %677 = vperm.xlu0 (!%p1150_p13), %1398, %v651_v48  }
  0x66   : > { %1228 = vmatmul.mubr.f32.gmra.mrb[6].mxu0 %v427_v55  ;;  %1240 = vmatmul.mubr.f32.gmra.mrb[6].mxu1 %v435_v56  ;;  %v1276_v55 = vpack.c.bf16 (!%p1150_p13), %v763_v53, %v761_v52  ;;  %v768_v56 = vld [vmem:[%s1846_s3 + $0x38] sm:$0xff] (!%p1150_p13) }
  0x67   : > { %869 = vmatprep.mubr.f32.mxu0 (!%p1150_p13), %v1458_v46  ;;  %917 = vmatprep.mubr.f32.mxu1 (!%p1150_p13), %v1458_v46 }
  0x68   : > { %1277 = vmatpush1.bf16.msra.mxu0 (!%p1150_p13), %v1276_v55  ;;  %1330 = vmatpush1.bf16.msra.mxu1 (!%p1150_p13), %v1276_v55 }
  0xdc   : > { %v673_v44 = vpop.permute.xlu1 (!%p1150_p13), %672  ;;  %v668_v47 = vpop.permute.xlu0 (!%p1150_p13), %667 }
  0xe0   : > { %v713_v51 = vpop.permute.xlu1 (!%p1150_p13), %712  ;;  %v708_v52 = vpop.permute.xlu0 (!%p1150_p13), %707 }
 0x12d   : > { %v1220_v61 = vpop.f32.mrb[0].mxu0  ;;  %v1232_v62 = vpop.f32.mrb[0].mxu1 }
 0x12e   : > { %v598_v63 = vadd.f32 %v1220_v61, %v405_v57  ;;  %v606_v0 = vadd.f32 %v1232_v62, %v413_v58  ;;  %v518_v1 = vpop.f32.mrb[1].mxu0  ;;  %v558_v2 = vpop.f32.mrb[1].mxu1  ;;  %v765_v57 = vld [vmem:[%s1846_s3 + $0x20] sm:$0xff] (!%p1150_p13)  ;;  %v767_v58 = vld [vmem:[%s1846_s3 + $0x30] sm:$0xff] (!%p1150_p13)  ;;  %v772_v61 = vld [vmem:[%s1846_s3 + $0x58] sm:$0xff] (!%p1150_p13) }
 0x12f   : > { %v597_v3 = vadd.f32 %v518_v1, %v404_v59  ;;  %v605_v4 = vadd.f32 %v558_v2, %v412_v60  ;;  %v1278_v59 = vpack.c.bf16 (!%p1150_p13), %v768_v56, %v766_v54  ;;  %v770_v60 = vld [vmem:[%s1846_s3 + $0x48] sm:$0xff] (!%p1150_p13)  ;;  %v1280_v62 = vpack.c.bf16 (!%p1150_p13), %v767_v58, %v765_v57  ;;  %v660_v1 = vld [vmem:[%s1580_s13 + $0x58] sm:$0xff] (!%p1150_p13)  ;;  %v718_v56 = vpop.permute.xlu1 (!%p1150_p13), %717  ;;  %v678_v57 = vpop.permute.xlu0 (!%p1150_p13), %677 }
 0x130   : > { %614 = vst [vmem:[#allocation2 + $0x8] sm:$0xff] %v598_v63  ;;  %622 = vst [vmem:[#allocation2 + $0x48] sm:$0xff] %v606_v0  ;;  %v769_v63 = vld [vmem:[%s1846_s3 + $0x40] sm:$0xff] (!%p1150_p13)  ;;  %v771_v0 = vld [vmem:[%s1846_s3 + $0x50] sm:$0xff] (!%p1150_p13)  ;;  %722 = vperm.xlu1 (!%p1150_p13), %1399, %v660_v1  }
 0x131   : > { %613 = vst [vmem:[#allocation2] sm:$0xff] %v597_v3  ;;  %621 = vst [vmem:[#allocation2 + $0x40] sm:$0xff] %v605_v4  ;;  %v1223_v9 = vpop.f32.mrb[2].mxu0  ;;  %v1235_v10 = vpop.f32.mrb[2].mxu1  ;;  %v652_v2 = vld [vmem:[%s1580_s13 + $0x18] sm:$0xff] (!%p1150_p13)  ;;  %1279 = vmatprep.subr.bf16.mxu0 (!%p1150_p13), %v1278_v59  ;;  %1323 = vmatprep.subr.bf16.mxu1 (!%p1150_p13), %v1278_v59  ;;  %v1282_v3 = vpack.c.bf16 (!%p1150_p13), %v772_v61, %v770_v60  ;;  %v774_v4 = vld [vmem:[%s1846_s3 + $0x68] sm:$0xff] (!%p1150_p13) }
 0x132   : > { %v600_v11 = vadd.f32 %v1223_v9, %v407_v5  ;;  %v608_v12 = vadd.f32 %v1235_v10, %v415_v6  ;;  %v528_v13 = vpop.f32.mrb[3].mxu0  ;;  %v568_v14 = vpop.f32.mrb[3].mxu1  ;;  %v776_v5 = vld [vmem:[%s1846_s3 + $0x78] sm:$0xff] (!%p1150_p13)  ;;  %1281 = vmatpush1.bf16.msra.mxu0 (!%p1150_p13), %v1280_v62  ;;  %1331 = vmatpush1.bf16.msra.mxu1 (!%p1150_p13), %v1280_v62  ;;  %v1284_v6 = vpack.c.bf16 (!%p1150_p13), %v771_v0, %v769_v63  ;;  %v661_v9 = vld [vmem:[%s1580_s13 + $0x60] sm:$0xff] (!%p1150_p13) }
 0x133   : > { %v599_v15 = vadd.f32 %v528_v13, %v406_v7  ;;  %v607_v16 = vadd.f32 %v568_v14, %v414_v8  ;;  %682 = vperm.xlu0 (!%p1150_p13), %1398, %v652_v2   ;;  %v773_v7 = vld [vmem:[%s1846_s3 + $0x60] sm:$0xff] (!%p1150_p13)  ;;  %v775_v8 = vld [vmem:[%s1846_s3 + $0x70] sm:$0xff] (!%p1150_p13)  ;;  %1283 = vmatprep.subr.bf16.mxu0 (!%p1150_p13), %v1282_v3  ;;  %v780_v13 = vld [vmem:[%s1846_s3 + $0x98] sm:$0xff] (!%p1150_p13) }
 0x134   : > { %616 = vst [vmem:[#allocation2 + $0x18] sm:$0xff] %v600_v11  ;;  %624 = vst [vmem:[#allocation2 + $0x58] sm:$0xff] %v608_v12  ;;  %v653_v10 = vld [vmem:[%s1580_s13 + $0x20] sm:$0xff] (!%p1150_p13)  ;;  %1324 = vmatprep.subr.bf16.mxu1 (!%p1150_p13), %v1282_v3  ;;  %v1286_v11 = vpack.c.bf16 (!%p1150_p13), %v776_v5, %v774_v4  ;;  %v778_v12 = vld [vmem:[%s1846_s3 + $0x88] sm:$0xff] (!%p1150_p13)  ;;  %v1288_v14 = vpack.c.bf16 (!%p1150_p13), %v775_v8, %v773_v7  ;;  %727 = vperm.xlu1 (!%p1150_p13), %1399, %v661_v9  }
 0x135   : > { %615 = vst [vmem:[#allocation2 + $0x10] sm:$0xff] %v599_v15  ;;  %623 = vst [vmem:[#allocation2 + $0x50] sm:$0xff] %v607_v16  ;;  %v1226_v21 = vpop.f32.mrb[4].mxu0  ;;  %v1238_v22 = vpop.f32.mrb[4].mxu1  ;;  %v777_v15 = vld [vmem:[%s1846_s3 + $0x80] sm:$0xff] (!%p1150_p13)  ;;  %v779_v16 = vld [vmem:[%s1846_s3 + $0x90] sm:$0xff] (!%p1150_p13) }
 0x136   : > { %v602_v23 = vadd.f32 %v1226_v21, %v409_v17  ;;  %v610_v24 = vadd.f32 %v1238_v22, %v417_v18  ;;  %v538_v25 = vpop.f32.mrb[5].mxu0  ;;  %v578_v26 = vpop.f32.mrb[5].mxu1  ;;  %1285 = vmatpush1.bf16.msra.mxu0 (!%p1150_p13), %v1284_v6  ;;  %1332 = vmatpush1.bf16.msra.mxu1 (!%p1150_p13), %v1284_v6  ;;  %v662_v17 = vld [vmem:[%s1580_s13 + $0x68] sm:$0xff] (!%p1150_p13)  ;;  %v784_v21 = vld [vmem:[%s1846_s3 + $0xb8] sm:$0xff] (!%p1150_p13)  ;;  %v1292_v22 = vpack.c.bf16 (!%p1150_p13), %v779_v16, %v777_v15 }
 0x137   : > { %v601_v27 = vadd.f32 %v538_v25, %v408_v19  ;;  %v609_v28 = vadd.f32 %v578_v26, %v416_v20  ;;  %632 = sbr.rel (%p1150_p13) target bundleno = 671 (0x29f), region = 86  ;;  %687 = vperm.xlu0 (!%p1150_p13), %1398, %v653_v10   ;;  %v654_v18 = vld [vmem:[%s1580_s13 + $0x28] sm:$0xff] (!%p1150_p13)  ;;  %1287 = vmatprep.subr.bf16.mxu0 (!%p1150_p13), %v1286_v11  ;;  %v1290_v19 = vpack.c.bf16 (!%p1150_p13), %v780_v13, %v778_v12  ;;  %v663_v25 = vld [vmem:[%s1580_s13 + $0x70] sm:$0xff] (!%p1150_p13) }
 0x138   : > { %618 = vst [vmem:[#allocation2 + $0x28] sm:$0xff] %v602_v23  ;;  %626 = vst [vmem:[#allocation2 + $0x68] sm:$0xff] %v610_v24  ;;  %1325 = vmatprep.subr.bf16.mxu1 (!%p1150_p13), %v1286_v11  ;;  %v782_v20 = vld [vmem:[%s1846_s3 + $0xa8] sm:$0xff] (!%p1150_p13)  ;;  %732 = vperm.xlu1 (!%p1150_p13), %1399, %v662_v17   ;;  %v781_v23 = vld [vmem:[%s1846_s3 + $0xa0] sm:$0xff] (!%p1150_p13) }
 0x139   : > { %617 = vst [vmem:[#allocation2 + $0x20] sm:$0xff] %v601_v27  ;;  %625 = vst [vmem:[#allocation2 + $0x60] sm:$0xff] %v609_v28  ;;  %v1229_v33 = vpop.f32.mrb[6].mxu0  ;;  %v1241_v34 = vpop.f32.mrb[6].mxu1  ;;  %v783_v24 = vld [vmem:[%s1846_s3 + $0xb0] sm:$0xff] (!%p1150_p13)  ;;  %v1294_v27 = vpack.c.bf16 (!%p1150_p13), %v784_v21, %v782_v20  ;;  %v786_v28 = vld [vmem:[%s1846_s3 + $0xc8] sm:$0xff] (!%p1150_p13) }
 0x13a   : > { %v604_v35 = vadd.f32 %v1229_v33, %v411_v29  ;;  %v612_v36 = vadd.f32 %v1241_v34, %v419_v30  ;;  %v548_v37 = vpop.f32.mrb[7].mxu0  ;;  %v588_v38 = vpop.f32.mrb[7].mxu1  ;;  %1289 = vmatpush1.bf16.msra.mxu0 (!%p1150_p13), %v1288_v14  ;;  %1333 = vmatpush1.bf16.msra.mxu1 (!%p1150_p13), %v1288_v14  ;;  %v655_v26 = vld [vmem:[%s1580_s13 + $0x30] sm:$0xff] (!%p1150_p13)  ;;  %v788_v29 = vld [vmem:[%s1846_s3 + $0xd8] sm:$0xff] (!%p1150_p13)  ;;  %v1296_v30 = vpack.c.bf16 (!%p1150_p13), %v783_v24, %v781_v23  ;;  %v633_v43 = vld [vmem:[#allocation2] sm:$0xff] (!%p1150_p13) }
 0x13b   : > { %v603_v39 = vadd.f32 %v548_v37, %v410_v31  ;;  %v611_v40 = vadd.f32 %v588_v38, %v418_v32  ;;  %692 = vperm.xlu0 (!%p1150_p13), %1398, %v654_v18   ;;  %1291 = vmatprep.subr.bf16.mxu0 (!%p1150_p13), %v1290_v19  ;;  %v664_v31 = vld [vmem:[%s1580_s13 + $0x78] sm:$0xff] (!%p1150_p13)  ;;  %v785_v32 = vld [vmem:[%s1846_s3 + $0xc0] sm:$0xff] (!%p1150_p13)  ;;  %v787_v33 = vld [vmem:[%s1846_s3 + $0xd0] sm:$0xff] (!%p1150_p13)  ;;  %v745_v48 = vmul.f32 (!%p1150_p13), %v668_v47, %v633_v43 }
 0x13c   : > { %620 = vst [vmem:[#allocation2 + $0x38] sm:$0xff] %v604_v35  ;;  %628 = vst [vmem:[#allocation2 + $0x78] sm:$0xff] %v612_v36  ;;  %1326 = vmatprep.subr.bf16.mxu1 (!%p1150_p13), %v1290_v19  ;;  %737 = vperm.xlu1 (!%p1150_p13), %1399, %v663_v25   ;;  %v656_v34 = vld [vmem:[%s1580_s13 + $0x38] sm:$0xff] (!%p1150_p13)  ;;  %v1298_v35 = vpack.c.bf16 (!%p1150_p13), %v788_v29, %v786_v28  ;;  %v790_v36 = vld [vmem:[%s1846_s3 + $0xe8] sm:$0xff] (!%p1150_p13)  ;;  %v1300_v38 = vpack.c.bf16 (!%p1150_p13), %v787_v33, %v785_v32  ;;  %v795_v28 = vlaneseq (!%p1150_p13) }
 0x13d   : > { %619 = vst [vmem:[#allocation2 + $0x30] sm:$0xff] %v603_v39  ;;  %627 = vst [vmem:[#allocation2 + $0x70] sm:$0xff] %v611_v40  ;;  %v792_v37 = vld [vmem:[%s1846_s3 + $0xf8] sm:$0xff] (!%p1150_p13)  ;;  %v789_v40 = vld [vmem:[%s1846_s3 + $0xe0] sm:$0xff] (!%p1150_p13) }
 0x13e   : > { %1293 = vmatpush1.bf16.msra.mxu0 %v1292_v22  ;;  %1334 = vmatpush1.bf16.msra.mxu1 %v1292_v22  ;;  %v1302_v39 = vpack.c.bf16 %v792_v37, %v790_v36  ;;  %v1304_v42 = vpack.c.bf16 %v791_v41, %v789_v40  ;;  %v634_v45 = vld [vmem:[#allocation2 + $0x8] sm:$0xff]  ;;  %v641_v49 = vld [vmem:[#allocation2 + $0x40] sm:$0xff]  ;;  %v635_v55 = vld [vmem:[#allocation2 + $0x10] sm:$0xff]  ;;  %v796_v29 = vshrl.u32 %v795_v28, 7 }
 0x13f   : > { %697 = vperm.xlu0 %1398, %v655_v26   ;;  %1295 = vmatprep.subr.bf16.mxu0 %v1294_v27  ;;  %v746_v50 = vmul.f32 %v673_v44, %v634_v45  ;;  %v753_v53 = vmul.f32 %v708_v52, %v641_v49  ;;  %v642_v54 = vld [vmem:[#allocation2 + $0x48] sm:$0xff]  ;;  %v747_v59 = vmul.f32 %v678_v57, %v635_v55  ;;  %v643_v60 = vld [vmem:[#allocation2 + $0x50] sm:$0xff]  ;;  %v636_v61 = vld [vmem:[#allocation2 + $0x18] sm:$0xff] }
 0x140   : > { %1327 = vmatprep.subr.bf16.mxu1 %v1294_v27  ;;  %742 = vperm.xlu1 %1399, %v664_v31   ;;  %v754_v58 = vmul.f32 %v713_v51, %v642_v54  ;;  %v755_v0 = vmul.f32 %v718_v56, %v643_v60  ;;  %v644_v2 = vld [vmem:[#allocation2 + $0x58] sm:$0xff]  ;;  %v637_v3 = vld [vmem:[#allocation2 + $0x20] sm:$0xff]  ;;  %v638_v9 = vld [vmem:[#allocation2 + $0x28] sm:$0xff]  ;;  %v801_v32 = vsub.s32 1, %v796_v29 }
 0x141   : > { %v645_v8 = vld [vmem:[#allocation2 + $0x60] sm:$0xff]  ;;  %v646_v14 = vld [vmem:[#allocation2 + $0x68] sm:$0xff] }
 0x142   : > { %1297 = vmatpush1.bf16.msra.mxu0 %v1296_v30  ;;  %1335 = vmatpush1.bf16.msra.mxu1 %v1296_v30  ;;  %v797_v30 = vsub.s32 0, %v796_v29  ;;  %v793_v31 = vld [vmem:[%s1847_s4] sm:$0x3] }
 0x143   : > { %702 = vperm.xlu0 %1398, %v656_v34   ;;  %1299 = vmatprep.subr.bf16.mxu0 %v1298_v35  ;;  %v640_v21 = vld [vmem:[#allocation2 + $0x38] sm:$0xff]  ;;  %v1756_v34 = vrot.slane %v793_v31, %v801_v32 }
 0x144   : > { %1328 = vmatprep.subr.bf16.mxu1 %v1298_v35  ;;  %v639_v15 = vld [vmem:[#allocation2 + $0x30] sm:$0xff]  ;;  %v648_v26 = vld [vmem:[#allocation2 + $0x78] sm:$0xff]  ;;  %v1754_v33 = vrot.slane %v793_v31, %v797_v30 }
 0x145   : > { %v647_v20 = vld [vmem:[#allocation2 + $0x70] sm:$0xff] }
 0x146   : > { %1301 = vmatpush1.bf16.msra.mxu0 %v1300_v38  ;;  %1336 = vmatpush1.bf16.msra.mxu1 %v1300_v38 }
 0x147   : > { %1303 = vmatprep.subr.bf16.mxu0 %v1302_v39  ;;  %1329 = vmatprep.subr.bf16.mxu1 %v1302_v39 }
 0x14a   : > { %1305 = vmatpush1.bf16.msra.mxu0 %v1304_v42  ;;  %1337 = vmatpush1.bf16.msra.mxu1 %v1304_v42 }
 0x14d   : > { %870 = vmatmul.mubr.f32.vlgmr.msra.gmra.mrb[0].mxu0 %v745_v48  ;;  %918 = vmatmul.mubr.f32.vlgmr.msra.gmra.mrb[0].mxu1 %v753_v53 }
 0x14e   : > { %875 = vmatprep.mubr.f32.mxu0 %v1458_v46  ;;  %923 = vmatprep.mubr.f32.mxu1 %v1458_v46 }
 0x151   : > { %876 = vmatmul.mubr.f32.gmra.mrb[2].mxu0 %v746_v50  ;;  %924 = vmatmul.mubr.f32.gmra.mrb[2].mxu1 %v754_v58 }
 0x152   : > { %881 = vmatprep.mubr.f32.mxu0 %v1458_v46  ;;  %929 = vmatprep.mubr.f32.mxu1 %v1458_v46 }
 0x155   : > { %882 = vmatmul.mubr.f32.gmra.mrb[4].mxu0 %v747_v59  ;;  %930 = vmatmul.mubr.f32.gmra.mrb[4].mxu1 %v755_v0 }
 0x156   : > { %887 = vmatprep.mubr.f32.mxu0 %v1458_v46  ;;  %935 = vmatprep.mubr.f32.mxu1 %v1458_v46 }
 0x1af   : > { %v723_v62 = vpop.permute.xlu1 %722 }
 0x1b0   : > { %v756_v6 = vmul.f32 %v723_v62, %v644_v2 }
 0x1b2   : > { %v683_v63 = vpop.permute.xlu0 %682  ;;  %936 = vmatmul.mubr.f32.gmra.mrb[6].mxu1 %v756_v6 }
 0x1b3   : > { %v748_v1 = vmul.f32 %v683_v63, %v636_v61  ;;  %v728_v4 = vpop.permute.xlu1 %727  ;;  %941 = vmatprep.mubr.f32.mxu1 %v1458_v46 }
 0x1b4   : > { %v757_v12 = vmul.f32 %v728_v4, %v645_v8 }
 0x1b5   : > { %888 = vmatmul.mubr.f32.gmra.mrb[6].mxu0 %v748_v1 }
 0x1b6   : > { %v688_v5 = vpop.permute.xlu0 %687  ;;  %893 = vmatprep.mubr.f32.mxu0 %v1458_v46  ;;  %942 = vmatmul.mubr.f32.gmra.mrb[8].mxu1 %v757_v12 }
 0x1b7   : > { %v749_v7 = vmul.f32 %v688_v5, %v637_v3  ;;  %v733_v10 = vpop.permute.xlu1 %732  ;;  %947 = vmatprep.mubr.f32.mxu1 %v1458_v46 }
 0x1b8   : > { %v758_v18 = vmul.f32 %v733_v10, %v646_v14 }
 0x1b9   : > { %894 = vmatmul.mubr.f32.gmra.mrb[8].mxu0 %v749_v7 }
 0x1ba   : > { %v693_v11 = vpop.permute.xlu0 %692  ;;  %899 = vmatprep.mubr.f32.mxu0 %v1458_v46  ;;  %948 = vmatmul.mubr.f32.gmra.mrb[10].mxu1 %v758_v18 }
 0x1bb   : > { %v750_v13 = vmul.f32 %v693_v11, %v638_v9  ;;  %v738_v16 = vpop.permute.xlu1 %737  ;;  %953 = vmatprep.mubr.f32.mxu1 %v1458_v46 }
 0x1bc   : > { %v759_v23 = vmul.f32 %v738_v16, %v647_v20 }
 0x1bd   : > { %900 = vmatmul.mubr.f32.gmra.mrb[10].mxu0 %v750_v13 }
 0x1be   : > { %v698_v17 = vpop.permute.xlu0 %697  ;;  %905 = vmatprep.mubr.f32.mxu0 %v1458_v46  ;;  %954 = vmatmul.mubr.f32.gmra.mrb[12].mxu1 %v759_v23 }
 0x1bf   : > { %v751_v19 = vmul.f32 %v698_v17, %v639_v15  ;;  %v743_v25 = vpop.permute.xlu1 %742  ;;  %959 = vmatprep.mubr.f32.mxu1 %v1458_v46 }
 0x1c0   : > { %v760_v27 = vmul.f32 %v743_v25, %v648_v26 }
 0x1c1   : > { %906 = vmatmul.mubr.f32.gmra.mrb[12].mxu0 %v751_v19 }
 0x1c2   : > { %v703_v22 = vpop.permute.xlu0 %702  ;;  %911 = vmatprep.mubr.f32.mxu0 %v1458_v46  ;;  %960 = vmatmul.mubr.f32.gmra.mrb[14].mxu1 %v760_v27 }
 0x1c3   : > { %v752_v24 = vmul.f32 %v703_v22, %v640_v21 }
 0x1c5   : > { %912 = vmatmul.mubr.f32.gmra.mrb[14].mxu0 %v752_v24 }
 0x220   : > { %v871_v35 = vpop.f32.mrb[0].mxu0  ;;  %v919_v41 = vpop.f32.mrb[0].mxu1 }
 0x221   : > { %v872_v36 = vadd.f32 %v871_v35, %v1754_v33  ;;  %v873_v46 = vpop.f32.mrb[1].mxu0  ;;  %v920_v43 = vadd.f32 %v919_v41, %v1754_v33  ;;  %v921_v45 = vpop.f32.mrb[1].mxu1 }
 0x222   : > { %v874_v37 = vadd.f32 %v873_v46, %v1756_v34  ;;  %v922_v48 = vadd.f32 %v921_v45, %v1756_v34 }
 0x223   : > { %v966_v38 = vmax.f32 %v872_v36, 0.0  ;;  %v982_v50 = vmax.f32 %v920_v43, 0.0 }
 0x224   : > { %v967_v39 = vmax.f32 %v874_v37, 0.0  ;;  %v877_v40 = vpop.f32.mrb[2].mxu0  ;;  %v983_v52 = vmax.f32 %v922_v48, 0.0  ;;  %v925_v54 = vpop.f32.mrb[2].mxu1 }
 0x225   : > { %998 = vst [vmem:[%s1585_s21] sm:$0xff] %v966_v38  ;;  %v878_v42 = vadd.f32 %v877_v40, %v1754_v33  ;;  %v879_v44 = vpop.f32.mrb[3].mxu0  ;;  %1014 = vst [vmem:[%s1585_s21 + $0x80] sm:$0xff] %v982_v50  ;;  %v926_v56 = vadd.f32 %v925_v54, %v1754_v33  ;;  %v927_v58 = vpop.f32.mrb[3].mxu1 }
 0x226   : > { %999 = vst [vmem:[%s1585_s21 + $0x8] sm:$0xff] %v967_v39  ;;  %v880_v47 = vadd.f32 %v879_v44, %v1756_v34  ;;  %1015 = vst [vmem:[%s1585_s21 + $0x88] sm:$0xff] %v983_v52  ;;  %v928_v60 = vadd.f32 %v927_v58, %v1756_v34 }
 0x227   : > { %v968_v49 = vmax.f32 %v878_v42, 0.0  ;;  %v984_v62 = vmax.f32 %v926_v56, 0.0 }
 0x228   : > { %v969_v51 = vmax.f32 %v880_v47, 0.0  ;;  %v883_v53 = vpop.f32.mrb[4].mxu0  ;;  %v985_v0 = vmax.f32 %v928_v60, 0.0  ;;  %v931_v2 = vpop.f32.mrb[4].mxu1 }
 0x229   : > { %1000 = vst [vmem:[%s1585_s21 + $0x10] sm:$0xff] %v968_v49  ;;  %v884_v55 = vadd.f32 %v883_v53, %v1754_v33  ;;  %v885_v57 = vpop.f32.mrb[5].mxu0  ;;  %1016 = vst [vmem:[%s1585_s21 + $0x90] sm:$0xff] %v984_v62  ;;  %v932_v4 = vadd.f32 %v931_v2, %v1754_v33  ;;  %v933_v6 = vpop.f32.mrb[5].mxu1 }
 0x22a   : > { %1001 = vst [vmem:[%s1585_s21 + $0x18] sm:$0xff] %v969_v51  ;;  %v886_v59 = vadd.f32 %v885_v57, %v1756_v34  ;;  %1017 = vst [vmem:[%s1585_s21 + $0x98] sm:$0xff] %v985_v0  ;;  %v934_v8 = vadd.f32 %v933_v6, %v1756_v34 }
 0x22b   : > { %v970_v61 = vmax.f32 %v884_v55, 0.0  ;;  %v986_v10 = vmax.f32 %v932_v4, 0.0 }
 0x22c   : > { %v971_v63 = vmax.f32 %v886_v59, 0.0  ;;  %v987_v12 = vmax.f32 %v934_v8, 0.0 }
 0x22d   : > { %1002 = vst [vmem:[%s1585_s21 + $0x20] sm:$0xff] %v970_v61  ;;  %1018 = vst [vmem:[%s1585_s21 + $0xa0] sm:$0xff] %v986_v10 }
 0x22e   : > { %1003 = vst [vmem:[%s1585_s21 + $0x28] sm:$0xff] %v971_v63  ;;  %1019 = vst [vmem:[%s1585_s21 + $0xa8] sm:$0xff] %v987_v12 }
 0x285   : > { %v937_v14 = vpop.f32.mrb[6].mxu1 }
 0x286   : > { %v938_v16 = vadd.f32 %v937_v14, %v1754_v33  ;;  %v939_v18 = vpop.f32.mrb[7].mxu1 }
 0x287   : > { %v940_v20 = vadd.f32 %v939_v18, %v1756_v34 }
 0x288   : > { %v889_v1 = vpop.f32.mrb[6].mxu0  ;;  %v988_v22 = vmax.f32 %v938_v16, 0.0 }
 0x289   : > { %v890_v3 = vadd.f32 %v889_v1, %v1754_v33  ;;  %v891_v5 = vpop.f32.mrb[7].mxu0  ;;  %v989_v24 = vmax.f32 %v940_v20, 0.0  ;;  %v943_v26 = vpop.f32.mrb[8].mxu1 }
 0x28a   : > { %v892_v7 = vadd.f32 %v891_v5, %v1756_v34  ;;  %1020 = vst [vmem:[%s1585_s21 + $0xb0] sm:$0xff] %v988_v22  ;;  %v944_v28 = vadd.f32 %v943_v26, %v1754_v33  ;;  %v945_v30 = vpop.f32.mrb[9].mxu1 }
 0x28b   : > { %v972_v9 = vmax.f32 %v890_v3, 0.0  ;;  %1021 = vst [vmem:[%s1585_s21 + $0xb8] sm:$0xff] %v989_v24  ;;  %v946_v32 = vadd.f32 %v945_v30, %v1756_v34 }
 0x28c   : > { %v973_v11 = vmax.f32 %v892_v7, 0.0  ;;  %v895_v13 = vpop.f32.mrb[8].mxu0  ;;  %v990_v36 = vmax.f32 %v944_v28, 0.0 }
 0x28d   : > { %1004 = vst [vmem:[%s1585_s21 + $0x30] sm:$0xff] %v972_v9  ;;  %v896_v15 = vadd.f32 %v895_v13, %v1754_v33  ;;  %v897_v17 = vpop.f32.mrb[9].mxu0  ;;  %v991_v37 = vmax.f32 %v946_v32, 0.0  ;;  %v949_v39 = vpop.f32.mrb[10].mxu1 }
 0x28e   : > { %1005 = vst [vmem:[%s1585_s21 + $0x38] sm:$0xff] %v973_v11  ;;  %v898_v19 = vadd.f32 %v897_v17, %v1756_v34  ;;  %1022 = vst [vmem:[%s1585_s21 + $0xc0] sm:$0xff] %v990_v36  ;;  %v950_v41 = vadd.f32 %v949_v39, %v1754_v33  ;;  %v951_v43 = vpop.f32.mrb[11].mxu1 }
 0x28f   : > { %v974_v21 = vmax.f32 %v896_v15, 0.0  ;;  %1023 = vst [vmem:[%s1585_s21 + $0xc8] sm:$0xff] %v991_v37  ;;  %v952_v45 = vadd.f32 %v951_v43, %v1756_v34 }
 0x290   : > { %v975_v23 = vmax.f32 %v898_v19, 0.0  ;;  %v901_v25 = vpop.f32.mrb[10].mxu0  ;;  %v992_v48 = vmax.f32 %v950_v41, 0.0 }
 0x291   : > { %1006 = vst [vmem:[%s1585_s21 + $0x40] sm:$0xff] %v974_v21  ;;  %v902_v27 = vadd.f32 %v901_v25, %v1754_v33  ;;  %v903_v29 = vpop.f32.mrb[11].mxu0  ;;  %v993_v50 = vmax.f32 %v952_v45, 0.0  ;;  %v955_v52 = vpop.f32.mrb[12].mxu1 }
 0x292   : > { %1007 = vst [vmem:[%s1585_s21 + $0x48] sm:$0xff] %v975_v23  ;;  %v904_v31 = vadd.f32 %v903_v29, %v1756_v34  ;;  %1024 = vst [vmem:[%s1585_s21 + $0xd0] sm:$0xff] %v992_v48  ;;  %v956_v54 = vadd.f32 %v955_v52, %v1754_v33  ;;  %v957_v56 = vpop.f32.mrb[13].mxu1 }
 0x293   : > { %v976_v35 = vmax.f32 %v902_v27, 0.0  ;;  %1025 = vst [vmem:[%s1585_s21 + $0xd8] sm:$0xff] %v993_v50  ;;  %v958_v58 = vadd.f32 %v957_v56, %v1756_v34 }
 0x294   : > { %v977_v46 = vmax.f32 %v904_v31, 0.0  ;;  %v907_v38 = vpop.f32.mrb[12].mxu0  ;;  %v994_v60 = vmax.f32 %v956_v54, 0.0 }
 0x295   : > { %1008 = vst [vmem:[%s1585_s21 + $0x50] sm:$0xff] %v976_v35  ;;  %v908_v40 = vadd.f32 %v907_v38, %v1754_v33  ;;  %v909_v42 = vpop.f32.mrb[13].mxu0  ;;  %v995_v62 = vmax.f32 %v958_v58, 0.0  ;;  %v961_v63 = vpop.f32.mrb[14].mxu1 }
 0x296   : > { %1009 = vst [vmem:[%s1585_s21 + $0x58] sm:$0xff] %v977_v46  ;;  %v910_v44 = vadd.f32 %v909_v42, %v1756_v34  ;;  %1026 = vst [vmem:[%s1585_s21 + $0xe0] sm:$0xff] %v994_v60  ;;  %v962_v0 = vadd.f32 %v961_v63, %v1754_v33  ;;  %v963_v1 = vpop.f32.mrb[15].mxu1 }
 0x297   : > { %v978_v47 = vmax.f32 %v908_v40, 0.0  ;;  %1027 = vst [vmem:[%s1585_s21 + $0xe8] sm:$0xff] %v995_v62  ;;  %v964_v2 = vadd.f32 %v963_v1, %v1756_v34 }
 0x298   : > { %v979_v49 = vmax.f32 %v910_v44, 0.0  ;;  %v913_v51 = vpop.f32.mrb[14].mxu0  ;;  %v996_v3 = vmax.f32 %v962_v0, 0.0 }
 0x299   : > { %1010 = vst [vmem:[%s1585_s21 + $0x60] sm:$0xff] %v978_v47  ;;  %v914_v53 = vadd.f32 %v913_v51, %v1754_v33  ;;  %v915_v55 = vpop.f32.mrb[15].mxu0  ;;  %v997_v4 = vmax.f32 %v964_v2, 0.0 }
 0x29a   : > { %1011 = vst [vmem:[%s1585_s21 + $0x68] sm:$0xff] %v979_v49  ;;  %v916_v57 = vadd.f32 %v915_v55, %v1756_v34  ;;  %1028 = vst [vmem:[%s1585_s21 + $0xf0] sm:$0xff] %v996_v3 }
 0x29b   : > { %v980_v59 = vmax.f32 %v914_v53, 0.0  ;;  %1029 = vst [vmem:[%s1585_s21 + $0xf8] sm:$0xff] %v997_v4 }
 0x29c   : > { %v981_v61 = vmax.f32 %v916_v57, 0.0 }
 0x29d   : > { %1012 = vst [vmem:[%s1585_s21 + $0x70] sm:$0xff] %v980_v59 }
 0x29e   : > { %1013 = vst [vmem:[%s1585_s21 + $0x78] sm:$0xff] %v981_v61 }
 0x29f PF: > { %s15_s24 = sadd.s32 1, %s1454_s24   ;;  %s1849_s18 = smov %s1434_s19 }
 0x2a0   : > { %p12_p0 = scmp.ge.s32.totalorder %s15_s24, 11   ;;  %s1850_s19 = smov %s1540_s6 }
 0x2a1   : > { %s1851_s20 = smov %s1446_s22  ;;  %s1852_s21 = smov %s1450_s23 }
 0x2a2   : > { %s1853_s22 = smov %s1856_s25  ;;  %s1854_s23 = smov %s1860_s26 }
 0x2a3   :  { %14 = sbr.rel (!%p12_p0) target bundleno = 4 (0x4), region = 127 }

// kernel: gcn_infer_forward.5
= control target key start
LH: loop header
LB: loop body
LE: loop exit
PB: predicated region body
PF: predicated region fallthrough
CT: control target
= control target key end

     0   :  { %v956_v3 = vmov 0   ;;  %s1488_s1 = inlined_call_operand.vmem [shape: f32[256,256], index: 1, kind: input, shape index: {}]   ;;  %s1489_s0 = inlined_call_operand.vmem [shape: f32[128,256], index: 0, kind: input, shape index: {}]   ;;  %s1490_s2 = inlined_call_operand.vmem [shape: f32[128,1], index: 2, kind: input, shape index: {}]   ;;  %s1491_s3 = inlined_call_operand.vmem [shape: f32[256,128], index: 3, kind: input, shape index: {}]   ;;  %s1492_s4 = inlined_call_operand.vmem [shape: f32[1,128], index: 4, kind: input, shape index: {}]   ;;  %s1493_s5 = inlined_call_operand.vmem [shape: f32[128,128], index: 5, kind: output, shape index: {}]  }
   0x1   :  { %v121_v0 = vld [vmem:[%s1488_s1 + $0x8] sm:$0xff]  ;;  %v123_v1 = vld [vmem:[%s1488_s1 + $0x18] sm:$0xff]  ;;  %v120_v2 = vld [vmem:[%s1488_s1] sm:$0xff]  ;;  %954 = vset.pattern.permute.xlu0 %v956_v3  ;;  %955 = vset.pattern.permute.xlu1 %v956_v3 }
   0x2   :  { %v857_v4 = vpack.c.bf16 %v123_v1, %v121_v0  ;;  %v122_v5 = vld [vmem:[%s1488_s1 + $0x10] sm:$0xff]  ;;  %v125_v6 = vld [vmem:[%s1488_s1 + $0x28] sm:$0xff]  ;;  %v127_v7 = vld [vmem:[%s1488_s1 + $0x38] sm:$0xff] }
   0x3   :  { %v859_v8 = vpack.c.bf16 %v122_v5, %v120_v2  ;;  %v861_v9 = vpack.c.bf16 %v127_v7, %v125_v6  ;;  %v124_v10 = vld [vmem:[%s1488_s1 + $0x20] sm:$0xff]  ;;  %v126_v11 = vld [vmem:[%s1488_s1 + $0x30] sm:$0xff]  ;;  %v129_v12 = vld [vmem:[%s1488_s1 + $0x48] sm:$0xff] }
   0x4   :  { %858 = vmatprep.subr.bf16.mxu0 %v857_v4  ;;  %v131_v13 = vld [vmem:[%s1488_s1 + $0x58] sm:$0xff]  ;;  %v863_v14 = vpack.c.bf16 %v126_v11, %v124_v10  ;;  %v128_v16 = vld [vmem:[%s1488_s1 + $0x40] sm:$0xff]  ;;  %v130_v17 = vld [vmem:[%s1488_s1 + $0x50] sm:$0xff] }
   0x5   :  { %860 = vmatpush1.bf16.msra.mxu0 %v859_v8  ;;  %v865_v15 = vpack.c.bf16 %v131_v13, %v129_v12  ;;  %v133_v18 = vld [vmem:[%s1488_s1 + $0x68] sm:$0xff]  ;;  %v135_v19 = vld [vmem:[%s1488_s1 + $0x78] sm:$0xff]  ;;  %v867_v20 = vpack.c.bf16 %v130_v17, %v128_v16  ;;  %v132_v22 = vld [vmem:[%s1488_s1 + $0x60] sm:$0xff] }
   0x6   :  { %862 = vmatprep.subr.bf16.mxu0 %v861_v9  ;;  %v869_v21 = vpack.c.bf16 %v135_v19, %v133_v18  ;;  %v134_v23 = vld [vmem:[%s1488_s1 + $0x70] sm:$0xff]  ;;  %v137_v24 = vld [vmem:[%s1488_s1 + $0x88] sm:$0xff]  ;;  %v139_v25 = vld [vmem:[%s1488_s1 + $0x98] sm:$0xff] }
   0x7   :  { %v871_v26 = vpack.c.bf16 %v134_v23, %v132_v22  ;;  %v873_v27 = vpack.c.bf16 %v139_v25, %v137_v24  ;;  %v136_v28 = vld [vmem:[%s1488_s1 + $0x80] sm:$0xff]  ;;  %v138_v29 = vld [vmem:[%s1488_s1 + $0x90] sm:$0xff]  ;;  %v141_v30 = vld [vmem:[%s1488_s1 + $0xa8] sm:$0xff] }
   0x8   :  { %v143_v31 = vld [vmem:[%s1488_s1 + $0xb8] sm:$0xff]  ;;  %v875_v32 = vpack.c.bf16 %v138_v29, %v136_v28  ;;  %v140_v34 = vld [vmem:[%s1488_s1 + $0xa0] sm:$0xff]  ;;  %v142_v35 = vld [vmem:[%s1488_s1 + $0xb0] sm:$0xff] }
   0x9   :  { %864 = vmatpush1.bf16.msra.mxu0 %v863_v14  ;;  %v877_v33 = vpack.c.bf16 %v143_v31, %v141_v30  ;;  %v145_v36 = vld [vmem:[%s1488_s1 + $0xc8] sm:$0xff]  ;;  %v147_v37 = vld [vmem:[%s1488_s1 + $0xd8] sm:$0xff]  ;;  %v879_v38 = vpack.c.bf16 %v142_v35, %v140_v34  ;;  %v144_v40 = vld [vmem:[%s1488_s1 + $0xc0] sm:$0xff] }
   0xa   :  { %866 = vmatprep.subr.bf16.mxu0 %v865_v15  ;;  %v881_v39 = vpack.c.bf16 %v147_v37, %v145_v36  ;;  %v146_v41 = vld [vmem:[%s1488_s1 + $0xd0] sm:$0xff]  ;;  %v89_v42 = vld [vmem:[%s1489_s0 + $0x8] sm:$0xff]  ;;  %v151_v44 = vld [vmem:[%s1488_s1 + $0xf8] sm:$0xff] }
   0xb   :  { %v149_v43 = vld [vmem:[%s1488_s1 + $0xe8] sm:$0xff]  ;;  %248 = vmatprep.mubr.f32.mxu0 %v89_v42  ;;  %v883_v45 = vpack.c.bf16 %v146_v41, %v144_v40  ;;  %v148_v47 = vld [vmem:[%s1488_s1 + $0xe0] sm:$0xff]  ;;  %v150_v48 = vld [vmem:[%s1488_s1 + $0xf0] sm:$0xff] }
   0xc   :  { %v885_v46 = vpack.c.bf16 %v151_v44, %v149_v43  ;;  %v153_v49 = vld [vmem:[%s1488_s1 + $0x108] sm:$0xff]  ;;  %v155_v50 = vld [vmem:[%s1488_s1 + $0x118] sm:$0xff]  ;;  %v887_v51 = vpack.c.bf16 %v150_v48, %v148_v47  ;;  %v152_v53 = vld [vmem:[%s1488_s1 + $0x100] sm:$0xff] }
   0xd   :  { %868 = vmatpush1.bf16.msra.mxu0 %v867_v20  ;;  %v889_v52 = vpack.c.bf16 %v155_v50, %v153_v49  ;;  %v154_v54 = vld [vmem:[%s1488_s1 + $0x110] sm:$0xff]  ;;  %v157_v55 = vld [vmem:[%s1488_s1 + $0x128] sm:$0xff]  ;;  %v159_v56 = vld [vmem:[%s1488_s1 + $0x138] sm:$0xff] }
   0xe   :  { %870 = vmatprep.subr.bf16.mxu0 %v869_v21  ;;  %v444_v57 = vld [vmem:[%s1490_s2] sm:$0xff]  ;;  %v891_v58 = vpack.c.bf16 %v154_v54, %v152_v53  ;;  %v446_v59 = vld [vmem:[%s1490_s2 + $0x10] sm:$0xff]  ;;  %v893_v60 = vpack.c.bf16 %v159_v56, %v157_v55  ;;  %v445_v63 = vld [vmem:[%s1490_s2 + $0x8] sm:$0xff] }
   0xf   :  { %462 = vperm.xlu0 %954, %v444_v57   ;;  %v156_v61 = vld [vmem:[%s1488_s1 + $0x120] sm:$0xff]  ;;  %v158_v62 = vld [vmem:[%s1488_s1 + $0x130] sm:$0xff]  ;;  %472 = vperm.xlu1 %955, %v446_v59   ;;  %v161_v0 = vld [vmem:[%s1488_s1 + $0x148] sm:$0xff] }
  0x10   :  { %v163_v1 = vld [vmem:[%s1488_s1 + $0x158] sm:$0xff]  ;;  %v160_v3 = vld [vmem:[%s1488_s1 + $0x140] sm:$0xff]  ;;  %v895_v4 = vpack.c.bf16 %v158_v62, %v156_v61  ;;  %v162_v5 = vld [vmem:[%s1488_s1 + $0x150] sm:$0xff] }
  0x11   :  { %872 = vmatpush1.bf16.msra.mxu0 %v871_v26  ;;  %v447_v2 = vld [vmem:[%s1490_s2 + $0x18] sm:$0xff]  ;;  %v165_v6 = vld [vmem:[%s1488_s1 + $0x168] sm:$0xff]  ;;  %v897_v8 = vpack.c.bf16 %v163_v1, %v161_v0  ;;  %v448_v9 = vld [vmem:[%s1490_s2 + $0x20] sm:$0xff]  ;;  %v899_v19 = vpack.c.bf16 %v162_v5, %v160_v3 }
  0x12   :  { %874 = vmatprep.subr.bf16.mxu0 %v873_v27  ;;  %v167_v7 = vld [vmem:[%s1488_s1 + $0x178] sm:$0xff]  ;;  %v588_v10 = vld [vmem:[%s1491_s3 + $0x80] sm:$0xff]  ;;  %v589_v11 = vld [vmem:[%s1491_s3 + $0x88] sm:$0xff] }
  0x13   :  { %467 = vperm.xlu0 %954, %v445_v63   ;;  %477 = vperm.xlu1 %955, %v447_v2   ;;  %v449_v12 = vld [vmem:[%s1490_s2 + $0x28] sm:$0xff]  ;;  %v921_v13 = vpack.c.bf16 %v589_v11, %v588_v10  ;;  %v572_v14 = vld [vmem:[%s1491_s3] sm:$0xff]  ;;  %v590_v17 = vld [vmem:[%s1491_s3 + $0x90] sm:$0xff]  ;;  %v901_v22 = vpack.c.bf16 %v167_v7, %v165_v6 }
  0x14   :  { %v573_v15 = vld [vmem:[%s1491_s3 + $0x8] sm:$0xff]  ;;  %v591_v18 = vld [vmem:[%s1491_s3 + $0x98] sm:$0xff]  ;;  %v574_v20 = vld [vmem:[%s1491_s3 + $0x10] sm:$0xff] }
  0x15   :  { %876 = vmatpush1.bf16.msra.mxu0 %v875_v32  ;;  %v923_v16 = vpack.c.bf16 %v573_v15, %v572_v14  ;;  %v575_v21 = vld [vmem:[%s1491_s3 + $0x18] sm:$0xff]  ;;  %v164_v23 = vld [vmem:[%s1488_s1 + $0x160] sm:$0xff]  ;;  %v166_v24 = vld [vmem:[%s1488_s1 + $0x170] sm:$0xff]  ;;  %922 = vmatprep.subr.bf16.mxu1 %v921_v13  ;;  %v925_v29 = vpack.c.bf16 %v591_v18, %v590_v17 }
  0x16   :  { %878 = vmatprep.subr.bf16.mxu0 %v877_v33  ;;  %v450_v25 = vld [vmem:[%s1490_s2 + $0x30] sm:$0xff]  ;;  %v169_v26 = vld [vmem:[%s1488_s1 + $0x188] sm:$0xff]  ;;  %v171_v27 = vld [vmem:[%s1488_s1 + $0x198] sm:$0xff]  ;;  %v927_v30 = vpack.c.bf16 %v575_v21, %v574_v20  ;;  %v903_v33 = vpack.c.bf16 %v166_v24, %v164_v23 }
  0x17   :  { %482 = vperm.xlu0 %954, %v448_v9   ;;  %487 = vperm.xlu1 %955, %v449_v12   ;;  %v451_v28 = vld [vmem:[%s1490_s2 + $0x38] sm:$0xff]  ;;  %v592_v31 = vld [vmem:[%s1491_s3 + $0xa0] sm:$0xff]  ;;  %v593_v32 = vld [vmem:[%s1491_s3 + $0xa8] sm:$0xff]  ;;  %v905_v36 = vpack.c.bf16 %v171_v27, %v169_v26 }
  0x18   :  { %924 = vmatpush3.bf16.msra.mxu1 %v923_v16  ;;  %v576_v34 = vld [vmem:[%s1491_s3 + $0x20] sm:$0xff]  ;;  %v577_v35 = vld [vmem:[%s1491_s3 + $0x28] sm:$0xff]  ;;  %v175_v41 = vld [vmem:[%s1488_s1 + $0x1b8] sm:$0xff]  ;;  %v929_v43 = vpack.c.bf16 %v593_v32, %v592_v31 }
  0x19   :  { %880 = vmatpush1.bf16.msra.mxu0 %v879_v38  ;;  %v168_v37 = vld [vmem:[%s1488_s1 + $0x180] sm:$0xff]  ;;  %v170_v38 = vld [vmem:[%s1488_s1 + $0x190] sm:$0xff]  ;;  %v173_v40 = vld [vmem:[%s1488_s1 + $0x1a8] sm:$0xff]  ;;  %926 = vmatprep.subr.bf16.mxu1 %v925_v29  ;;  %v931_v44 = vpack.c.bf16 %v577_v35, %v576_v34 }
  0x1a   :  { %882 = vmatprep.subr.bf16.mxu0 %v881_v39  ;;  %v452_v39 = vld [vmem:[%s1490_s2 + $0x40] sm:$0xff]  ;;  %v453_v42 = vld [vmem:[%s1490_s2 + $0x48] sm:$0xff]  ;;  %v907_v47 = vpack.c.bf16 %v170_v38, %v168_v37  ;;  %v578_v48 = vld [vmem:[%s1491_s3 + $0x30] sm:$0xff]  ;;  %v909_v50 = vpack.c.bf16 %v175_v41, %v173_v40 }
  0x1b   :  { %492 = vperm.xlu0 %954, %v450_v25   ;;  %497 = vperm.xlu1 %955, %v451_v28   ;;  %v579_v49 = vld [vmem:[%s1491_s3 + $0x38] sm:$0xff]  ;;  %v454_v53 = vld [vmem:[%s1490_s2 + $0x50] sm:$0xff]  ;;  %v177_v54 = vld [vmem:[%s1488_s1 + $0x1c8] sm:$0xff] }
  0x1c   :  { %928 = vmatpush3.bf16.msra.mxu1 %v927_v30  ;;  %v179_v55 = vld [vmem:[%s1488_s1 + $0x1d8] sm:$0xff]  ;;  %v596_v59 = vld [vmem:[%s1491_s3 + $0xc0] sm:$0xff]  ;;  %v581_v63 = vld [vmem:[%s1491_s3 + $0x48] sm:$0xff] }
  0x1d   :  { %884 = vmatpush1.bf16.msra.mxu0 %v883_v45  ;;  %v594_v45 = vld [vmem:[%s1491_s3 + $0xb0] sm:$0xff]  ;;  %v455_v56 = vld [vmem:[%s1490_s2 + $0x58] sm:$0xff]  ;;  %930 = vmatprep.subr.bf16.mxu1 %v929_v43  ;;  %v580_v62 = vld [vmem:[%s1491_s3 + $0x40] sm:$0xff]  ;;  %v913_v0 = vpack.c.bf16 %v179_v55, %v177_v54 }
  0x1e   :  { %886 = vmatprep.subr.bf16.mxu0 %v885_v46  ;;  %v595_v46 = vld [vmem:[%s1491_s3 + $0xb8] sm:$0xff]  ;;  %v176_v1 = vld [vmem:[%s1488_s1 + $0x1c0] sm:$0xff]  ;;  %v178_v2 = vld [vmem:[%s1488_s1 + $0x1d0] sm:$0xff]  ;;  %v939_v9 = vpack.c.bf16 %v581_v63, %v580_v62 }
  0x1f   :  { %502 = vperm.xlu0 %954, %v452_v39   ;;  %507 = vperm.xlu1 %955, %v453_v42   ;;  %v933_v57 = vpack.c.bf16 %v595_v46, %v594_v45  ;;  %v456_v3 = vld [vmem:[%s1490_s2 + $0x60] sm:$0xff]  ;;  %v183_v5 = vld [vmem:[%s1488_s1 + $0x1f8] sm:$0xff]  ;;  %v457_v6 = vld [vmem:[%s1490_s2 + $0x68] sm:$0xff]  ;;  %v915_v12 = vpack.c.bf16 %v178_v2, %v176_v1 }
  0x20   :  { %932 = vmatpush3.bf16.msra.mxu1 %v931_v44  ;;  %v598_v10 = vld [vmem:[%s1491_s3 + $0xd0] sm:$0xff]  ;;  %v599_v11 = vld [vmem:[%s1491_s3 + $0xd8] sm:$0xff]  ;;  %v600_v18 = vld [vmem:[%s1491_s3 + $0xe0] sm:$0xff] }
  0x21   :  { %888 = vmatpush1.bf16.msra.mxu0 %v887_v51  ;;  %v172_v51 = vld [vmem:[%s1488_s1 + $0x1a0] sm:$0xff]  ;;  %934 = vmatprep.subr.bf16.mxu1 %v933_v57  ;;  %v182_v13 = vld [vmem:[%s1488_s1 + $0x1f0] sm:$0xff]  ;;  %v583_v15 = vld [vmem:[%s1491_s3 + $0x58] sm:$0xff]  ;;  %v941_v21 = vpack.c.bf16 %v599_v11, %v598_v10 }
  0x22   :  { %890 = vmatprep.subr.bf16.mxu0 %v889_v52  ;;  %v174_v52 = vld [vmem:[%s1488_s1 + $0x1b0] sm:$0xff]  ;;  %v459_v20 = vld [vmem:[%s1490_s2 + $0x78] sm:$0xff]  ;;  %v584_v25 = vld [vmem:[%s1491_s3 + $0x60] sm:$0xff] }
  0x23   :  { %v911_v61 = vpack.c.bf16 %v174_v52, %v172_v51  ;;  %512 = vperm.xlu0 %954, %v454_v53   ;;  %517 = vperm.xlu1 %955, %v455_v56   ;;  %v582_v14 = vld [vmem:[%s1491_s3 + $0x50] sm:$0xff]  ;;  %v585_v26 = vld [vmem:[%s1491_s3 + $0x68] sm:$0xff]  ;;  %v88_v28 = vld [vmem:[%s1489_s0] sm:$0xff] }
  0x24   :  { %v458_v17 = vld [vmem:[%s1490_s2 + $0x70] sm:$0xff]  ;;  %v947_v27 = vpack.c.bf16 %v585_v26, %v584_v25  ;;  %v91_v29 = vld [vmem:[%s1489_s0 + $0x18] sm:$0xff]  ;;  %v93_v31 = vld [vmem:[%s1489_s0 + $0x28] sm:$0xff] }
  0x25   :  { %892 = vmatpush1.bf16.msra.mxu0 %v891_v58  ;;  %v935_v58 = vpack.c.bf16 %v579_v49, %v578_v48  ;;  %v90_v30 = vld [vmem:[%s1489_s0 + $0x10] sm:$0xff]  ;;  %v92_v32 = vld [vmem:[%s1489_s0 + $0x20] sm:$0xff]  ;;  %v97_v35 = vld [vmem:[%s1489_s0 + $0x48] sm:$0xff] }
  0x26   :  { %894 = vmatprep.subr.bf16.mxu0 %v893_v60  ;;  %v597_v60 = vld [vmem:[%s1491_s3 + $0xc8] sm:$0xff]  ;;  %v94_v34 = vld [vmem:[%s1489_s0 + $0x30] sm:$0xff]  ;;  %v99_v37 = vld [vmem:[%s1489_s0 + $0x58] sm:$0xff] }
  0x27   :  { %v937_v7 = vpack.c.bf16 %v597_v60, %v596_v59  ;;  %936 = vmatpush3.bf16.msra.mxu1 %v935_v58  ;;  %522 = vperm.xlu0 %954, %v456_v3   ;;  %v98_v38 = vld [vmem:[%s1489_s0 + $0x50] sm:$0xff]  ;;  %v101_v39 = vld [vmem:[%s1489_s0 + $0x68] sm:$0xff]  ;;  %v100_v40 = vld [vmem:[%s1489_s0 + $0x60] sm:$0xff] }
  0x28   :  { %527 = vperm.xlu1 %955, %v457_v6   ;;  %v103_v41 = vld [vmem:[%s1489_s0 + $0x78] sm:$0xff]  ;;  %v102_v42 = vld [vmem:[%s1489_s0 + $0x70] sm:$0xff]  ;;  %v105_v43 = vld [vmem:[%s1489_s0 + $0x88] sm:$0xff] }
  0x29   :  { %896 = vmatpush1.bf16.msra.mxu0 %v895_v4  ;;  %v181_v4 = vld [vmem:[%s1488_s1 + $0x1e8] sm:$0xff]  ;;  %938 = vmatprep.subr.bf16.mxu1 %v937_v7  ;;  %v104_v44 = vld [vmem:[%s1489_s0 + $0x80] sm:$0xff]  ;;  %v107_v45 = vld [vmem:[%s1489_s0 + $0x98] sm:$0xff] }
  0x2a   :  { %898 = vmatprep.subr.bf16.mxu0 %v897_v8  ;;  %v180_v8 = vld [vmem:[%s1488_s1 + $0x1e0] sm:$0xff]  ;;  %v917_v16 = vpack.c.bf16 %v183_v5, %v181_v4  ;;  %v106_v46 = vld [vmem:[%s1489_s0 + $0x90] sm:$0xff]  ;;  %v111_v49 = vld [vmem:[%s1489_s0 + $0xb8] sm:$0xff] }
  0x2b   :  { %940 = vmatpush3.bf16.msra.mxu1 %v939_v9  ;;  %v919_v23 = vpack.c.bf16 %v182_v13, %v180_v8  ;;  %532 = vperm.xlu0 %954, %v458_v17   ;;  %v108_v48 = vld [vmem:[%s1489_s0 + $0xa0] sm:$0xff]  ;;  %v113_v51 = vld [vmem:[%s1489_s0 + $0xc8] sm:$0xff]  ;;  %v115_v53 = vld [vmem:[%s1489_s0 + $0xd8] sm:$0xff] }
  0x2c   :  { %537 = vperm.xlu1 %955, %v459_v20   ;;  %942 = vmatprep.subr.bf16.mxu1 %v941_v21  ;;  %v112_v52 = vld [vmem:[%s1489_s0 + $0xc0] sm:$0xff]  ;;  %v114_v54 = vld [vmem:[%s1489_s0 + $0xd0] sm:$0xff]  ;;  %v117_v55 = vld [vmem:[%s1489_s0 + $0xe8] sm:$0xff] }
  0x2d   :  { %900 = vmatpush1.bf16.msra.mxu0 %v899_v19  ;;  %v601_v19 = vld [vmem:[%s1491_s3 + $0xe8] sm:$0xff]  ;;  %v116_v56 = vld [vmem:[%s1489_s0 + $0xe0] sm:$0xff]  ;;  %v119_v57 = vld [vmem:[%s1489_s0 + $0xf8] sm:$0xff] }
  0x2e   :  { %902 = vmatprep.subr.bf16.mxu0 %v901_v22  ;;  %v943_v22 = vpack.c.bf16 %v583_v15, %v582_v14  ;;  %v945_v24 = vpack.c.bf16 %v601_v19, %v600_v18  ;;  %v118_v58 = vld [vmem:[%s1489_s0 + $0xf0] sm:$0xff]  ;;  %v603_v60 = vld [vmem:[%s1491_s3 + $0xf8] sm:$0xff] }
  0x2f   :  { %v602_v59 = vld [vmem:[%s1491_s3 + $0xf0] sm:$0xff]  ;;  %v587_v63 = vld [vmem:[%s1491_s3 + $0x78] sm:$0xff] }
  0x30   :  { %944 = vmatpush3.bf16.msra.mxu1 %v943_v22  ;;  %v586_v62 = vld [vmem:[%s1491_s3 + $0x70] sm:$0xff] }
  0x31   :  { %904 = vmatpush1.bf16.msra.mxu0 %v903_v33  ;;  %946 = vmatprep.subr.bf16.mxu1 %v945_v24  ;;  %v95_v33 = vld [vmem:[%s1489_s0 + $0x38] sm:$0xff] }
  0x32   :  { %906 = vmatprep.subr.bf16.mxu0 %v905_v36  ;;  %v96_v36 = vld [vmem:[%s1489_s0 + $0x40] sm:$0xff] }
  0x34   :  { %948 = vmatpush3.bf16.msra.mxu1 %v947_v27 }
  0x35   :  { %908 = vmatpush1.bf16.msra.mxu0 %v907_v47  ;;  %v109_v47 = vld [vmem:[%s1489_s0 + $0xa8] sm:$0xff] }
  0x36   :  { %910 = vmatprep.subr.bf16.mxu0 %v909_v50  ;;  %v110_v50 = vld [vmem:[%s1489_s0 + $0xb0] sm:$0xff] }
  0x39   :  { %912 = vmatpush1.bf16.msra.mxu0 %v911_v61  ;;  %v949_v61 = vpack.c.bf16 %v603_v60, %v602_v59 }
  0x3a   :  { %914 = vmatprep.subr.bf16.mxu0 %v913_v0  ;;  %v951_v0 = vpack.c.bf16 %v587_v63, %v586_v62 }
  0x3b   :  { %950 = vmatprep.subr.bf16.mxu1 %v949_v61 }
  0x3c   :  { %952 = vmatpush3.bf16.msra.mxu1 %v951_v0 }
  0x3d   :  { %916 = vmatpush1.bf16.msra.mxu0 %v915_v12 }
  0x3e   :  { %918 = vmatprep.subr.bf16.mxu0 %v917_v16 }
  0x41   :  { %920 = vmatpush1.bf16.msra.mxu0 %v919_v23 }
  0x44   :  { %249 = vmatmul.mubr.f32.vlgmr.msra.gmra.mrb[0].mxu0 %v88_v28 }
  0x45   :  { %254 = vmatprep.mubr.f32.mxu0 %v91_v29 }
  0x48   :  { %255 = vmatmul.mubr.f32.gmra.mrb[2].mxu0 %v90_v30 }
  0x49   :  { %260 = vmatprep.mubr.f32.mxu0 %v93_v31 }
  0x4c   :  { %261 = vmatmul.mubr.f32.gmra.mrb[4].mxu0 %v92_v32 }
  0x4d   :  { %266 = vmatprep.mubr.f32.mxu0 %v95_v33 }
  0x50   :  { %267 = vmatmul.mubr.f32.gmra.mrb[6].mxu0 %v94_v34 }
  0x51   :  { %272 = vmatprep.mubr.f32.mxu0 %v97_v35 }
  0x54   :  { %273 = vmatmul.mubr.f32.gmra.mrb[8].mxu0 %v96_v36 }
  0x55   :  { %278 = vmatprep.mubr.f32.mxu0 %v99_v37 }
  0x58   :  { %279 = vmatmul.mubr.f32.gmra.mrb[10].mxu0 %v98_v38 }
  0x59   :  { %284 = vmatprep.mubr.f32.mxu0 %v101_v39 }
  0x5c   :  { %285 = vmatmul.mubr.f32.gmra.mrb[12].mxu0 %v100_v40 }
  0x5d   :  { %290 = vmatprep.mubr.f32.mxu0 %v103_v41 }
  0x60   :  { %291 = vmatmul.mubr.f32.gmra.mrb[14].mxu0 %v102_v42 }
  0x61   :  { %296 = vmatprep.mubr.f32.mxu0 %v105_v43 }
  0x64   :  { %297 = vmatmul.mubr.f32.gmra.mrb[16].mxu0 %v104_v44 }
  0x65   :  { %302 = vmatprep.mubr.f32.mxu0 %v107_v45 }
  0x68   :  { %303 = vmatmul.mubr.f32.gmra.mrb[18].mxu0 %v106_v46 }
  0x69   :  { %308 = vmatprep.mubr.f32.mxu0 %v109_v47 }
  0x6c   :  { %309 = vmatmul.mubr.f32.gmra.mrb[20].mxu0 %v108_v48 }
  0x6d   :  { %314 = vmatprep.mubr.f32.mxu0 %v111_v49 }
  0x70   :  { %315 = vmatmul.mubr.f32.gmra.mrb[22].mxu0 %v110_v50 }
  0x71   :  { %320 = vmatprep.mubr.f32.mxu0 %v113_v51 }
  0x74   :  { %321 = vmatmul.mubr.f32.gmra.mrb[24].mxu0 %v112_v52 }
  0x75   :  { %326 = vmatprep.mubr.f32.mxu0 %v115_v53 }
  0x78   :  { %327 = vmatmul.mubr.f32.gmra.mrb[26].mxu0 %v114_v54 }
  0x79   :  { %332 = vmatprep.mubr.f32.mxu0 %v117_v55 }
  0x7c   :  { %333 = vmatmul.mubr.f32.gmra.mrb[28].mxu0 %v116_v56 }
  0x7d   :  { %338 = vmatprep.mubr.f32.mxu0 %v119_v57 }
  0x80   :  { %339 = vmatmul.mubr.f32.gmra.mrb[30].mxu0 %v118_v58 }
  0x8e   :  { %v463_v1 = vpop.permute.xlu0 %462  ;;  %v473_v10 = vpop.permute.xlu1 %472 }
  0x92   :  { %v468_v7 = vpop.permute.xlu0 %467  ;;  %v478_v17 = vpop.permute.xlu1 %477 }
  0x96   :  { %v483_v22 = vpop.permute.xlu0 %482  ;;  %v488_v27 = vpop.permute.xlu1 %487 }
  0x9a   :  { %v493_v32 = vpop.permute.xlu0 %492  ;;  %v498_v37 = vpop.permute.xlu1 %497 }
  0x9e   :  { %v503_v42 = vpop.permute.xlu0 %502  ;;  %v508_v47 = vpop.permute.xlu1 %507 }
  0xa2   :  { %v513_v52 = vpop.permute.xlu0 %512  ;;  %v518_v57 = vpop.permute.xlu1 %517 }
  0xa6   :  { %v523_v62 = vpop.permute.xlu0 %522 }
 0x117   :  { %v250_v2 = vpop.f32.mrb[0].mxu0 }
 0x118   :  { %v252_v3 = vpop.f32.mrb[1].mxu0  ;;  %v540_v5 = vmul.f32 %v463_v1, %v250_v2 }
 0x119   :  { %v541_v4 = vmul.f32 %v463_v1, %v252_v3  ;;  %v528_v3 = vpop.permute.xlu1 %527 }
 0x11b   :  { %v256_v6 = vpop.f32.mrb[2].mxu0  ;;  %675 = vmatprep.mubr.f32.mxu1 %v541_v4 }
 0x11c   :  { %v258_v8 = vpop.f32.mrb[3].mxu0  ;;  %676 = vmatmul.mubr.f32.vlgmr.msra.gmra.mrb[0].mxu1 %v540_v5  ;;  %v542_v11 = vmul.f32 %v468_v7, %v256_v6 }
 0x11d   :  { %v543_v9 = vmul.f32 %v468_v7, %v258_v8  ;;  %v533_v8 = vpop.permute.xlu0 %532 }
 0x11f   :  { %v262_v12 = vpop.f32.mrb[4].mxu0  ;;  %680 = vmatprep.mubr.f32.mxu1 %v543_v9 }
 0x120   :  { %v264_v13 = vpop.f32.mrb[5].mxu0  ;;  %681 = vmatmul.mubr.f32.gmra.mrb[2].mxu1 %v542_v11  ;;  %v544_v15 = vmul.f32 %v473_v10, %v262_v12 }
 0x121   :  { %v545_v14 = vmul.f32 %v473_v10, %v264_v13  ;;  %v538_v13 = vpop.permute.xlu1 %537 }
 0x123   :  { %v268_v16 = vpop.f32.mrb[6].mxu0  ;;  %685 = vmatprep.mubr.f32.mxu1 %v545_v14 }
 0x124   :  { %v270_v18 = vpop.f32.mrb[7].mxu0  ;;  %686 = vmatmul.mubr.f32.gmra.mrb[4].mxu1 %v544_v15  ;;  %v546_v20 = vmul.f32 %v478_v17, %v268_v16 }
 0x125   :  { %v547_v19 = vmul.f32 %v478_v17, %v270_v18  ;;  %v1422_v18 = vld [vmem:[%s1492_s4] ss:$0 sm:$0xff] }
 0x127   :  { %v274_v21 = vpop.f32.mrb[8].mxu0  ;;  %690 = vmatprep.mubr.f32.mxu1 %v547_v19 }
 0x128   :  { %v276_v23 = vpop.f32.mrb[9].mxu0  ;;  %691 = vmatmul.mubr.f32.gmra.mrb[6].mxu1 %v546_v20  ;;  %v548_v25 = vmul.f32 %v483_v22, %v274_v21 }
 0x129   :  { %v549_v24 = vmul.f32 %v483_v22, %v276_v23 }
 0x12b   :  { %v280_v26 = vpop.f32.mrb[10].mxu0  ;;  %695 = vmatprep.mubr.f32.mxu1 %v549_v24 }
 0x12c   :  { %v282_v28 = vpop.f32.mrb[11].mxu0  ;;  %696 = vmatmul.mubr.f32.gmra.mrb[8].mxu1 %v548_v25  ;;  %v550_v30 = vmul.f32 %v488_v27, %v280_v26 }
 0x12d   :  { %v551_v29 = vmul.f32 %v488_v27, %v282_v28 }
 0x12f   :  { %v286_v31 = vpop.f32.mrb[12].mxu0  ;;  %700 = vmatprep.mubr.f32.mxu1 %v551_v29 }
 0x130   :  { %v288_v33 = vpop.f32.mrb[13].mxu0  ;;  %701 = vmatmul.mubr.f32.gmra.mrb[10].mxu1 %v550_v30  ;;  %v552_v35 = vmul.f32 %v493_v32, %v286_v31 }
 0x131   :  { %v553_v34 = vmul.f32 %v493_v32, %v288_v33 }
 0x133   :  { %v292_v36 = vpop.f32.mrb[14].mxu0  ;;  %705 = vmatprep.mubr.f32.mxu1 %v553_v34 }
 0x134   :  { %v294_v38 = vpop.f32.mrb[15].mxu0  ;;  %706 = vmatmul.mubr.f32.gmra.mrb[12].mxu1 %v552_v35  ;;  %v554_v40 = vmul.f32 %v498_v37, %v292_v36 }
 0x135   :  { %v555_v39 = vmul.f32 %v498_v37, %v294_v38 }
 0x137   :  { %v298_v41 = vpop.f32.mrb[16].mxu0  ;;  %710 = vmatprep.mubr.f32.mxu1 %v555_v39 }
 0x138   :  { %v300_v43 = vpop.f32.mrb[17].mxu0  ;;  %711 = vmatmul.mubr.f32.gmra.mrb[14].mxu1 %v554_v40  ;;  %v556_v45 = vmul.f32 %v503_v42, %v298_v41 }
 0x139   :  { %v557_v44 = vmul.f32 %v503_v42, %v300_v43 }
 0x13b   :  { %v304_v46 = vpop.f32.mrb[18].mxu0  ;;  %715 = vmatprep.mubr.f32.mxu1 %v557_v44 }
 0x13c   :  { %v306_v48 = vpop.f32.mrb[19].mxu0  ;;  %716 = vmatmul.mubr.f32.gmra.mrb[16].mxu1 %v556_v45  ;;  %v558_v50 = vmul.f32 %v508_v47, %v304_v46 }
 0x13d   :  { %v559_v49 = vmul.f32 %v508_v47, %v306_v48 }
 0x13f   :  { %v310_v51 = vpop.f32.mrb[20].mxu0  ;;  %720 = vmatprep.mubr.f32.mxu1 %v559_v49 }
 0x140   :  { %v312_v53 = vpop.f32.mrb[21].mxu0  ;;  %721 = vmatmul.mubr.f32.gmra.mrb[18].mxu1 %v558_v50  ;;  %v560_v55 = vmul.f32 %v513_v52, %v310_v51 }
 0x141   :  { %v561_v54 = vmul.f32 %v513_v52, %v312_v53 }
 0x143   :  { %v316_v56 = vpop.f32.mrb[22].mxu0  ;;  %725 = vmatprep.mubr.f32.mxu1 %v561_v54 }
 0x144   :  { %v318_v58 = vpop.f32.mrb[23].mxu0  ;;  %726 = vmatmul.mubr.f32.gmra.mrb[20].mxu1 %v560_v55  ;;  %v562_v60 = vmul.f32 %v518_v57, %v316_v56 }
 0x145   :  { %v563_v59 = vmul.f32 %v518_v57, %v318_v58 }
 0x147   :  { %v322_v61 = vpop.f32.mrb[24].mxu0  ;;  %730 = vmatprep.mubr.f32.mxu1 %v563_v59 }
 0x148   :  { %v324_v63 = vpop.f32.mrb[25].mxu0  ;;  %731 = vmatmul.mubr.f32.gmra.mrb[22].mxu1 %v562_v60  ;;  %v564_v1 = vmul.f32 %v523_v62, %v322_v61 }
 0x149   :  { %v565_v0 = vmul.f32 %v523_v62, %v324_v63 }
 0x14b   :  { %v328_v2 = vpop.f32.mrb[26].mxu0  ;;  %735 = vmatprep.mubr.f32.mxu1 %v565_v0 }
 0x14c   :  { %v330_v4 = vpop.f32.mrb[27].mxu0  ;;  %736 = vmatmul.mubr.f32.gmra.mrb[24].mxu1 %v564_v1  ;;  %v566_v6 = vmul.f32 %v528_v3, %v328_v2 }
 0x14d   :  { %v567_v5 = vmul.f32 %v528_v3, %v330_v4 }
 0x14f   :  { %v334_v7 = vpop.f32.mrb[28].mxu0  ;;  %740 = vmatprep.mubr.f32.mxu1 %v567_v5 }
 0x150   :  { %v336_v9 = vpop.f32.mrb[29].mxu0  ;;  %741 = vmatmul.mubr.f32.gmra.mrb[26].mxu1 %v566_v6  ;;  %v568_v11 = vmul.f32 %v533_v8, %v334_v7 }
 0x151   :  { %v569_v10 = vmul.f32 %v533_v8, %v336_v9 }
 0x153   :  { %v340_v12 = vpop.f32.mrb[30].mxu0  ;;  %745 = vmatprep.mubr.f32.mxu1 %v569_v10 }
 0x154   :  { %v342_v14 = vpop.f32.mrb[31].mxu0  ;;  %746 = vmatmul.mubr.f32.gmra.mrb[28].mxu1 %v568_v11  ;;  %v570_v16 = vmul.f32 %v538_v13, %v340_v12 }
 0x155   :  { %v571_v15 = vmul.f32 %v538_v13, %v342_v14 }
 0x157   :  { %750 = vmatprep.mubr.f32.mxu1 %v571_v15 }
 0x158   :  { %751 = vmatmul.mubr.f32.gmra.mrb[30].mxu1 %v570_v16 }
 0x1ef   :  { %v809_v17 = vpop.f32.mrb[0].mxu1 }
 0x1f0   :  { %v810_v19 = vpop.f32.mrb[1].mxu1 }
 0x1f1   :  { %v811_v20 = vadd.f32 %v810_v19, %v809_v17 }
 0x1f3   :  { %v678_v21 = vadd.f32 %v811_v20, %v1422_v18  ;;  %v812_v22 = vpop.f32.mrb[2].mxu1 }
 0x1f4   :  { %v813_v23 = vpop.f32.mrb[3].mxu1 }
 0x1f5   :  { %756 = vst [vmem:[%s1493_s5] sm:$0xff] %v678_v21  ;;  %v814_v24 = vadd.f32 %v813_v23, %v812_v22 }
 0x1f7   :  { %v683_v25 = vadd.f32 %v814_v24, %v1422_v18  ;;  %v815_v26 = vpop.f32.mrb[4].mxu1 }
 0x1f8   :  { %v816_v27 = vpop.f32.mrb[5].mxu1 }
 0x1f9   :  { %757 = vst [vmem:[%s1493_s5 + $0x8] sm:$0xff] %v683_v25  ;;  %v817_v28 = vadd.f32 %v816_v27, %v815_v26 }
 0x1fb   :  { %v688_v29 = vadd.f32 %v817_v28, %v1422_v18  ;;  %v818_v30 = vpop.f32.mrb[6].mxu1 }
 0x1fc   :  { %v819_v31 = vpop.f32.mrb[7].mxu1 }
 0x1fd   :  { %758 = vst [vmem:[%s1493_s5 + $0x10] sm:$0xff] %v688_v29  ;;  %v820_v32 = vadd.f32 %v819_v31, %v818_v30 }
 0x1ff   :  { %v693_v33 = vadd.f32 %v820_v32, %v1422_v18  ;;  %v821_v34 = vpop.f32.mrb[8].mxu1 }
 0x200   :  { %v822_v35 = vpop.f32.mrb[9].mxu1 }
 0x201   :  { %759 = vst [vmem:[%s1493_s5 + $0x18] sm:$0xff] %v693_v33  ;;  %v823_v36 = vadd.f32 %v822_v35, %v821_v34 }
 0x203   :  { %v698_v37 = vadd.f32 %v823_v36, %v1422_v18  ;;  %v824_v38 = vpop.f32.mrb[10].mxu1 }
 0x204   :  { %v825_v39 = vpop.f32.mrb[11].mxu1 }
 0x205   :  { %760 = vst [vmem:[%s1493_s5 + $0x20] sm:$0xff] %v698_v37  ;;  %v826_v40 = vadd.f32 %v825_v39, %v824_v38 }
 0x207   :  { %v703_v41 = vadd.f32 %v826_v40, %v1422_v18  ;;  %v827_v42 = vpop.f32.mrb[12].mxu1 }
 0x208   :  { %v828_v43 = vpop.f32.mrb[13].mxu1 }
 0x209   :  { %761 = vst [vmem:[%s1493_s5 + $0x28] sm:$0xff] %v703_v41  ;;  %v829_v44 = vadd.f32 %v828_v43, %v827_v42 }
 0x20b   :  { %v708_v45 = vadd.f32 %v829_v44, %v1422_v18  ;;  %v830_v46 = vpop.f32.mrb[14].mxu1 }
 0x20c   :  { %v831_v47 = vpop.f32.mrb[15].mxu1 }
 0x20d   :  { %762 = vst [vmem:[%s1493_s5 + $0x30] sm:$0xff] %v708_v45  ;;  %v832_v48 = vadd.f32 %v831_v47, %v830_v46 }
 0x20f   :  { %v713_v49 = vadd.f32 %v832_v48, %v1422_v18  ;;  %v833_v50 = vpop.f32.mrb[16].mxu1 }
 0x210   :  { %v834_v51 = vpop.f32.mrb[17].mxu1 }
 0x211   :  { %763 = vst [vmem:[%s1493_s5 + $0x38] sm:$0xff] %v713_v49  ;;  %v835_v52 = vadd.f32 %v834_v51, %v833_v50 }
 0x213   :  { %v718_v53 = vadd.f32 %v835_v52, %v1422_v18  ;;  %v836_v54 = vpop.f32.mrb[18].mxu1 }
 0x214   :  { %v837_v55 = vpop.f32.mrb[19].mxu1 }
 0x215   :  { %764 = vst [vmem:[%s1493_s5 + $0x40] sm:$0xff] %v718_v53  ;;  %v838_v56 = vadd.f32 %v837_v55, %v836_v54 }
 0x217   :  { %v723_v57 = vadd.f32 %v838_v56, %v1422_v18  ;;  %v839_v58 = vpop.f32.mrb[20].mxu1 }
 0x218   :  { %v840_v59 = vpop.f32.mrb[21].mxu1 }
 0x219   :  { %765 = vst [vmem:[%s1493_s5 + $0x48] sm:$0xff] %v723_v57  ;;  %v841_v60 = vadd.f32 %v840_v59, %v839_v58 }
 0x21b   :  { %v728_v61 = vadd.f32 %v841_v60, %v1422_v18  ;;  %v842_v62 = vpop.f32.mrb[22].mxu1 }
 0x21c   :  { %v843_v63 = vpop.f32.mrb[23].mxu1 }
 0x21d   :  { %766 = vst [vmem:[%s1493_s5 + $0x50] sm:$0xff] %v728_v61  ;;  %v844_v0 = vadd.f32 %v843_v63, %v842_v62 }
 0x21f   :  { %v733_v1 = vadd.f32 %v844_v0, %v1422_v18  ;;  %v845_v2 = vpop.f32.mrb[24].mxu1 }
 0x220   :  { %v846_v3 = vpop.f32.mrb[25].mxu1 }
 0x221   :  { %767 = vst [vmem:[%s1493_s5 + $0x58] sm:$0xff] %v733_v1  ;;  %v847_v4 = vadd.f32 %v846_v3, %v845_v2 }
 0x223   :  { %v738_v5 = vadd.f32 %v847_v4, %v1422_v18  ;;  %v848_v6 = vpop.f32.mrb[26].mxu1 }
 0x224   :  { %v849_v7 = vpop.f32.mrb[27].mxu1 }
 0x225   :  { %768 = vst [vmem:[%s1493_s5 + $0x60] sm:$0xff] %v738_v5  ;;  %v850_v8 = vadd.f32 %v849_v7, %v848_v6 }
 0x227   :  { %v743_v9 = vadd.f32 %v850_v8, %v1422_v18  ;;  %v851_v10 = vpop.f32.mrb[28].mxu1 }
 0x228   :  { %v852_v11 = vpop.f32.mrb[29].mxu1 }
 0x229   :  { %769 = vst [vmem:[%s1493_s5 + $0x68] sm:$0xff] %v743_v9  ;;  %v853_v12 = vadd.f32 %v852_v11, %v851_v10 }
 0x22b   :  { %v748_v13 = vadd.f32 %v853_v12, %v1422_v18  ;;  %v854_v14 = vpop.f32.mrb[30].mxu1 }
 0x22c   :  { %v855_v15 = vpop.f32.mrb[31].mxu1 }
 0x22d   :  { %770 = vst [vmem:[%s1493_s5 + $0x70] sm:$0xff] %v748_v13  ;;  %v856_v16 = vadd.f32 %v855_v15, %v854_v14 }
 0x22f   :  { %v753_v17 = vadd.f32 %v856_v16, %v1422_v18 }
 0x231   :  { %771 = vst [vmem:[%s1493_s5 + $0x78] sm:$0xff] %v753_v17 }

// kernel: gcn_infer_forward.4
= control target key start
LH: loop header
LB: loop body
LE: loop exit
PB: predicated region body
PF: predicated region fallthrough
CT: control target
= control target key end

     0   :  { %s2196_s18 = smov 0   ;;  %s2198_s19 = smov 0   ;;  %s3046_s0 = inlined_call_operand.vmem [shape: f32[256,384], index: 0, kind: input, shape index: {}]   ;;  %s3047_s1 = inlined_call_operand.vmem [shape: f32[384,256], index: 1, kind: input, shape index: {}]   ;;  %s3048_s2 = inlined_call_operand.vmem [shape: f32[256,1], index: 2, kind: input, shape index: {}]   ;;  %s3049_s3 = inlined_call_operand.vmem [shape: f32[256,256], index: 3, kind: input, shape index: {}]   ;;  %s3050_s4 = inlined_call_operand.vmem [shape: f32[1,256], index: 4, kind: input, shape index: {}]   ;;  %s3051_s5 = inlined_call_operand.vmem [shape: f32[256,256], index: 5, kind: output, shape index: {}]  }
   0x1   :  { %s2200_s20 = smov 0   ;;  %s2202_s21 = smov 0  }
   0x2   :  { %s2204_s22 = smov 0  }
   0x3 LB: > { %s24_s23 = sadd.s32 1, %s2157_s21  ;;  %p43_p1 = scmp.ne.s32.totalorder %s2149_s19, %s2145_s18  ;;  %s2161_s22 = sphi %s2204_s22, %s15_s22   ;;  %s2157_s21 = sphi %s2202_s21, %s3055_s21   ;;  %s2153_s20 = sphi %s2200_s20, %s3054_s20   ;;  %s2149_s19 = sphi %s2198_s19, %s3053_s19   ;;  %s2145_s18 = sphi %s2196_s18, %s3052_s18  }
   0x4   : > { %p25_p0 = scmp.ge.s32.totalorder %s24_s23, 3  ;;  %p44_p2 = scmp.eq.s32.totalorder %s2161_s22, 0 }
   0x5   : > { %s36_s25 = sadd.s32 1, %s2149_s19  ;;  %p1919_p5 = scmp.ge.s32.totalorder %s2161_s22, 3 }
   0x6   : > { %s3057_s23 = smov (%p25_p0, %s24_s23), 0  ;;  %p45_p3 = por %p44_p2, %p43_p1 }
   0x7   : > { %s32_s24 = ssub.s32 %s2157_s21, %s3057_s23  ;;  %204 = sbr.rel (%p1919_p5) target bundleno = 34 (0x22), region = 28 }
   0x8   : > { %p34_p4 = scmp.eq.s32.totalorder %s32_s24, 0 }
   0xa   : > { %s2231_s26 = scalar_select %p34_p4, %s2149_s19, %s36_s25  }
   0xe   : > { %207 = sbr.rel (!%p45_p3) target bundleno = 34 (0x22), region = 32  ;;  %s209_s27 = sand.u32 (%p45_p3), 1, %s2149_s19  }
   0xf   : > { %s1921_s28 = sshll.u32 (%p45_p3), %s2157_s21, 3  ;;  %s1920_s29 = sshll.u32 (%p45_p3), %s209_s27, 8 }
  0x10   : > { %s2239_s7 = scalar_lea.vmem (%p45_p3), %s3046_s0, %s1921_s28  ;;  %s2244_s8 = scalar_lea.vmem (%p45_p3), [#allocation3], %s1920_s29 }
  0x11   : > { %v306_v0 = vld [vmem:[%s2239_s7] sm:$0xff] (%p45_p3)  ;;  %v308_v1 = vld [vmem:[%s2239_s7 + $0x18] sm:$0xff] (%p45_p3)  ;;  %v310_v2 = vld [vmem:[%s2239_s7 + $0x30] sm:$0xff] (%p45_p3) }
  0x12   : > { %307 = vst [vmem:[%s2244_s8] sm:$0xff] (%p45_p3), %v306_v0  ;;  %309 = vst [vmem:[%s2244_s8 + $0x8] sm:$0xff] (%p45_p3), %v308_v1  ;;  %v312_v3 = vld [vmem:[%s2239_s7 + $0x48] sm:$0xff] (%p45_p3)  ;;  %v314_v4 = vld [vmem:[%s2239_s7 + $0x60] sm:$0xff] (%p45_p3) }
  0x13   : > { %311 = vst [vmem:[%s2244_s8 + $0x10] sm:$0xff] (%p45_p3), %v310_v2  ;;  %v316_v5 = vld [vmem:[%s2239_s7 + $0x78] sm:$0xff] (%p45_p3)  ;;  %313 = vst [vmem:[%s2244_s8 + $0x18] sm:$0xff] (%p45_p3), %v312_v3  ;;  %v318_v6 = vld [vmem:[%s2239_s7 + $0x90] sm:$0xff] (%p45_p3) }
  0x14   : > { %315 = vst [vmem:[%s2244_s8 + $0x20] sm:$0xff] (%p45_p3), %v314_v4  ;;  %317 = vst [vmem:[%s2244_s8 + $0x28] sm:$0xff] (%p45_p3), %v316_v5  ;;  %v320_v7 = vld [vmem:[%s2239_s7 + $0xa8] sm:$0xff] (%p45_p3)  ;;  %v322_v8 = vld [vmem:[%s2239_s7 + $0xc0] sm:$0xff] (%p45_p3) }
  0x15   : > { %319 = vst [vmem:[%s2244_s8 + $0x30] sm:$0xff] %v318_v6  ;;  %321 = vst [vmem:[%s2244_s8 + $0x38] sm:$0xff] %v320_v7  ;;  %v324_v9 = vld [vmem:[%s2239_s7 + $0xd8] sm:$0xff]  ;;  %v326_v10 = vld [vmem:[%s2239_s7 + $0xf0] sm:$0xff] }
  0x16   : > { %323 = vst [vmem:[%s2244_s8 + $0x40] sm:$0xff] %v322_v8  ;;  %v328_v11 = vld [vmem:[%s2239_s7 + $0x108] sm:$0xff]  ;;  %325 = vst [vmem:[%s2244_s8 + $0x48] sm:$0xff] %v324_v9  ;;  %v330_v12 = vld [vmem:[%s2239_s7 + $0x120] sm:$0xff] }
  0x17   : > { %327 = vst [vmem:[%s2244_s8 + $0x50] sm:$0xff] %v326_v10  ;;  %329 = vst [vmem:[%s2244_s8 + $0x58] sm:$0xff] %v328_v11  ;;  %v332_v13 = vld [vmem:[%s2239_s7 + $0x138] sm:$0xff]  ;;  %v334_v14 = vld [vmem:[%s2239_s7 + $0x150] sm:$0xff] }
  0x18   : > { %331 = vst [vmem:[%s2244_s8 + $0x60] sm:$0xff] %v330_v12  ;;  %333 = vst [vmem:[%s2244_s8 + $0x68] sm:$0xff] %v332_v13  ;;  %v336_v15 = vld [vmem:[%s2239_s7 + $0x168] sm:$0xff]  ;;  %v338_v16 = vld [vmem:[%s2239_s7 + $0x180] sm:$0xff] }
  0x19   : > { %335 = vst [vmem:[%s2244_s8 + $0x70] sm:$0xff] %v334_v14  ;;  %v340_v17 = vld [vmem:[%s2239_s7 + $0x198] sm:$0xff]  ;;  %337 = vst [vmem:[%s2244_s8 + $0x78] sm:$0xff] %v336_v15  ;;  %v342_v18 = vld [vmem:[%s2239_s7 + $0x1b0] sm:$0xff] }
  0x1a   : > { %339 = vst [vmem:[%s2244_s8 + $0x80] sm:$0xff] %v338_v16  ;;  %341 = vst [vmem:[%s2244_s8 + $0x88] sm:$0xff] %v340_v17  ;;  %v344_v19 = vld [vmem:[%s2239_s7 + $0x1c8] sm:$0xff]  ;;  %v346_v20 = vld [vmem:[%s2239_s7 + $0x1e0] sm:$0xff] }
  0x1b   : > { %343 = vst [vmem:[%s2244_s8 + $0x90] sm:$0xff] %v342_v18  ;;  %345 = vst [vmem:[%s2244_s8 + $0x98] sm:$0xff] %v344_v19  ;;  %v348_v21 = vld [vmem:[%s2239_s7 + $0x1f8] sm:$0xff]  ;;  %v350_v22 = vld [vmem:[%s2239_s7 + $0x210] sm:$0xff] }
  0x1c   : > { %347 = vst [vmem:[%s2244_s8 + $0xa0] sm:$0xff] %v346_v20  ;;  %v352_v23 = vld [vmem:[%s2239_s7 + $0x228] sm:$0xff]  ;;  %349 = vst [vmem:[%s2244_s8 + $0xa8] sm:$0xff] %v348_v21  ;;  %v354_v24 = vld [vmem:[%s2239_s7 + $0x240] sm:$0xff] }
  0x1d   : > { %351 = vst [vmem:[%s2244_s8 + $0xb0] sm:$0xff] %v350_v22  ;;  %353 = vst [vmem:[%s2244_s8 + $0xb8] sm:$0xff] %v352_v23  ;;  %v356_v25 = vld [vmem:[%s2239_s7 + $0x258] sm:$0xff]  ;;  %v358_v26 = vld [vmem:[%s2239_s7 + $0x270] sm:$0xff] }
  0x1e   : > { %355 = vst [vmem:[%s2244_s8 + $0xc0] sm:$0xff] %v354_v24  ;;  %357 = vst [vmem:[%s2244_s8 + $0xc8] sm:$0xff] %v356_v25  ;;  %v360_v27 = vld [vmem:[%s2239_s7 + $0x288] sm:$0xff]  ;;  %v362_v28 = vld [vmem:[%s2239_s7 + $0x2a0] sm:$0xff] }
  0x1f   : > { %359 = vst [vmem:[%s2244_s8 + $0xd0] sm:$0xff] %v358_v26  ;;  %v364_v29 = vld [vmem:[%s2239_s7 + $0x2b8] sm:$0xff]  ;;  %361 = vst [vmem:[%s2244_s8 + $0xd8] sm:$0xff] %v360_v27  ;;  %v366_v30 = vld [vmem:[%s2239_s7 + $0x2d0] sm:$0xff] }
  0x20   : > { %363 = vst [vmem:[%s2244_s8 + $0xe0] sm:$0xff] %v362_v28  ;;  %365 = vst [vmem:[%s2244_s8 + $0xe8] sm:$0xff] %v364_v29  ;;  %v368_v31 = vld [vmem:[%s2239_s7 + $0x2e8] sm:$0xff] }
  0x21   : > { %367 = vst [vmem:[%s2244_s8 + $0xf0] sm:$0xff] %v366_v30  ;;  %369 = vst [vmem:[%s2244_s8 + $0xf8] sm:$0xff] %v368_v31 }
  0x22 PF: > { %p1922_p6 = scmp.ge.s32.totalorder %s2161_s22, 1  ;;  %p384_p7 = scmp.lt.s32.totalorder %s2161_s22, 4 }
  0x24   : > { %p385_p8 = pnand %p1922_p6, %p384_p7 }
  0x25   : > { %s391_s9 = sand.u32 (!%p385_p8), 1, %s2145_s18   ;;  %s1924_s10 = sshll.u32 (!%p385_p8), %s2153_s20, 4 }
  0x26   : > { %388 = sbr.rel (%p385_p8) target bundleno = 784 (0x310), region = 74  ;;  %s1923_s11 = sshll.u32 (!%p385_p8), %s391_s9, 8 }
  0x27   : > { %p432_p9 = scmp.lt.s32.totalorder (!%p385_p8), %s1924_s10, 47  ;;  %s2316_s16 = scalar_lea.vmem (!%p385_p8), [#allocation3], %s1923_s11 }
  0x28   : > { %p1927_p10 = scmp.ne.s32.totalorder (!%p385_p8), %s2153_s20, 0 }
  0x2d   : > { %s3059_s10 = smov (!%p432_p9, %s1924_s10), 47  ;;  %454 = sbr.rel (%p1927_p10) target bundleno = 79 (0x4f), region = 82 }
  0x2e   : > { %s1933_s12 = sshll.u32 %s3059_s10, 4  ;;  %v2163_v32 = vmov (!%p1927_p10), 0.0  }
  0x2f   : > { %s2314_s15 = scalar_lea.vmem %s3047_s1, %s1933_s12  ;;  %455 = vst [vmem:[#allocation2] sm:$0xff] (!%p1927_p10), %v2163_v32  ;;  %456 = vst [vmem:[#allocation2 + $0x8] sm:$0xff] (!%p1927_p10), %v2163_v32 }
  0x30   : > { %457 = vst [vmem:[#allocation2 + $0x10] sm:$0xff] (!%p1927_p10), %v2163_v32  ;;  %458 = vst [vmem:[#allocation2 + $0x18] sm:$0xff] (!%p1927_p10), %v2163_v32 }
  0x31   : > { %459 = vst [vmem:[#allocation2 + $0x20] sm:$0xff] (!%p1927_p10), %v2163_v32  ;;  %460 = vst [vmem:[#allocation2 + $0x28] sm:$0xff] (!%p1927_p10), %v2163_v32 }
  0x32   : > { %461 = vst [vmem:[#allocation2 + $0x30] sm:$0xff] (!%p1927_p10), %v2163_v32  ;;  %462 = vst [vmem:[#allocation2 + $0x38] sm:$0xff] (!%p1927_p10), %v2163_v32 }
  0x33   : > { %463 = vst [vmem:[#allocation2 + $0x40] sm:$0xff] (!%p1927_p10), %v2163_v32  ;;  %464 = vst [vmem:[#allocation2 + $0x48] sm:$0xff] (!%p1927_p10), %v2163_v32 }
  0x34   : > { %465 = vst [vmem:[#allocation2 + $0x50] sm:$0xff] %v2163_v32  ;;  %466 = vst [vmem:[#allocation2 + $0x58] sm:$0xff] %v2163_v32 }
  0x35   : > { %467 = vst [vmem:[#allocation2 + $0x60] sm:$0xff] %v2163_v32  ;;  %468 = vst [vmem:[#allocation2 + $0x68] sm:$0xff] %v2163_v32 }
  0x36   : > { %469 = vst [vmem:[#allocation2 + $0x70] sm:$0xff] %v2163_v32  ;;  %470 = vst [vmem:[#allocation2 + $0x78] sm:$0xff] %v2163_v32 }
  0x37   : > { %471 = vst [vmem:[#allocation2 + $0x80] sm:$0xff] %v2163_v32  ;;  %472 = vst [vmem:[#allocation2 + $0x88] sm:$0xff] %v2163_v32 }
  0x38   : > { %473 = vst [vmem:[#allocation2 + $0x90] sm:$0xff] %v2163_v32  ;;  %474 = vst [vmem:[#allocation2 + $0x98] sm:$0xff] %v2163_v32 }
  0x39   : > { %475 = vst [vmem:[#allocation2 + $0xa0] sm:$0xff] %v2163_v32  ;;  %476 = vst [vmem:[#allocation2 + $0xa8] sm:$0xff] %v2163_v32 }
  0x3a   : > { %477 = vst [vmem:[#allocation2 + $0xb0] sm:$0xff] %v2163_v32  ;;  %478 = vst [vmem:[#allocation2 + $0xb8] sm:$0xff] %v2163_v32 }
  0x3b   : > { %479 = vst [vmem:[#allocation2 + $0xc0] sm:$0xff] %v2163_v32  ;;  %480 = vst [vmem:[#allocation2 + $0xc8] sm:$0xff] %v2163_v32 }
  0x3c   : > { %481 = vst [vmem:[#allocation2 + $0xd0] sm:$0xff] %v2163_v32  ;;  %482 = vst [vmem:[#allocation2 + $0xd8] sm:$0xff] %v2163_v32 }
  0x3d   : > { %483 = vst [vmem:[#allocation2 + $0xe0] sm:$0xff] %v2163_v32  ;;  %484 = vst [vmem:[#allocation2 + $0xe8] sm:$0xff] %v2163_v32 }
  0x3e   : > { %485 = vst [vmem:[#allocation2 + $0xf0] sm:$0xff] %v2163_v32  ;;  %486 = vst [vmem:[#allocation2 + $0xf8] sm:$0xff] %v2163_v32 }
  0x3f   : > { %487 = vst [vmem:[#allocation2 + $0x100] sm:$0xff] %v2163_v32  ;;  %488 = vst [vmem:[#allocation2 + $0x108] sm:$0xff] %v2163_v32 }
  0x40   : > { %489 = vst [vmem:[#allocation2 + $0x110] sm:$0xff] %v2163_v32  ;;  %490 = vst [vmem:[#allocation2 + $0x118] sm:$0xff] %v2163_v32 }
  0x41   : > { %491 = vst [vmem:[#allocation2 + $0x120] sm:$0xff] %v2163_v32  ;;  %492 = vst [vmem:[#allocation2 + $0x128] sm:$0xff] %v2163_v32 }
  0x42   : > { %493 = vst [vmem:[#allocation2 + $0x130] sm:$0xff] %v2163_v32  ;;  %494 = vst [vmem:[#allocation2 + $0x138] sm:$0xff] %v2163_v32 }
  0x43   : > { %495 = vst [vmem:[#allocation2 + $0x140] sm:$0xff] %v2163_v32  ;;  %496 = vst [vmem:[#allocation2 + $0x148] sm:$0xff] %v2163_v32 }
  0x44   : > { %497 = vst [vmem:[#allocation2 + $0x150] sm:$0xff] %v2163_v32  ;;  %498 = vst [vmem:[#allocation2 + $0x158] sm:$0xff] %v2163_v32 }
  0x45   : > { %499 = vst [vmem:[#allocation2 + $0x160] sm:$0xff] %v2163_v32  ;;  %500 = vst [vmem:[#allocation2 + $0x168] sm:$0xff] %v2163_v32 }
  0x46   : > { %501 = vst [vmem:[#allocation2 + $0x170] sm:$0xff] %v2163_v32  ;;  %502 = vst [vmem:[#allocation2 + $0x178] sm:$0xff] %v2163_v32 }
  0x47   : > { %503 = vst [vmem:[#allocation2 + $0x180] sm:$0xff] %v2163_v32  ;;  %504 = vst [vmem:[#allocation2 + $0x188] sm:$0xff] %v2163_v32 }
  0x48   : > { %505 = vst [vmem:[#allocation2 + $0x190] sm:$0xff] %v2163_v32  ;;  %506 = vst [vmem:[#allocation2 + $0x198] sm:$0xff] %v2163_v32 }
  0x49   : > { %507 = vst [vmem:[#allocation2 + $0x1a0] sm:$0xff] %v2163_v32  ;;  %508 = vst [vmem:[#allocation2 + $0x1a8] sm:$0xff] %v2163_v32 }
  0x4a   : > { %509 = vst [vmem:[#allocation2 + $0x1b0] sm:$0xff] %v2163_v32  ;;  %510 = vst [vmem:[#allocation2 + $0x1b8] sm:$0xff] %v2163_v32 }
  0x4b   : > { %511 = vst [vmem:[#allocation2 + $0x1c0] sm:$0xff] %v2163_v32  ;;  %512 = vst [vmem:[#allocation2 + $0x1c8] sm:$0xff] %v2163_v32 }
  0x4c   : > { %513 = vst [vmem:[#allocation2 + $0x1d0] sm:$0xff] %v2163_v32  ;;  %514 = vst [vmem:[#allocation2 + $0x1d8] sm:$0xff] %v2163_v32 }
  0x4d   : > { %515 = vst [vmem:[#allocation2 + $0x1e0] sm:$0xff] %v2163_v32  ;;  %516 = vst [vmem:[#allocation2 + $0x1e8] sm:$0xff] %v2163_v32 }
  0x4e   : > { %517 = vst [vmem:[#allocation2 + $0x1f0] sm:$0xff] %v2163_v32  ;;  %518 = vst [vmem:[#allocation2 + $0x1f8] sm:$0xff] %v2163_v32 }
  0x4f PF: > { %v616_v33 = vld [vmem:[%s2314_s15 + $0x8] sm:$0xff]  ;;  %v618_v34 = vld [vmem:[%s2314_s15 + $0x18] sm:$0xff]  ;;  %v615_v35 = vld [vmem:[%s2314_s15] sm:$0xff]  ;;  %v2164_v40 = vmov 0.0   ;;  %p1928_p11 = scmp.ne.s32.totalorder %s2153_s20, 2 }
  0x50   : > { %v1934_v36 = vpack.c.bf16 %v618_v34, %v616_v33  ;;  %v617_v37 = vld [vmem:[%s2314_s15 + $0x10] sm:$0xff]  ;;  %v620_v38 = vld [vmem:[%s2314_s15 + $0x28] sm:$0xff]  ;;  %v622_v39 = vld [vmem:[%s2314_s15 + $0x38] sm:$0xff]  ;;  %711 = vmatprep.mubr.f32.mxu0 %v2164_v40  ;;  %807 = vmatprep.mubr.f32.mxu1 %v2164_v40 }
  0x51   : > { %v1936_v41 = vpack.c.bf16 %v617_v37, %v615_v35  ;;  %v1938_v42 = vpack.c.bf16 %v622_v39, %v620_v38  ;;  %v619_v43 = vld [vmem:[%s2314_s15 + $0x20] sm:$0xff]  ;;  %v621_v44 = vld [vmem:[%s2314_s15 + $0x30] sm:$0xff]  ;;  %v624_v45 = vld [vmem:[%s2314_s15 + $0x48] sm:$0xff] }
  0x52   : > { %1935 = vmatprep.subr.bf16.mxu0 %v1934_v36  ;;  %2030 = vmatprep.subr.bf16.mxu1 %v1934_v36  ;;  %v626_v46 = vld [vmem:[%s2314_s15 + $0x58] sm:$0xff]  ;;  %v1940_v47 = vpack.c.bf16 %v621_v44, %v619_v43  ;;  %v623_v49 = vld [vmem:[%s2314_s15 + $0x40] sm:$0xff]  ;;  %v625_v50 = vld [vmem:[%s2314_s15 + $0x50] sm:$0xff] }
  0x53   : > { %1937 = vmatpush1.bf16.msra.mxu0 %v1936_v41  ;;  %2038 = vmatpush1.bf16.msra.mxu1 %v1936_v41  ;;  %v1942_v48 = vpack.c.bf16 %v626_v46, %v624_v45  ;;  %v628_v51 = vld [vmem:[%s2314_s15 + $0x68] sm:$0xff]  ;;  %v630_v52 = vld [vmem:[%s2314_s15 + $0x78] sm:$0xff]  ;;  %v1944_v53 = vpack.c.bf16 %v625_v50, %v623_v49  ;;  %v627_v55 = vld [vmem:[%s2314_s15 + $0x60] sm:$0xff] }
  0x54   : > { %1939 = vmatprep.subr.bf16.mxu0 %v1938_v42  ;;  %2031 = vmatprep.subr.bf16.mxu1 %v1938_v42  ;;  %v1946_v54 = vpack.c.bf16 %v630_v52, %v628_v51  ;;  %v629_v56 = vld [vmem:[%s2314_s15 + $0x70] sm:$0xff]  ;;  %v632_v57 = vld [vmem:[%s2314_s15 + $0x88] sm:$0xff]  ;;  %v634_v58 = vld [vmem:[%s2314_s15 + $0x98] sm:$0xff] }
  0x55   : > { %v1948_v59 = vpack.c.bf16 %v629_v56, %v627_v55  ;;  %v1950_v60 = vpack.c.bf16 %v634_v58, %v632_v57  ;;  %v631_v61 = vld [vmem:[%s2314_s15 + $0x80] sm:$0xff]  ;;  %v633_v62 = vld [vmem:[%s2314_s15 + $0x90] sm:$0xff]  ;;  %v636_v63 = vld [vmem:[%s2314_s15 + $0xa8] sm:$0xff] }
  0x56   : > { %v638_v0 = vld [vmem:[%s2314_s15 + $0xb8] sm:$0xff]  ;;  %v1952_v1 = vpack.c.bf16 %v633_v62, %v631_v61  ;;  %v635_v3 = vld [vmem:[%s2314_s15 + $0xa0] sm:$0xff]  ;;  %v637_v4 = vld [vmem:[%s2314_s15 + $0xb0] sm:$0xff] }
  0x57   : > { %1941 = vmatpush1.bf16.msra.mxu0 %v1940_v47  ;;  %2039 = vmatpush1.bf16.msra.mxu1 %v1940_v47  ;;  %v1954_v2 = vpack.c.bf16 %v638_v0, %v636_v63  ;;  %v640_v5 = vld [vmem:[%s2314_s15 + $0xc8] sm:$0xff]  ;;  %v642_v6 = vld [vmem:[%s2314_s15 + $0xd8] sm:$0xff]  ;;  %v1956_v7 = vpack.c.bf16 %v637_v4, %v635_v3  ;;  %v639_v9 = vld [vmem:[%s2314_s15 + $0xc0] sm:$0xff] }
  0x58   : > { %1943 = vmatprep.subr.bf16.mxu0 %v1942_v48  ;;  %2032 = vmatprep.subr.bf16.mxu1 %v1942_v48  ;;  %v1958_v8 = vpack.c.bf16 %v642_v6, %v640_v5  ;;  %v641_v10 = vld [vmem:[%s2314_s15 + $0xd0] sm:$0xff]  ;;  %v644_v11 = vld [vmem:[%s2314_s15 + $0xe8] sm:$0xff]  ;;  %v646_v12 = vld [vmem:[%s2314_s15 + $0xf8] sm:$0xff] }
  0x59   : > { %v1960_v13 = vpack.c.bf16 %v641_v10, %v639_v9  ;;  %v1962_v14 = vpack.c.bf16 %v646_v12, %v644_v11  ;;  %v643_v15 = vld [vmem:[%s2314_s15 + $0xe0] sm:$0xff]  ;;  %v645_v16 = vld [vmem:[%s2314_s15 + $0xf0] sm:$0xff]  ;;  %v584_v20 = vld [vmem:[%s2316_s16 + $0x8] sm:$0xff] }
  0x5a   : > { %v1964_v17 = vpack.c.bf16 %v645_v16, %v643_v15  ;;  %v583_v18 = vld [vmem:[%s2316_s16] sm:$0xff]  ;;  %v600_v21 = vld [vmem:[%s2316_s16 + $0x88] sm:$0xff]  ;;  %v585_v22 = vld [vmem:[%s2316_s16 + $0x10] sm:$0xff] }
  0x5b   : > { %1945 = vmatpush1.bf16.msra.mxu0 %v1944_v53  ;;  %2040 = vmatpush1.bf16.msra.mxu1 %v1944_v53  ;;  %v599_v19 = vld [vmem:[%s2316_s16 + $0x80] sm:$0xff]  ;;  %v601_v23 = vld [vmem:[%s2316_s16 + $0x90] sm:$0xff]  ;;  %v586_v24 = vld [vmem:[%s2316_s16 + $0x18] sm:$0xff] }
  0x5c   : > { %1947 = vmatprep.subr.bf16.mxu0 %v1946_v54  ;;  %2033 = vmatprep.subr.bf16.mxu1 %v1946_v54  ;;  %v602_v25 = vld [vmem:[%s2316_s16 + $0x98] sm:$0xff]  ;;  %v587_v26 = vld [vmem:[%s2316_s16 + $0x20] sm:$0xff]  ;;  %v588_v28 = vld [vmem:[%s2316_s16 + $0x28] sm:$0xff] }
  0x5d   : > { %v603_v27 = vld [vmem:[%s2316_s16 + $0xa0] sm:$0xff]  ;;  %v604_v29 = vld [vmem:[%s2316_s16 + $0xa8] sm:$0xff]  ;;  %v589_v30 = vld [vmem:[%s2316_s16 + $0x30] sm:$0xff] }
  0x5e   : > { %v605_v31 = vld [vmem:[%s2316_s16 + $0xb0] sm:$0xff]  ;;  %v590_v32 = vld [vmem:[%s2316_s16 + $0x38] sm:$0xff]  ;;  %v591_v34 = vld [vmem:[%s2316_s16 + $0x40] sm:$0xff] }
  0x5f   : > { %1949 = vmatpush1.bf16.msra.mxu0 %v1948_v59  ;;  %2041 = vmatpush1.bf16.msra.mxu1 %v1948_v59  ;;  %v606_v33 = vld [vmem:[%s2316_s16 + $0xb8] sm:$0xff]  ;;  %v607_v35 = vld [vmem:[%s2316_s16 + $0xc0] sm:$0xff]  ;;  %v592_v36 = vld [vmem:[%s2316_s16 + $0x48] sm:$0xff] }
  0x60   : > { %1951 = vmatprep.subr.bf16.mxu0 %v1950_v60  ;;  %2034 = vmatprep.subr.bf16.mxu1 %v1950_v60  ;;  %v608_v37 = vld [vmem:[%s2316_s16 + $0xc8] sm:$0xff]  ;;  %v593_v38 = vld [vmem:[%s2316_s16 + $0x50] sm:$0xff]  ;;  %v594_v41 = vld [vmem:[%s2316_s16 + $0x58] sm:$0xff] }
  0x61   : > { %v609_v39 = vld [vmem:[%s2316_s16 + $0xd0] sm:$0xff]  ;;  %v610_v42 = vld [vmem:[%s2316_s16 + $0xd8] sm:$0xff]  ;;  %v595_v43 = vld [vmem:[%s2316_s16 + $0x60] sm:$0xff] }
  0x62   : > { %v611_v44 = vld [vmem:[%s2316_s16 + $0xe0] sm:$0xff]  ;;  %v596_v45 = vld [vmem:[%s2316_s16 + $0x68] sm:$0xff]  ;;  %v597_v47 = vld [vmem:[%s2316_s16 + $0x70] sm:$0xff] }
  0x63   : > { %1953 = vmatpush1.bf16.msra.mxu0 %v1952_v1  ;;  %2042 = vmatpush1.bf16.msra.mxu1 %v1952_v1  ;;  %v612_v46 = vld [vmem:[%s2316_s16 + $0xe8] sm:$0xff]  ;;  %v613_v48 = vld [vmem:[%s2316_s16 + $0xf0] sm:$0xff]  ;;  %v598_v49 = vld [vmem:[%s2316_s16 + $0x78] sm:$0xff] }
  0x64   : > { %1955 = vmatprep.subr.bf16.mxu0 %v1954_v2  ;;  %2035 = vmatprep.subr.bf16.mxu1 %v1954_v2  ;;  %v614_v50 = vld [vmem:[%s2316_s16 + $0xf8] sm:$0xff]  ;;  %v519_v51 = vld [vmem:[#allocation2] sm:$0xff]  ;;  %v520_v53 = vld [vmem:[#allocation2 + $0x8] sm:$0xff] }
  0x65   : > { %v551_v52 = vld [vmem:[#allocation2 + $0x100] sm:$0xff]  ;;  %v552_v54 = vld [vmem:[#allocation2 + $0x108] sm:$0xff]  ;;  %v521_v63 = vld [vmem:[#allocation2 + $0x10] sm:$0xff] }
  0x66   : > { %v553_v0 = vld [vmem:[#allocation2 + $0x110] sm:$0xff]  ;;  %v554_v1 = vld [vmem:[#allocation2 + $0x118] sm:$0xff]  ;;  %v523_v10 = vld [vmem:[#allocation2 + $0x20] sm:$0xff] }
  0x67   : > { %1957 = vmatpush1.bf16.msra.mxu0 %v1956_v7  ;;  %2043 = vmatpush1.bf16.msra.mxu1 %v1956_v7  ;;  %v555_v11 = vld [vmem:[#allocation2 + $0x120] sm:$0xff]  ;;  %v524_v12 = vld [vmem:[#allocation2 + $0x28] sm:$0xff] }
  0x68   : > { %1959 = vmatprep.subr.bf16.mxu0 %v1958_v8  ;;  %2036 = vmatprep.subr.bf16.mxu1 %v1958_v8 }
  0x6b   : > { %1961 = vmatpush1.bf16.msra.mxu0 %v1960_v13  ;;  %2044 = vmatpush1.bf16.msra.mxu1 %v1960_v13  ;;  %v556_v13 = vld [vmem:[#allocation2 + $0x128] sm:$0xff] }
  0x6c   : > { %1963 = vmatprep.subr.bf16.mxu0 %v1962_v14  ;;  %2037 = vmatprep.subr.bf16.mxu1 %v1962_v14 }
  0x6f   : > { %1965 = vmatpush1.bf16.msra.mxu0 %v1964_v17  ;;  %2045 = vmatpush1.bf16.msra.mxu1 %v1964_v17 }
  0x72   : > { %712 = vmatmul.mubr.f32.vlgmr.msra.gmra.mrb[0].mxu0 %v583_v18  ;;  %808 = vmatmul.mubr.f32.vlgmr.msra.gmra.mrb[0].mxu1 %v599_v19 }
  0x73   : > { %717 = vmatprep.mubr.f32.mxu0 %v2164_v40  ;;  %813 = vmatprep.mubr.f32.mxu1 %v2164_v40 }
  0x76   : > { %718 = vmatmul.mubr.f32.gmra.mrb[2].mxu0 %v584_v20  ;;  %814 = vmatmul.mubr.f32.gmra.mrb[2].mxu1 %v600_v21 }
  0x77   : > { %723 = vmatprep.mubr.f32.mxu0 %v2164_v40  ;;  %819 = vmatprep.mubr.f32.mxu1 %v2164_v40 }
  0x7a   : > { %724 = vmatmul.mubr.f32.gmra.mrb[4].mxu0 %v585_v22  ;;  %820 = vmatmul.mubr.f32.gmra.mrb[4].mxu1 %v601_v23  ;;  %v525_v22 = vld [vmem:[#allocation2 + $0x30] sm:$0xff] }
  0x7b   : > { %729 = vmatprep.mubr.f32.mxu0 %v2164_v40  ;;  %825 = vmatprep.mubr.f32.mxu1 %v2164_v40  ;;  %v557_v23 = vld [vmem:[#allocation2 + $0x130] sm:$0xff] }
  0x7e   : > { %730 = vmatmul.mubr.f32.gmra.mrb[6].mxu0 %v586_v24  ;;  %826 = vmatmul.mubr.f32.gmra.mrb[6].mxu1 %v602_v25  ;;  %v526_v24 = vld [vmem:[#allocation2 + $0x38] sm:$0xff] }
  0x7f   : > { %735 = vmatprep.mubr.f32.mxu0 %v2164_v40  ;;  %831 = vmatprep.mubr.f32.mxu1 %v2164_v40  ;;  %v558_v25 = vld [vmem:[#allocation2 + $0x138] sm:$0xff] }
  0x82   : > { %736 = vmatmul.mubr.f32.gmra.mrb[8].mxu0 %v587_v26  ;;  %832 = vmatmul.mubr.f32.gmra.mrb[8].mxu1 %v603_v27 }
  0x83   : > { %741 = vmatprep.mubr.f32.mxu0 %v2164_v40  ;;  %837 = vmatprep.mubr.f32.mxu1 %v2164_v40 }
  0x86   : > { %742 = vmatmul.mubr.f32.gmra.mrb[10].mxu0 %v588_v28  ;;  %838 = vmatmul.mubr.f32.gmra.mrb[10].mxu1 %v604_v29 }
  0x87   : > { %747 = vmatprep.mubr.f32.mxu0 %v2164_v40  ;;  %843 = vmatprep.mubr.f32.mxu1 %v2164_v40 }
  0x8a   : > { %748 = vmatmul.mubr.f32.gmra.mrb[12].mxu0 %v589_v30  ;;  %844 = vmatmul.mubr.f32.gmra.mrb[12].mxu1 %v605_v31 }
  0x8b   : > { %753 = vmatprep.mubr.f32.mxu0 %v2164_v40  ;;  %849 = vmatprep.mubr.f32.mxu1 %v2164_v40 }
  0x8e   : > { %754 = vmatmul.mubr.f32.gmra.mrb[14].mxu0 %v590_v32  ;;  %850 = vmatmul.mubr.f32.gmra.mrb[14].mxu1 %v606_v33 }
  0x8f   : > { %759 = vmatprep.mubr.f32.mxu0 %v2164_v40  ;;  %855 = vmatprep.mubr.f32.mxu1 %v2164_v40 }
  0x92   : > { %760 = vmatmul.mubr.f32.gmra.mrb[16].mxu0 %v591_v34  ;;  %856 = vmatmul.mubr.f32.gmra.mrb[16].mxu1 %v607_v35  ;;  %v527_v34 = vld [vmem:[#allocation2 + $0x40] sm:$0xff] }
  0x93   : > { %765 = vmatprep.mubr.f32.mxu0 %v2164_v40  ;;  %861 = vmatprep.mubr.f32.mxu1 %v2164_v40  ;;  %v559_v35 = vld [vmem:[#allocation2 + $0x140] sm:$0xff] }
  0x96   : > { %766 = vmatmul.mubr.f32.gmra.mrb[18].mxu0 %v592_v36  ;;  %862 = vmatmul.mubr.f32.gmra.mrb[18].mxu1 %v608_v37  ;;  %v528_v36 = vld [vmem:[#allocation2 + $0x48] sm:$0xff] }
  0x97   : > { %771 = vmatprep.mubr.f32.mxu0 %v2164_v40  ;;  %867 = vmatprep.mubr.f32.mxu1 %v2164_v40  ;;  %v560_v37 = vld [vmem:[#allocation2 + $0x148] sm:$0xff] }
  0x9a   : > { %772 = vmatmul.mubr.f32.gmra.mrb[20].mxu0 %v593_v38  ;;  %868 = vmatmul.mubr.f32.gmra.mrb[20].mxu1 %v609_v39 }
  0x9b   : > { %777 = vmatprep.mubr.f32.mxu0 %v2164_v40  ;;  %873 = vmatprep.mubr.f32.mxu1 %v2164_v40 }
  0x9e   : > { %778 = vmatmul.mubr.f32.gmra.mrb[22].mxu0 %v594_v41  ;;  %874 = vmatmul.mubr.f32.gmra.mrb[22].mxu1 %v610_v42 }
  0x9f   : > { %783 = vmatprep.mubr.f32.mxu0 %v2164_v40  ;;  %879 = vmatprep.mubr.f32.mxu1 %v2164_v40 }
  0xa2   : > { %784 = vmatmul.mubr.f32.gmra.mrb[24].mxu0 %v595_v43  ;;  %880 = vmatmul.mubr.f32.gmra.mrb[24].mxu1 %v611_v44 }
  0xa3   : > { %789 = vmatprep.mubr.f32.mxu0 %v2164_v40  ;;  %885 = vmatprep.mubr.f32.mxu1 %v2164_v40 }
  0xa6   : > { %790 = vmatmul.mubr.f32.gmra.mrb[26].mxu0 %v596_v45  ;;  %886 = vmatmul.mubr.f32.gmra.mrb[26].mxu1 %v612_v46 }
  0xa7   : > { %795 = vmatprep.mubr.f32.mxu0 %v2164_v40  ;;  %891 = vmatprep.mubr.f32.mxu1 %v2164_v40 }
  0xaa   : > { %796 = vmatmul.mubr.f32.gmra.mrb[28].mxu0 %v597_v47  ;;  %892 = vmatmul.mubr.f32.gmra.mrb[28].mxu1 %v613_v48  ;;  %v529_v47 = vld [vmem:[#allocation2 + $0x50] sm:$0xff] }
  0xab   : > { %801 = vmatprep.mubr.f32.mxu0 %v2164_v40  ;;  %897 = vmatprep.mubr.f32.mxu1 %v2164_v40  ;;  %v522_v40 = vld [vmem:[#allocation2 + $0x18] sm:$0xff]  ;;  %v561_v48 = vld [vmem:[#allocation2 + $0x150] sm:$0xff] }
  0xae   : > { %802 = vmatmul.mubr.f32.gmra.mrb[30].mxu0 %v598_v49  ;;  %898 = vmatmul.mubr.f32.gmra.mrb[30].mxu1 %v614_v50  ;;  %v530_v49 = vld [vmem:[#allocation2 + $0x58] sm:$0xff] }
  0xaf   : > { %v562_v50 = vld [vmem:[#allocation2 + $0x158] sm:$0xff] }
 0x145   : > { %v713_v55 = vpop.f32.mrb[0].mxu0  ;;  %v809_v56 = vpop.f32.mrb[0].mxu1 }
 0x146   : > { %v904_v57 = vadd.f32 %v713_v55, %v519_v51  ;;  %v936_v58 = vadd.f32 %v809_v56, %v551_v52  ;;  %v715_v59 = vpop.f32.mrb[1].mxu0  ;;  %v811_v60 = vpop.f32.mrb[1].mxu1 }
 0x147   : > { %v905_v61 = vadd.f32 %v715_v59, %v520_v53  ;;  %v937_v62 = vadd.f32 %v811_v60, %v552_v54  ;;  %v531_v59 = vld [vmem:[#allocation2 + $0x60] sm:$0xff] }
 0x148   : > { %968 = vst [vmem:[#allocation2] sm:$0xff] %v904_v57  ;;  %1000 = vst [vmem:[#allocation2 + $0x100] sm:$0xff] %v936_v58  ;;  %v563_v60 = vld [vmem:[#allocation2 + $0x160] sm:$0xff] }
 0x149   : > { %969 = vst [vmem:[#allocation2 + $0x8] sm:$0xff] %v905_v61  ;;  %1001 = vst [vmem:[#allocation2 + $0x108] sm:$0xff] %v937_v62  ;;  %v719_v2 = vpop.f32.mrb[2].mxu0  ;;  %v815_v3 = vpop.f32.mrb[2].mxu1  ;;  %v532_v61 = vld [vmem:[#allocation2 + $0x68] sm:$0xff] }
 0x14a   : > { %v906_v4 = vadd.f32 %v719_v2, %v521_v63  ;;  %v938_v5 = vadd.f32 %v815_v3, %v553_v0  ;;  %v721_v6 = vpop.f32.mrb[3].mxu0  ;;  %v817_v7 = vpop.f32.mrb[3].mxu1  ;;  %v564_v62 = vld [vmem:[#allocation2 + $0x168] sm:$0xff] }
 0x14b   : > { %v907_v8 = vadd.f32 %v721_v6, %v522_v40  ;;  %v939_v9 = vadd.f32 %v817_v7, %v554_v1  ;;  %v533_v6 = vld [vmem:[#allocation2 + $0x70] sm:$0xff] }
 0x14c   : > { %970 = vst [vmem:[#allocation2 + $0x10] sm:$0xff] %v906_v4  ;;  %1002 = vst [vmem:[#allocation2 + $0x110] sm:$0xff] %v938_v5  ;;  %v565_v7 = vld [vmem:[#allocation2 + $0x170] sm:$0xff] }
 0x14d   : > { %971 = vst [vmem:[#allocation2 + $0x18] sm:$0xff] %v907_v8  ;;  %1003 = vst [vmem:[#allocation2 + $0x118] sm:$0xff] %v939_v9  ;;  %v725_v14 = vpop.f32.mrb[4].mxu0  ;;  %v821_v15 = vpop.f32.mrb[4].mxu1  ;;  %v534_v8 = vld [vmem:[#allocation2 + $0x78] sm:$0xff] }
 0x14e   : > { %v908_v16 = vadd.f32 %v725_v14, %v523_v10  ;;  %v940_v17 = vadd.f32 %v821_v15, %v555_v11  ;;  %v727_v18 = vpop.f32.mrb[5].mxu0  ;;  %v823_v19 = vpop.f32.mrb[5].mxu1  ;;  %v566_v9 = vld [vmem:[#allocation2 + $0x178] sm:$0xff] }
 0x14f   : > { %v909_v20 = vadd.f32 %v727_v18, %v524_v12  ;;  %v941_v21 = vadd.f32 %v823_v19, %v556_v13  ;;  %v535_v18 = vld [vmem:[#allocation2 + $0x80] sm:$0xff] }
 0x150   : > { %972 = vst [vmem:[#allocation2 + $0x20] sm:$0xff] %v908_v16  ;;  %1004 = vst [vmem:[#allocation2 + $0x120] sm:$0xff] %v940_v17  ;;  %v567_v19 = vld [vmem:[#allocation2 + $0x180] sm:$0xff] }
 0x151   : > { %973 = vst [vmem:[#allocation2 + $0x28] sm:$0xff] %v909_v20  ;;  %1005 = vst [vmem:[#allocation2 + $0x128] sm:$0xff] %v941_v21  ;;  %v731_v26 = vpop.f32.mrb[6].mxu0  ;;  %v827_v27 = vpop.f32.mrb[6].mxu1  ;;  %v536_v20 = vld [vmem:[#allocation2 + $0x88] sm:$0xff] }
 0x152   : > { %v910_v28 = vadd.f32 %v731_v26, %v525_v22  ;;  %v942_v29 = vadd.f32 %v827_v27, %v557_v23  ;;  %v733_v30 = vpop.f32.mrb[7].mxu0  ;;  %v829_v31 = vpop.f32.mrb[7].mxu1  ;;  %v568_v21 = vld [vmem:[#allocation2 + $0x188] sm:$0xff] }
 0x153   : > { %v911_v32 = vadd.f32 %v733_v30, %v526_v24  ;;  %v943_v33 = vadd.f32 %v829_v31, %v558_v25  ;;  %v537_v30 = vld [vmem:[#allocation2 + $0x90] sm:$0xff] }
 0x154   : > { %974 = vst [vmem:[#allocation2 + $0x30] sm:$0xff] %v910_v28  ;;  %1006 = vst [vmem:[#allocation2 + $0x130] sm:$0xff] %v942_v29  ;;  %v569_v31 = vld [vmem:[#allocation2 + $0x190] sm:$0xff] }
 0x155   : > { %975 = vst [vmem:[#allocation2 + $0x38] sm:$0xff] %v911_v32  ;;  %1007 = vst [vmem:[#allocation2 + $0x138] sm:$0xff] %v943_v33  ;;  %v737_v38 = vpop.f32.mrb[8].mxu0  ;;  %v833_v39 = vpop.f32.mrb[8].mxu1  ;;  %v538_v32 = vld [vmem:[#allocation2 + $0x98] sm:$0xff] }
 0x156   : > { %v912_v41 = vadd.f32 %v737_v38, %v527_v34  ;;  %v944_v42 = vadd.f32 %v833_v39, %v559_v35  ;;  %v739_v43 = vpop.f32.mrb[9].mxu0  ;;  %v835_v44 = vpop.f32.mrb[9].mxu1  ;;  %v570_v33 = vld [vmem:[#allocation2 + $0x198] sm:$0xff] }
 0x157   : > { %v913_v45 = vadd.f32 %v739_v43, %v528_v36  ;;  %v945_v46 = vadd.f32 %v835_v44, %v560_v37  ;;  %v539_v43 = vld [vmem:[#allocation2 + $0xa0] sm:$0xff] }
 0x158   : > { %976 = vst [vmem:[#allocation2 + $0x40] sm:$0xff] %v912_v41  ;;  %1008 = vst [vmem:[#allocation2 + $0x140] sm:$0xff] %v944_v42  ;;  %v571_v44 = vld [vmem:[#allocation2 + $0x1a0] sm:$0xff] }
 0x159   : > { %977 = vst [vmem:[#allocation2 + $0x48] sm:$0xff] %v913_v45  ;;  %1009 = vst [vmem:[#allocation2 + $0x148] sm:$0xff] %v945_v46  ;;  %v743_v51 = vpop.f32.mrb[10].mxu0  ;;  %v839_v52 = vpop.f32.mrb[10].mxu1  ;;  %v540_v45 = vld [vmem:[#allocation2 + $0xa8] sm:$0xff] }
 0x15a   : > { %v914_v53 = vadd.f32 %v743_v51, %v529_v47  ;;  %v946_v54 = vadd.f32 %v839_v52, %v561_v48  ;;  %v745_v55 = vpop.f32.mrb[11].mxu0  ;;  %v841_v56 = vpop.f32.mrb[11].mxu1  ;;  %v572_v46 = vld [vmem:[#allocation2 + $0x1a8] sm:$0xff] }
 0x15b   : > { %v915_v57 = vadd.f32 %v745_v55, %v530_v49  ;;  %v947_v58 = vadd.f32 %v841_v56, %v562_v50  ;;  %v541_v55 = vld [vmem:[#allocation2 + $0xb0] sm:$0xff] }
 0x15c   : > { %978 = vst [vmem:[#allocation2 + $0x50] sm:$0xff] %v914_v53  ;;  %1010 = vst [vmem:[#allocation2 + $0x150] sm:$0xff] %v946_v54  ;;  %v573_v56 = vld [vmem:[#allocation2 + $0x1b0] sm:$0xff] }
 0x15d   : > { %979 = vst [vmem:[#allocation2 + $0x58] sm:$0xff] %v915_v57  ;;  %1011 = vst [vmem:[#allocation2 + $0x158] sm:$0xff] %v947_v58  ;;  %v749_v63 = vpop.f32.mrb[12].mxu0  ;;  %v845_v0 = vpop.f32.mrb[12].mxu1  ;;  %v542_v57 = vld [vmem:[#allocation2 + $0xb8] sm:$0xff] }
 0x15e   : > { %v916_v40 = vadd.f32 %v749_v63, %v531_v59  ;;  %v948_v1 = vadd.f32 %v845_v0, %v563_v60  ;;  %v751_v2 = vpop.f32.mrb[13].mxu0  ;;  %v847_v3 = vpop.f32.mrb[13].mxu1  ;;  %v574_v58 = vld [vmem:[#allocation2 + $0x1b8] sm:$0xff] }
 0x15f   : > { %v917_v4 = vadd.f32 %v751_v2, %v532_v61  ;;  %v949_v5 = vadd.f32 %v847_v3, %v564_v62  ;;  %v543_v2 = vld [vmem:[#allocation2 + $0xc0] sm:$0xff] }
 0x160   : > { %980 = vst [vmem:[#allocation2 + $0x60] sm:$0xff] %v916_v40  ;;  %1012 = vst [vmem:[#allocation2 + $0x160] sm:$0xff] %v948_v1  ;;  %v575_v3 = vld [vmem:[#allocation2 + $0x1c0] sm:$0xff] }
 0x161   : > { %981 = vst [vmem:[#allocation2 + $0x68] sm:$0xff] %v917_v4  ;;  %1013 = vst [vmem:[#allocation2 + $0x168] sm:$0xff] %v949_v5  ;;  %v755_v10 = vpop.f32.mrb[14].mxu0  ;;  %v851_v11 = vpop.f32.mrb[14].mxu1  ;;  %v544_v4 = vld [vmem:[#allocation2 + $0xc8] sm:$0xff] }
 0x162   : > { %v918_v12 = vadd.f32 %v755_v10, %v533_v6  ;;  %v950_v13 = vadd.f32 %v851_v11, %v565_v7  ;;  %v757_v14 = vpop.f32.mrb[15].mxu0  ;;  %v853_v15 = vpop.f32.mrb[15].mxu1  ;;  %v576_v5 = vld [vmem:[#allocation2 + $0x1c8] sm:$0xff] }
 0x163   : > { %v919_v16 = vadd.f32 %v757_v14, %v534_v8  ;;  %v951_v17 = vadd.f32 %v853_v15, %v566_v9  ;;  %v545_v14 = vld [vmem:[#allocation2 + $0xd0] sm:$0xff] }
 0x164   : > { %982 = vst [vmem:[#allocation2 + $0x70] sm:$0xff] %v918_v12  ;;  %1014 = vst [vmem:[#allocation2 + $0x170] sm:$0xff] %v950_v13  ;;  %v577_v15 = vld [vmem:[#allocation2 + $0x1d0] sm:$0xff] }
 0x165   : > { %983 = vst [vmem:[#allocation2 + $0x78] sm:$0xff] %v919_v16  ;;  %1015 = vst [vmem:[#allocation2 + $0x178] sm:$0xff] %v951_v17  ;;  %v761_v22 = vpop.f32.mrb[16].mxu0  ;;  %v857_v23 = vpop.f32.mrb[16].mxu1  ;;  %v546_v16 = vld [vmem:[#allocation2 + $0xd8] sm:$0xff] }
 0x166   : > { %v920_v24 = vadd.f32 %v761_v22, %v535_v18  ;;  %v952_v25 = vadd.f32 %v857_v23, %v567_v19  ;;  %v763_v26 = vpop.f32.mrb[17].mxu0  ;;  %v859_v27 = vpop.f32.mrb[17].mxu1  ;;  %v578_v17 = vld [vmem:[#allocation2 + $0x1d8] sm:$0xff] }
 0x167   : > { %v921_v28 = vadd.f32 %v763_v26, %v536_v20  ;;  %v953_v29 = vadd.f32 %v859_v27, %v568_v21  ;;  %v547_v26 = vld [vmem:[#allocation2 + $0xe0] sm:$0xff] }
 0x168   : > { %984 = vst [vmem:[#allocation2 + $0x80] sm:$0xff] %v920_v24  ;;  %1016 = vst [vmem:[#allocation2 + $0x180] sm:$0xff] %v952_v25  ;;  %v579_v27 = vld [vmem:[#allocation2 + $0x1e0] sm:$0xff] }
 0x169   : > { %985 = vst [vmem:[#allocation2 + $0x88] sm:$0xff] %v921_v28  ;;  %1017 = vst [vmem:[#allocation2 + $0x188] sm:$0xff] %v953_v29  ;;  %v767_v34 = vpop.f32.mrb[18].mxu0  ;;  %v863_v35 = vpop.f32.mrb[18].mxu1  ;;  %v548_v28 = vld [vmem:[#allocation2 + $0xe8] sm:$0xff] }
 0x16a   : > { %v922_v36 = vadd.f32 %v767_v34, %v537_v30  ;;  %v954_v37 = vadd.f32 %v863_v35, %v569_v31  ;;  %v769_v38 = vpop.f32.mrb[19].mxu0  ;;  %v865_v39 = vpop.f32.mrb[19].mxu1  ;;  %v580_v29 = vld [vmem:[#allocation2 + $0x1e8] sm:$0xff] }
 0x16b   : > { %v923_v41 = vadd.f32 %v769_v38, %v538_v32  ;;  %v955_v42 = vadd.f32 %v865_v39, %v570_v33  ;;  %v549_v38 = vld [vmem:[#allocation2 + $0xf0] sm:$0xff] }
 0x16c   : > { %986 = vst [vmem:[#allocation2 + $0x90] sm:$0xff] %v922_v36  ;;  %1018 = vst [vmem:[#allocation2 + $0x190] sm:$0xff] %v954_v37  ;;  %v581_v39 = vld [vmem:[#allocation2 + $0x1f0] sm:$0xff] }
 0x16d   : > { %987 = vst [vmem:[#allocation2 + $0x98] sm:$0xff] %v923_v41  ;;  %1019 = vst [vmem:[#allocation2 + $0x198] sm:$0xff] %v955_v42  ;;  %v773_v47 = vpop.f32.mrb[20].mxu0  ;;  %v869_v48 = vpop.f32.mrb[20].mxu1  ;;  %v550_v41 = vld [vmem:[#allocation2 + $0xf8] sm:$0xff] }
 0x16e   : > { %v924_v49 = vadd.f32 %v773_v47, %v539_v43  ;;  %v956_v50 = vadd.f32 %v869_v48, %v571_v44  ;;  %v775_v51 = vpop.f32.mrb[21].mxu0  ;;  %v871_v52 = vpop.f32.mrb[21].mxu1  ;;  %v582_v42 = vld [vmem:[#allocation2 + $0x1f8] sm:$0xff] }
 0x16f   : > { %v925_v53 = vadd.f32 %v775_v51, %v540_v45  ;;  %v957_v54 = vadd.f32 %v871_v52, %v572_v46  ;;  %v1101_v51 = vld [vmem:[%s3048_s2 + $0x8] sm:$0xff] (!%p1928_p11)  ;;  %v1100_v52 = vld [vmem:[%s3048_s2] sm:$0xff] (!%p1928_p11) }
 0x170   : > { %988 = vst [vmem:[#allocation2 + $0xa0] sm:$0xff] %v924_v49  ;;  %1020 = vst [vmem:[#allocation2 + $0x1a0] sm:$0xff] %v956_v50 }
 0x171   : > { %989 = vst [vmem:[#allocation2 + $0xa8] sm:$0xff] %v925_v53  ;;  %1021 = vst [vmem:[#allocation2 + $0x1a8] sm:$0xff] %v957_v54  ;;  %v779_v59 = vpop.f32.mrb[22].mxu0  ;;  %v875_v60 = vpop.f32.mrb[22].mxu1  ;;  %v2165_v53 = vmov (!%p1928_p11), 0   ;;  %v1117_v54 = vld [vmem:[%s3048_s2 + $0x88] sm:$0xff] (!%p1928_p11) }
 0x172   : > { %v926_v61 = vadd.f32 %v779_v59, %v541_v55  ;;  %v958_v62 = vadd.f32 %v875_v60, %v573_v56  ;;  %v781_v63 = vpop.f32.mrb[23].mxu0  ;;  %v877_v0 = vpop.f32.mrb[23].mxu1  ;;  %2122 = vset.pattern.permute.xlu1 (!%p1928_p11), %v2165_v53  ;;  %2121 = vset.pattern.permute.xlu0 (!%p1928_p11), %v2165_v53  ;;  %v1116_v55 = vld [vmem:[%s3048_s2 + $0x80] sm:$0xff] (!%p1928_p11)  ;;  %v1118_v56 = vld [vmem:[%s3048_s2 + $0x90] sm:$0xff] (!%p1928_p11)  ;;  %v1103_v59 = vld [vmem:[%s3048_s2 + $0x18] sm:$0xff] (!%p1928_p11) }
 0x173   : > { %v927_v40 = vadd.f32 %v781_v63, %v542_v57  ;;  %v959_v1 = vadd.f32 %v877_v0, %v574_v58  ;;  %1139 = vperm.xlu1 (!%p1928_p11), %2122, %v1101_v51   ;;  %1134 = vperm.xlu0 (!%p1928_p11), %2121, %v1100_v52   ;;  %v1102_v57 = vld [vmem:[%s3048_s2 + $0x10] sm:$0xff] (!%p1928_p11)  ;;  %v1119_v58 = vld [vmem:[%s3048_s2 + $0x98] sm:$0xff] (!%p1928_p11)  ;;  %v1357_v60 = vld [vmem:[%s3049_s3 + $0x8] sm:$0xff] (!%p1928_p11) }
 0x174   : > { %990 = vst [vmem:[#allocation2 + $0xb0] sm:$0xff] %v926_v61  ;;  %1022 = vst [vmem:[#allocation2 + $0x1b0] sm:$0xff] %v958_v62  ;;  %v1359_v61 = vld [vmem:[%s3049_s3 + $0x18] sm:$0xff] (!%p1928_p11)  ;;  %v1356_v62 = vld [vmem:[%s3049_s3] sm:$0xff] (!%p1928_p11) }
 0x175   : > { %991 = vst [vmem:[#allocation2 + $0xb8] sm:$0xff] %v927_v40  ;;  %1023 = vst [vmem:[#allocation2 + $0x1b8] sm:$0xff] %v959_v1  ;;  %v785_v6 = vpop.f32.mrb[24].mxu0  ;;  %v881_v7 = vpop.f32.mrb[24].mxu1  ;;  %v1358_v63 = vld [vmem:[%s3049_s3 + $0x10] sm:$0xff] (!%p1928_p11)  ;;  %v1966_v0 = vpack.c.bf16 (!%p1928_p11), %v1359_v61, %v1357_v60  ;;  %v1361_v1 = vld [vmem:[%s3049_s3 + $0x28] sm:$0xff] (!%p1928_p11) }
 0x176   : > { %v928_v8 = vadd.f32 %v785_v6, %v543_v2  ;;  %v960_v9 = vadd.f32 %v881_v7, %v575_v3  ;;  %v787_v10 = vpop.f32.mrb[25].mxu0  ;;  %v883_v11 = vpop.f32.mrb[25].mxu1  ;;  %v1968_v40 = vpack.c.bf16 (!%p1928_p11), %v1358_v63, %v1356_v62  ;;  %v1363_v2 = vld [vmem:[%s3049_s3 + $0x38] sm:$0xff] (!%p1928_p11)  ;;  %v1365_v6 = vld [vmem:[%s3049_s3 + $0x48] sm:$0xff] (!%p1928_p11)  ;;  %v1384_v53 = vld [vmem:[%s3049_s3 + $0xe0] sm:$0xff] (!%p1928_p11) }
 0x177   : > { %v929_v12 = vadd.f32 %v787_v10, %v544_v4  ;;  %v961_v13 = vadd.f32 %v883_v11, %v576_v5  ;;  %1219 = vperm.xlu1 (!%p1928_p11), %2122, %v1117_v54   ;;  %1214 = vperm.xlu0 (!%p1928_p11), %2121, %v1116_v55   ;;  %v1970_v3 = vpack.c.bf16 (!%p1928_p11), %v1363_v2, %v1361_v1  ;;  %v1360_v4 = vld [vmem:[%s3049_s3 + $0x20] sm:$0xff] (!%p1928_p11)  ;;  %v1362_v5 = vld [vmem:[%s3049_s3 + $0x30] sm:$0xff] (!%p1928_p11)  ;;  %v1367_v7 = vld [vmem:[%s3049_s3 + $0x58] sm:$0xff] (!%p1928_p11) }
 0x178   : > { %992 = vst [vmem:[#allocation2 + $0xc0] sm:$0xff] %v928_v8  ;;  %1024 = vst [vmem:[#allocation2 + $0x1c0] sm:$0xff] %v960_v9  ;;  %v1120_v8 = vld [vmem:[%s3048_s2 + $0xa0] sm:$0xff] (!%p1928_p11)  ;;  %1967 = vmatprep.subr.bf16.mxu0 (!%p1928_p11), %v1966_v0  ;;  %2046 = vmatprep.subr.bf16.mxu1 (!%p1928_p11), %v1966_v0  ;;  %v1972_v10 = vpack.c.bf16 (!%p1928_p11), %v1362_v5, %v1360_v4  ;;  %v1974_v11 = vpack.c.bf16 (!%p1928_p11), %v1367_v7, %v1365_v6  ;;  %v1386_v54 = vld [vmem:[%s3049_s3 + $0xf0] sm:$0xff] (!%p1928_p11) }
 0x179   : > { %993 = vst [vmem:[#allocation2 + $0xc8] sm:$0xff] %v929_v12  ;;  %1025 = vst [vmem:[#allocation2 + $0x1c8] sm:$0xff] %v961_v13  ;;  %v791_v18 = vpop.f32.mrb[26].mxu0  ;;  %v887_v19 = vpop.f32.mrb[26].mxu1  ;;  %v1104_v9 = vld [vmem:[%s3048_s2 + $0x20] sm:$0xff] (!%p1928_p11)  ;;  %1969 = vmatpush1.bf16.msra.mxu0 (!%p1928_p11), %v1968_v40  ;;  %2062 = vmatpush1.bf16.msra.mxu1 (!%p1928_p11), %v1968_v40  ;;  %v1366_v13 = vld [vmem:[%s3049_s3 + $0x50] sm:$0xff] (!%p1928_p11) }
 0x17a   : > { %v930_v20 = vadd.f32 %v791_v18, %v545_v14  ;;  %v962_v21 = vadd.f32 %v887_v19, %v577_v15  ;;  %v793_v22 = vpop.f32.mrb[27].mxu0  ;;  %v889_v23 = vpop.f32.mrb[27].mxu1  ;;  %1971 = vmatprep.subr.bf16.mxu0 (!%p1928_p11), %v1970_v3  ;;  %2047 = vmatprep.subr.bf16.mxu1 (!%p1928_p11), %v1970_v3  ;;  %v1364_v12 = vld [vmem:[%s3049_s3 + $0x40] sm:$0xff] (!%p1928_p11)  ;;  %v1369_v14 = vld [vmem:[%s3049_s3 + $0x68] sm:$0xff] (!%p1928_p11)  ;;  %v1371_v15 = vld [vmem:[%s3049_s3 + $0x78] sm:$0xff] (!%p1928_p11) }
 0x17b   : > { %v931_v24 = vadd.f32 %v793_v22, %v546_v16  ;;  %v963_v25 = vadd.f32 %v889_v23, %v578_v17  ;;  %1224 = vperm.xlu1 (!%p1928_p11), %2122, %v1118_v56   ;;  %1144 = vperm.xlu0 (!%p1928_p11), %2121, %v1102_v57   ;;  %v1121_v16 = vld [vmem:[%s3048_s2 + $0xa8] sm:$0xff] (!%p1928_p11)  ;;  %v1976_v18 = vpack.c.bf16 (!%p1928_p11), %v1366_v13, %v1364_v12  ;;  %v1375_v23 = vld [vmem:[%s3049_s3 + $0x98] sm:$0xff] (!%p1928_p11)  ;;  %v1126_v57 = vld [vmem:[%s3048_s2 + $0xd0] sm:$0xff] (!%p1928_p11) }
 0x17c   : > { %994 = vst [vmem:[#allocation2 + $0xd0] sm:$0xff] %v930_v20  ;;  %1026 = vst [vmem:[#allocation2 + $0x1d0] sm:$0xff] %v962_v21  ;;  %v1105_v17 = vld [vmem:[%s3048_s2 + $0x28] sm:$0xff] (!%p1928_p11)  ;;  %v1978_v19 = vpack.c.bf16 (!%p1928_p11), %v1371_v15, %v1369_v14  ;;  %v1368_v20 = vld [vmem:[%s3049_s3 + $0x60] sm:$0xff] (!%p1928_p11) }
 0x17d   : > { %995 = vst [vmem:[#allocation2 + $0xd8] sm:$0xff] %v931_v24  ;;  %1027 = vst [vmem:[#allocation2 + $0x1d8] sm:$0xff] %v963_v25  ;;  %v797_v30 = vpop.f32.mrb[28].mxu0  ;;  %v893_v31 = vpop.f32.mrb[28].mxu1  ;;  %1973 = vmatpush1.bf16.msra.mxu0 (!%p1928_p11), %v1972_v10  ;;  %2063 = vmatpush1.bf16.msra.mxu1 (!%p1928_p11), %v1972_v10  ;;  %v1370_v21 = vld [vmem:[%s3049_s3 + $0x70] sm:$0xff] (!%p1928_p11)  ;;  %v1373_v22 = vld [vmem:[%s3049_s3 + $0x88] sm:$0xff] (!%p1928_p11) }
 0x17e   : > { %v932_v32 = vadd.f32 %v797_v30, %v547_v26  ;;  %v964_v33 = vadd.f32 %v893_v31, %v579_v27  ;;  %v799_v34 = vpop.f32.mrb[29].mxu0  ;;  %v895_v35 = vpop.f32.mrb[29].mxu1  ;;  %1975 = vmatprep.subr.bf16.mxu0 (!%p1928_p11), %v1974_v11  ;;  %2048 = vmatprep.subr.bf16.mxu1 (!%p1928_p11), %v1974_v11  ;;  %v1122_v24 = vld [vmem:[%s3048_s2 + $0xb0] sm:$0xff] (!%p1928_p11)  ;;  %v1980_v26 = vpack.c.bf16 (!%p1928_p11), %v1370_v21, %v1368_v20  ;;  %v1377_v30 = vld [vmem:[%s3049_s3 + $0xa8] sm:$0xff] (!%p1928_p11)  ;;  %v1379_v31 = vld [vmem:[%s3049_s3 + $0xb8] sm:$0xff] (!%p1928_p11) }
 0x17f   : > { %v933_v36 = vadd.f32 %v799_v34, %v548_v28  ;;  %v965_v37 = vadd.f32 %v895_v35, %v580_v29  ;;  %1035 = sbr.rel (%p1928_p11) target bundleno = 784 (0x310), region = 86  ;;  %1229 = vperm.xlu1 (!%p1928_p11), %2122, %v1119_v58   ;;  %1149 = vperm.xlu0 (!%p1928_p11), %2121, %v1103_v59   ;;  %v1106_v25 = vld [vmem:[%s3048_s2 + $0x30] sm:$0xff] (!%p1928_p11)  ;;  %v1982_v27 = vpack.c.bf16 (!%p1928_p11), %v1375_v23, %v1373_v22  ;;  %v1372_v28 = vld [vmem:[%s3049_s3 + $0x80] sm:$0xff] (!%p1928_p11)  ;;  %v1389_v55 = vld [vmem:[%s3049_s3 + $0x108] sm:$0xff] (!%p1928_p11) }
 0x180   : > { %996 = vst [vmem:[#allocation2 + $0xe0] sm:$0xff] %v932_v32  ;;  %1028 = vst [vmem:[#allocation2 + $0x1e0] sm:$0xff] %v964_v33  ;;  %v1374_v29 = vld [vmem:[%s3049_s3 + $0x90] sm:$0xff] (!%p1928_p11)  ;;  %v1123_v32 = vld [vmem:[%s3048_s2 + $0xb8] sm:$0xff] (!%p1928_p11)  ;;  %v1986_v35 = vpack.c.bf16 (!%p1928_p11), %v1379_v31, %v1377_v30  ;;  %v1996_v59 = vpack.c.bf16 (!%p1928_p11), %v1386_v54, %v1384_v53 }
 0x181   : > { %997 = vst [vmem:[#allocation2 + $0xe8] sm:$0xff] %v933_v36  ;;  %1029 = vst [vmem:[#allocation2 + $0x1e8] sm:$0xff] %v965_v37  ;;  %v803_v43 = vpop.f32.mrb[30].mxu0  ;;  %v899_v44 = vpop.f32.mrb[30].mxu1  ;;  %1977 = vmatpush1.bf16.msra.mxu0 (!%p1928_p11), %v1976_v18  ;;  %2064 = vmatpush1.bf16.msra.mxu1 (!%p1928_p11), %v1976_v18  ;;  %v1107_v33 = vld [vmem:[%s3048_s2 + $0x38] sm:$0xff] (!%p1928_p11)  ;;  %v1984_v34 = vpack.c.bf16 (!%p1928_p11), %v1374_v29, %v1372_v28  ;;  %v1376_v36 = vld [vmem:[%s3049_s3 + $0xa0] sm:$0xff] (!%p1928_p11) }
 0x182   : > { %v934_v45 = vadd.f32 %v803_v43, %v549_v38  ;;  %v966_v46 = vadd.f32 %v899_v44, %v581_v39  ;;  %v805_v47 = vpop.f32.mrb[31].mxu0  ;;  %v901_v48 = vpop.f32.mrb[31].mxu1  ;;  %1979 = vmatprep.subr.bf16.mxu0 (!%p1928_p11), %v1978_v19  ;;  %2049 = vmatprep.subr.bf16.mxu1 (!%p1928_p11), %v1978_v19  ;;  %v1378_v37 = vld [vmem:[%s3049_s3 + $0xb0] sm:$0xff] (!%p1928_p11)  ;;  %v1381_v38 = vld [vmem:[%s3049_s3 + $0xc8] sm:$0xff] (!%p1928_p11)  ;;  %v1383_v39 = vld [vmem:[%s3049_s3 + $0xd8] sm:$0xff] (!%p1928_p11) }
 0x183   : > { %v935_v49 = vadd.f32 %v805_v47, %v550_v41  ;;  %v967_v50 = vadd.f32 %v901_v48, %v582_v42  ;;  %1234 = vperm.xlu1 (!%p1928_p11), %2122, %v1120_v8   ;;  %1154 = vperm.xlu0 (!%p1928_p11), %2121, %v1104_v9   ;;  %v1124_v41 = vld [vmem:[%s3048_s2 + $0xc0] sm:$0xff] (!%p1928_p11)  ;;  %v1988_v43 = vpack.c.bf16 (!%p1928_p11), %v1378_v37, %v1376_v36  ;;  %v1385_v47 = vld [vmem:[%s3049_s3 + $0xe8] sm:$0xff] (!%p1928_p11)  ;;  %v1387_v48 = vld [vmem:[%s3049_s3 + $0xf8] sm:$0xff] (!%p1928_p11) }
 0x184   : > { %998 = vst [vmem:[#allocation2 + $0xf0] sm:$0xff] %v934_v45  ;;  %1030 = vst [vmem:[#allocation2 + $0x1f0] sm:$0xff] %v966_v46  ;;  %v1108_v42 = vld [vmem:[%s3048_s2 + $0x40] sm:$0xff] (!%p1928_p11)  ;;  %v1990_v44 = vpack.c.bf16 (!%p1928_p11), %v1383_v39, %v1381_v38  ;;  %v1382_v46 = vld [vmem:[%s3049_s3 + $0xd0] sm:$0xff] (!%p1928_p11)  ;;  %v1994_v52 = vpack.c.bf16 (!%p1928_p11), %v1387_v48, %v1385_v47 }
 0x185   : > { %999 = vst [vmem:[#allocation2 + $0xf8] sm:$0xff] %v935_v49  ;;  %1031 = vst [vmem:[#allocation2 + $0x1f8] sm:$0xff] %v967_v50  ;;  %1981 = vmatpush1.bf16.msra.mxu0 (!%p1928_p11), %v1980_v26  ;;  %2065 = vmatpush1.bf16.msra.mxu1 (!%p1928_p11), %v1980_v26  ;;  %v1380_v45 = vld [vmem:[%s3049_s3 + $0xc0] sm:$0xff] (!%p1928_p11)  ;;  %v1125_v49 = vld [vmem:[%s3048_s2 + $0xc8] sm:$0xff] (!%p1928_p11) }
 0x186   : > { %1983 = vmatprep.subr.bf16.mxu0 %v1982_v27  ;;  %2050 = vmatprep.subr.bf16.mxu1 %v1982_v27  ;;  %v1109_v50 = vld [vmem:[%s3048_s2 + $0x48] sm:$0xff]  ;;  %v1992_v51 = vpack.c.bf16 %v1382_v46, %v1380_v45  ;;  %v1391_v56 = vld [vmem:[%s3049_s3 + $0x118] sm:$0xff]  ;;  %v1110_v58 = vld [vmem:[%s3048_s2 + $0x50] sm:$0xff] }
 0x187   : > { %1239 = vperm.xlu1 %2122, %v1121_v16   ;;  %1159 = vperm.xlu0 %2121, %v1105_v17   ;;  %v1998_v60 = vpack.c.bf16 %v1391_v56, %v1389_v55  ;;  %v1388_v61 = vld [vmem:[%s3049_s3 + $0x100] sm:$0xff]  ;;  %v1390_v62 = vld [vmem:[%s3049_s3 + $0x110] sm:$0xff]  ;;  %v1393_v63 = vld [vmem:[%s3049_s3 + $0x128] sm:$0xff] }
 0x188   : > { %v1395_v0 = vld [vmem:[%s3049_s3 + $0x138] sm:$0xff]  ;;  %v2000_v2 = vpack.c.bf16 %v1390_v62, %v1388_v61  ;;  %v1392_v4 = vld [vmem:[%s3049_s3 + $0x120] sm:$0xff]  ;;  %v1394_v5 = vld [vmem:[%s3049_s3 + $0x130] sm:$0xff] }
 0x189   : > { %1985 = vmatpush1.bf16.msra.mxu0 %v1984_v34  ;;  %2066 = vmatpush1.bf16.msra.mxu1 %v1984_v34  ;;  %v1127_v40 = vld [vmem:[%s3048_s2 + $0xd8] sm:$0xff]  ;;  %v2002_v3 = vpack.c.bf16 %v1395_v0, %v1393_v63  ;;  %v1397_v6 = vld [vmem:[%s3049_s3 + $0x148] sm:$0xff]  ;;  %v1128_v8 = vld [vmem:[%s3048_s2 + $0xe0] sm:$0xff]  ;;  %v2004_v10 = vpack.c.bf16 %v1394_v5, %v1392_v4 }
 0x18a   : > { %1987 = vmatprep.subr.bf16.mxu0 %v1986_v35  ;;  %2051 = vmatprep.subr.bf16.mxu1 %v1986_v35  ;;  %v1111_v1 = vld [vmem:[%s3048_s2 + $0x58] sm:$0xff]  ;;  %v1112_v9 = vld [vmem:[%s3048_s2 + $0x60] sm:$0xff]  ;;  %v1398_v13 = vld [vmem:[%s3049_s3 + $0x150] sm:$0xff] }
 0x18b   : > { %1244 = vperm.xlu1 %2122, %v1122_v24   ;;  %1164 = vperm.xlu0 %2121, %v1106_v25   ;;  %v1399_v7 = vld [vmem:[%s3049_s3 + $0x158] sm:$0xff]  ;;  %v1396_v12 = vld [vmem:[%s3049_s3 + $0x140] sm:$0xff]  ;;  %v1401_v14 = vld [vmem:[%s3049_s3 + $0x168] sm:$0xff] }
 0x18c   : > { %v2006_v11 = vpack.c.bf16 %v1399_v7, %v1397_v6  ;;  %v1403_v15 = vld [vmem:[%s3049_s3 + $0x178] sm:$0xff]  ;;  %v1129_v16 = vld [vmem:[%s3048_s2 + $0xe8] sm:$0xff]  ;;  %v2008_v18 = vpack.c.bf16 %v1398_v13, %v1396_v12  ;;  %v1400_v20 = vld [vmem:[%s3049_s3 + $0x160] sm:$0xff] }
 0x18d   : > { %1989 = vmatpush1.bf16.msra.mxu0 %v1988_v43  ;;  %2067 = vmatpush1.bf16.msra.mxu1 %v1988_v43  ;;  %v1113_v17 = vld [vmem:[%s3048_s2 + $0x68] sm:$0xff]  ;;  %v2010_v19 = vpack.c.bf16 %v1403_v15, %v1401_v14  ;;  %v1402_v21 = vld [vmem:[%s3049_s3 + $0x170] sm:$0xff]  ;;  %v1407_v23 = vld [vmem:[%s3049_s3 + $0x198] sm:$0xff] }
 0x18e   : > { %1991 = vmatprep.subr.bf16.mxu0 %v1990_v44  ;;  %2052 = vmatprep.subr.bf16.mxu1 %v1990_v44  ;;  %v1405_v22 = vld [vmem:[%s3049_s3 + $0x188] sm:$0xff]  ;;  %v1130_v24 = vld [vmem:[%s3048_s2 + $0xf0] sm:$0xff]  ;;  %v2012_v26 = vpack.c.bf16 %v1402_v21, %v1400_v20  ;;  %v1404_v28 = vld [vmem:[%s3049_s3 + $0x180] sm:$0xff] }
 0x18f   : > { %1249 = vperm.xlu1 %2122, %v1123_v32   ;;  %1169 = vperm.xlu0 %2121, %v1107_v33   ;;  %v1114_v25 = vld [vmem:[%s3048_s2 + $0x70] sm:$0xff]  ;;  %v2014_v27 = vpack.c.bf16 %v1407_v23, %v1405_v22  ;;  %v1409_v30 = vld [vmem:[%s3049_s3 + $0x1a8] sm:$0xff]  ;;  %v1411_v31 = vld [vmem:[%s3049_s3 + $0x1b8] sm:$0xff] }
 0x190   : > { %v1406_v29 = vld [vmem:[%s3049_s3 + $0x190] sm:$0xff]  ;;  %v1131_v32 = vld [vmem:[%s3048_s2 + $0xf8] sm:$0xff]  ;;  %v2018_v35 = vpack.c.bf16 %v1411_v31, %v1409_v30  ;;  %v1408_v36 = vld [vmem:[%s3049_s3 + $0x1a0] sm:$0xff] }
 0x191   : > { %1993 = vmatpush1.bf16.msra.mxu0 %v1992_v51  ;;  %2068 = vmatpush1.bf16.msra.mxu1 %v1992_v51  ;;  %v1115_v33 = vld [vmem:[%s3048_s2 + $0x78] sm:$0xff]  ;;  %v2016_v34 = vpack.c.bf16 %v1406_v29, %v1404_v28  ;;  %v1410_v37 = vld [vmem:[%s3049_s3 + $0x1b0] sm:$0xff]  ;;  %v1413_v38 = vld [vmem:[%s3049_s3 + $0x1c8] sm:$0xff] }
 0x192   : > { %1995 = vmatprep.subr.bf16.mxu0 %v1994_v52  ;;  %2053 = vmatprep.subr.bf16.mxu1 %v1994_v52  ;;  %v1415_v39 = vld [vmem:[%s3049_s3 + $0x1d8] sm:$0xff]  ;;  %v1412_v43 = vld [vmem:[%s3049_s3 + $0x1c0] sm:$0xff]  ;;  %v1414_v44 = vld [vmem:[%s3049_s3 + $0x1d0] sm:$0xff] }
 0x193   : > { %1254 = vperm.xlu1 %2122, %v1124_v41   ;;  %1174 = vperm.xlu0 %2121, %v1108_v42   ;;  %v2020_v41 = vpack.c.bf16 %v1410_v37, %v1408_v36  ;;  %v2022_v42 = vpack.c.bf16 %v1415_v39, %v1413_v38  ;;  %v1417_v45 = vld [vmem:[%s3049_s3 + $0x1e8] sm:$0xff]  ;;  %v1419_v46 = vld [vmem:[%s3049_s3 + $0x1f8] sm:$0xff]  ;;  %v2024_v47 = vpack.c.bf16 %v1414_v44, %v1412_v43  ;;  %v1036_v53 = vld [vmem:[#allocation2] sm:$0xff] }
 0x194   : > { %v2026_v48 = vpack.c.bf16 %v1419_v46, %v1417_v45  ;;  %v1039_v52 = vld [vmem:[#allocation2 + $0x18] sm:$0xff]  ;;  %v1037_v54 = vld [vmem:[#allocation2 + $0x8] sm:$0xff]  ;;  %v1068_v61 = vld [vmem:[#allocation2 + $0x100] sm:$0xff] }
 0x195   : > { %1997 = vmatpush1.bf16.msra.mxu0 %v1996_v59  ;;  %2069 = vmatpush1.bf16.msra.mxu1 %v1996_v59  ;;  %v1069_v62 = vld [vmem:[#allocation2 + $0x108] sm:$0xff]  ;;  %v1040_v4 = vld [vmem:[#allocation2 + $0x20] sm:$0xff]  ;;  %v1070_v6 = vld [vmem:[#allocation2 + $0x110] sm:$0xff] }
 0x196   : > { %1999 = vmatprep.subr.bf16.mxu0 %v1998_v60  ;;  %2054 = vmatprep.subr.bf16.mxu1 %v1998_v60  ;;  %v1041_v5 = vld [vmem:[#allocation2 + $0x28] sm:$0xff]  ;;  %v1042_v14 = vld [vmem:[#allocation2 + $0x30] sm:$0xff]  ;;  %v1043_v15 = vld [vmem:[#allocation2 + $0x38] sm:$0xff] }
 0x197   : > { %1259 = vperm.xlu1 %2122, %v1125_v49   ;;  %1179 = vperm.xlu0 %2121, %v1109_v50   ;;  %v1416_v49 = vld [vmem:[%s3049_s3 + $0x1e0] sm:$0xff]  ;;  %v1418_v50 = vld [vmem:[%s3049_s3 + $0x1f0] sm:$0xff]  ;;  %v1077_v29 = vld [vmem:[#allocation2 + $0x148] sm:$0xff] }
 0x198   : > { %v2028_v51 = vpack.c.bf16 %v1418_v50, %v1416_v49  ;;  %v1076_v36 = vld [vmem:[#allocation2 + $0x140] sm:$0xff]  ;;  %v1079_v39 = vld [vmem:[#allocation2 + $0x158] sm:$0xff]  ;;  %v1049_v46 = vld [vmem:[#allocation2 + $0x68] sm:$0xff] }
 0x199   : > { %2001 = vmatpush1.bf16.msra.mxu0 %v2000_v2  ;;  %2070 = vmatpush1.bf16.msra.mxu1 %v2000_v2  ;;  %v1048_v45 = vld [vmem:[#allocation2 + $0x60] sm:$0xff]  ;;  %v1081_v50 = vld [vmem:[#allocation2 + $0x168] sm:$0xff] }
 0x19a   : > { %2003 = vmatprep.subr.bf16.mxu0 %v2002_v3  ;;  %2055 = vmatprep.subr.bf16.mxu1 %v2002_v3 }
 0x19b   : > { %1264 = vperm.xlu1 %2122, %v1126_v57   ;;  %1184 = vperm.xlu0 %2121, %v1110_v58   ;;  %v1038_v57 = vld [vmem:[#allocation2 + $0x10] sm:$0xff] }
 0x19d   : > { %2005 = vmatpush1.bf16.msra.mxu0 %v2004_v10  ;;  %2071 = vmatpush1.bf16.msra.mxu1 %v2004_v10 }
 0x19e   : > { %2007 = vmatprep.subr.bf16.mxu0 %v2006_v11  ;;  %2056 = vmatprep.subr.bf16.mxu1 %v2006_v11 }
 0x19f   : > { %1269 = vperm.xlu1 %2122, %v1127_v40   ;;  %1189 = vperm.xlu0 %2121, %v1111_v1   ;;  %v1071_v40 = vld [vmem:[#allocation2 + $0x118] sm:$0xff] }
 0x1a1   : > { %2009 = vmatpush1.bf16.msra.mxu0 %v2008_v18  ;;  %2072 = vmatpush1.bf16.msra.mxu1 %v2008_v18 }
 0x1a2   : > { %2011 = vmatprep.subr.bf16.mxu0 %v2010_v19  ;;  %2057 = vmatprep.subr.bf16.mxu1 %v2010_v19  ;;  %v1075_v19 = vld [vmem:[#allocation2 + $0x138] sm:$0xff] }
 0x1a3   : > { %1274 = vperm.xlu1 %2122, %v1128_v8   ;;  %1194 = vperm.xlu0 %2121, %v1112_v9   ;;  %v1073_v9 = vld [vmem:[#allocation2 + $0x128] sm:$0xff] }
 0x1a5   : > { %2013 = vmatpush1.bf16.msra.mxu0 %v2012_v26  ;;  %2073 = vmatpush1.bf16.msra.mxu1 %v2012_v26  ;;  %v1074_v26 = vld [vmem:[#allocation2 + $0x130] sm:$0xff] }
 0x1a6   : > { %2015 = vmatprep.subr.bf16.mxu0 %v2014_v27  ;;  %2058 = vmatprep.subr.bf16.mxu1 %v2014_v27 }
 0x1a7   : > { %1279 = vperm.xlu1 %2122, %v1129_v16   ;;  %1199 = vperm.xlu0 %2121, %v1113_v17   ;;  %v1072_v16 = vld [vmem:[#allocation2 + $0x120] sm:$0xff] }
 0x1a9   : > { %2017 = vmatpush1.bf16.msra.mxu0 %v2016_v34  ;;  %2074 = vmatpush1.bf16.msra.mxu1 %v2016_v34  ;;  %v1046_v34 = vld [vmem:[#allocation2 + $0x50] sm:$0xff] }
 0x1aa   : > { %2019 = vmatprep.subr.bf16.mxu0 %v2018_v35  ;;  %2059 = vmatprep.subr.bf16.mxu1 %v2018_v35  ;;  %v1047_v35 = vld [vmem:[#allocation2 + $0x58] sm:$0xff] }
 0x1ab   : > { %1284 = vperm.xlu1 %2122, %v1130_v24   ;;  %1204 = vperm.xlu0 %2121, %v1114_v25   ;;  %v1044_v24 = vld [vmem:[#allocation2 + $0x40] sm:$0xff]  ;;  %v1045_v25 = vld [vmem:[#allocation2 + $0x48] sm:$0xff] }
 0x1ad   : > { %2021 = vmatpush1.bf16.msra.mxu0 %v2020_v41  ;;  %2075 = vmatpush1.bf16.msra.mxu1 %v2020_v41 }
 0x1ae   : > { %2023 = vmatprep.subr.bf16.mxu0 %v2022_v42  ;;  %2060 = vmatprep.subr.bf16.mxu1 %v2022_v42 }
 0x1af   : > { %1289 = vperm.xlu1 %2122, %v1131_v32   ;;  %1209 = vperm.xlu0 %2121, %v1115_v33  }
 0x1b1   : > { %2025 = vmatpush1.bf16.msra.mxu0 %v2024_v47  ;;  %2076 = vmatpush1.bf16.msra.mxu1 %v2024_v47  ;;  %v1078_v47 = vld [vmem:[#allocation2 + $0x150] sm:$0xff] }
 0x1b2   : > { %2027 = vmatprep.subr.bf16.mxu0 %v2026_v48  ;;  %2061 = vmatprep.subr.bf16.mxu1 %v2026_v48 }
 0x1b5   : > { %2029 = vmatpush1.bf16.msra.mxu0 %v2028_v51  ;;  %2077 = vmatpush1.bf16.msra.mxu1 %v2028_v51 }
 0x1f2   : > { %v1140_v55 = vpop.permute.xlu1 %1139  ;;  %v1135_v56 = vpop.permute.xlu0 %1134 }
 0x1f3   : > { %v1295_v58 = vmul.f32 %v1140_v55, %v1039_v52  ;;  %v1292_v59 = vmul.f32 %v1135_v56, %v1036_v53  ;;  %v1293_v60 = vmul.f32 %v1135_v56, %v1037_v54  ;;  %v1294_v63 = vmul.f32 %v1140_v55, %v1038_v57  ;;  %v1050_v55 = vld [vmem:[#allocation2 + $0x70] sm:$0xff]  ;;  %v1051_v56 = vld [vmem:[#allocation2 + $0x78] sm:$0xff]  ;;  %v1080_v57 = vld [vmem:[#allocation2 + $0x160] sm:$0xff] }
 0x1f5   : > { %1496 = vmatprep.mubr.f32.mxu0 %v1293_v60  ;;  %v1083_v60 = vld [vmem:[#allocation2 + $0x178] sm:$0xff] }
 0x1f6   : > { %v1220_v0 = vpop.permute.xlu1 %1219  ;;  %v1215_v1 = vpop.permute.xlu0 %1214  ;;  %1497 = vmatmul.mubr.f32.vlgmr.msra.gmra.mrb[0].mxu0 %v1292_v59 }
 0x1f7   : > { %v1324_v2 = vmul.f32 %v1215_v1, %v1068_v61  ;;  %1502 = vmatprep.mubr.f32.mxu0 %v1295_v58  ;;  %v1325_v3 = vmul.f32 %v1215_v1, %v1069_v62  ;;  %v1327_v7 = vmul.f32 %v1220_v0, %v1071_v40  ;;  %v1326_v13 = vmul.f32 %v1220_v0, %v1070_v6  ;;  %v1052_v40 = vld [vmem:[#allocation2 + $0x80] sm:$0xff]  ;;  %v1053_v1 = vld [vmem:[#allocation2 + $0x88] sm:$0xff] }
 0x1f9   : > { %1592 = vmatprep.mubr.f32.mxu1 %v1325_v3 }
 0x1fa   : > { %v1225_v8 = vpop.permute.xlu1 %1224  ;;  %v1145_v10 = vpop.permute.xlu0 %1144  ;;  %1503 = vmatmul.mubr.f32.gmra.mrb[2].mxu0 %v1294_v63  ;;  %1593 = vmatmul.mubr.f32.vlgmr.msra.gmra.mrb[0].mxu1 %v1324_v2  ;;  %v1082_v2 = vld [vmem:[#allocation2 + $0x170] sm:$0xff] }
 0x1fb   : > { %v1296_v11 = vmul.f32 %v1145_v10, %v1040_v4  ;;  %v1297_v12 = vmul.f32 %v1145_v10, %v1041_v5  ;;  %1598 = vmatprep.mubr.f32.mxu1 %v1327_v7  ;;  %v1329_v17 = vmul.f32 %v1225_v8, %v1073_v9  ;;  %v1328_v23 = vmul.f32 %v1225_v8, %v1072_v16  ;;  %v1085_v5 = vld [vmem:[#allocation2 + $0x188] sm:$0xff]  ;;  %v1054_v10 = vld [vmem:[#allocation2 + $0x90] sm:$0xff] }
 0x1fd   : > { %1508 = vmatprep.mubr.f32.mxu0 %v1297_v12  ;;  %v1084_v12 = vld [vmem:[#allocation2 + $0x180] sm:$0xff] }
 0x1fe   : > { %v1230_v18 = vpop.permute.xlu1 %1229  ;;  %v1150_v20 = vpop.permute.xlu0 %1149  ;;  %1509 = vmatmul.mubr.f32.gmra.mrb[4].mxu0 %v1296_v11  ;;  %1599 = vmatmul.mubr.f32.gmra.mrb[2].mxu1 %v1326_v13  ;;  %v1055_v11 = vld [vmem:[#allocation2 + $0x98] sm:$0xff] }
 0x1ff   : > { %v1298_v21 = vmul.f32 %v1150_v20, %v1042_v14  ;;  %v1299_v22 = vmul.f32 %v1150_v20, %v1043_v15  ;;  %1604 = vmatprep.mubr.f32.mxu1 %v1329_v17  ;;  %v1331_v27 = vmul.f32 %v1230_v18, %v1075_v19  ;;  %v1330_v33 = vmul.f32 %v1230_v18, %v1074_v26  ;;  %v1087_v15 = vld [vmem:[#allocation2 + $0x198] sm:$0xff]  ;;  %v1056_v20 = vld [vmem:[#allocation2 + $0xa0] sm:$0xff] }
 0x201   : > { %1514 = vmatprep.mubr.f32.mxu0 %v1299_v22  ;;  %v1086_v22 = vld [vmem:[#allocation2 + $0x190] sm:$0xff] }
 0x202   : > { %v1235_v28 = vpop.permute.xlu1 %1234  ;;  %v1155_v30 = vpop.permute.xlu0 %1154  ;;  %1515 = vmatmul.mubr.f32.gmra.mrb[6].mxu0 %v1298_v21  ;;  %1605 = vmatmul.mubr.f32.gmra.mrb[4].mxu1 %v1328_v23  ;;  %v1057_v21 = vld [vmem:[#allocation2 + $0xa8] sm:$0xff] }
 0x203   : > { %v1300_v31 = vmul.f32 %v1155_v30, %v1044_v24  ;;  %v1301_v32 = vmul.f32 %v1155_v30, %v1045_v25  ;;  %1610 = vmatprep.mubr.f32.mxu1 %v1331_v27  ;;  %v1333_v37 = vmul.f32 %v1235_v28, %v1077_v29  ;;  %v1332_v44 = vmul.f32 %v1235_v28, %v1076_v36  ;;  %v1089_v25 = vld [vmem:[#allocation2 + $0x1a8] sm:$0xff]  ;;  %v1058_v30 = vld [vmem:[#allocation2 + $0xb0] sm:$0xff] }
 0x205   : > { %1520 = vmatprep.mubr.f32.mxu0 %v1301_v32  ;;  %v1088_v32 = vld [vmem:[#allocation2 + $0x1a0] sm:$0xff] }
 0x206   : > { %v1240_v38 = vpop.permute.xlu1 %1239  ;;  %v1160_v41 = vpop.permute.xlu0 %1159  ;;  %1521 = vmatmul.mubr.f32.gmra.mrb[8].mxu0 %v1300_v31  ;;  %1611 = vmatmul.mubr.f32.gmra.mrb[6].mxu1 %v1330_v33  ;;  %v1059_v31 = vld [vmem:[#allocation2 + $0xb8] sm:$0xff] }
 0x207   : > { %v1302_v42 = vmul.f32 %v1160_v41, %v1046_v34  ;;  %v1303_v43 = vmul.f32 %v1160_v41, %v1047_v35  ;;  %1616 = vmatprep.mubr.f32.mxu1 %v1333_v37  ;;  %v1335_v48 = vmul.f32 %v1240_v38, %v1079_v39  ;;  %v1334_v54 = vmul.f32 %v1240_v38, %v1078_v47  ;;  %v1091_v35 = vld [vmem:[#allocation2 + $0x1b8] sm:$0xff]  ;;  %v1060_v41 = vld [vmem:[#allocation2 + $0xc0] sm:$0xff] }
 0x209   : > { %1526 = vmatprep.mubr.f32.mxu0 %v1303_v43  ;;  %v1090_v43 = vld [vmem:[#allocation2 + $0x1b0] sm:$0xff] }
 0x20a   : > { %v1245_v49 = vpop.permute.xlu1 %1244  ;;  %v1165_v51 = vpop.permute.xlu0 %1164  ;;  %1527 = vmatmul.mubr.f32.gmra.mrb[10].mxu0 %v1302_v42  ;;  %1617 = vmatmul.mubr.f32.gmra.mrb[8].mxu1 %v1332_v44  ;;  %v1061_v42 = vld [vmem:[#allocation2 + $0xc8] sm:$0xff] }
 0x20b   : > { %v1304_v52 = vmul.f32 %v1165_v51, %v1048_v45  ;;  %v1305_v53 = vmul.f32 %v1165_v51, %v1049_v46  ;;  %1622 = vmatprep.mubr.f32.mxu1 %v1335_v48  ;;  %v1337_v58 = vmul.f32 %v1245_v49, %v1081_v50  ;;  %v1336_v0 = vmul.f32 %v1245_v49, %v1080_v57  ;;  %v1093_v46 = vld [vmem:[#allocation2 + $0x1c8] sm:$0xff]  ;;  %v1062_v51 = vld [vmem:[#allocation2 + $0xd0] sm:$0xff] }
 0x20d   : > { %1532 = vmatprep.mubr.f32.mxu0 %v1305_v53  ;;  %v1092_v53 = vld [vmem:[#allocation2 + $0x1c0] sm:$0xff] }
 0x20e   : > { %v1250_v59 = vpop.permute.xlu1 %1249  ;;  %v1170_v61 = vpop.permute.xlu0 %1169  ;;  %1533 = vmatmul.mubr.f32.gmra.mrb[12].mxu0 %v1304_v52  ;;  %1623 = vmatmul.mubr.f32.gmra.mrb[10].mxu1 %v1334_v54  ;;  %v1063_v52 = vld [vmem:[#allocation2 + $0xd8] sm:$0xff] }
 0x20f   : > { %v1306_v62 = vmul.f32 %v1170_v61, %v1050_v55  ;;  %v1307_v63 = vmul.f32 %v1170_v61, %v1051_v56  ;;  %1628 = vmatprep.mubr.f32.mxu1 %v1337_v58  ;;  %v1339_v3 = vmul.f32 %v1250_v59, %v1083_v60  ;;  %v1338_v9 = vmul.f32 %v1250_v59, %v1082_v2  ;;  %v1095_v56 = vld [vmem:[#allocation2 + $0x1d8] sm:$0xff]  ;;  %v1064_v61 = vld [vmem:[#allocation2 + $0xe0] sm:$0xff] }
 0x211   : > { %1538 = vmatprep.mubr.f32.mxu0 %v1307_v63  ;;  %v1094_v63 = vld [vmem:[#allocation2 + $0x1d0] sm:$0xff] }
 0x212   : > { %v1255_v4 = vpop.permute.xlu1 %1254  ;;  %v1175_v6 = vpop.permute.xlu0 %1174  ;;  %1539 = vmatmul.mubr.f32.gmra.mrb[14].mxu0 %v1306_v62  ;;  %1629 = vmatmul.mubr.f32.gmra.mrb[12].mxu1 %v1336_v0  ;;  %v1065_v62 = vld [vmem:[#allocation2 + $0xe8] sm:$0xff] }
 0x213   : > { %v1308_v7 = vmul.f32 %v1175_v6, %v1052_v40  ;;  %v1309_v8 = vmul.f32 %v1175_v6, %v1053_v1  ;;  %1634 = vmatprep.mubr.f32.mxu1 %v1339_v3  ;;  %v1341_v13 = vmul.f32 %v1255_v4, %v1085_v5  ;;  %v1340_v19 = vmul.f32 %v1255_v4, %v1084_v12  ;;  %v1097_v1 = vld [vmem:[#allocation2 + $0x1e8] sm:$0xff]  ;;  %v1066_v6 = vld [vmem:[#allocation2 + $0xf0] sm:$0xff] }
 0x215   : > { %1544 = vmatprep.mubr.f32.mxu0 %v1309_v8  ;;  %v1096_v8 = vld [vmem:[#allocation2 + $0x1e0] sm:$0xff] }
 0x216   : > { %v1260_v14 = vpop.permute.xlu1 %1259  ;;  %v1180_v16 = vpop.permute.xlu0 %1179  ;;  %1545 = vmatmul.mubr.f32.gmra.mrb[16].mxu0 %v1308_v7  ;;  %1635 = vmatmul.mubr.f32.gmra.mrb[14].mxu1 %v1338_v9  ;;  %v1067_v7 = vld [vmem:[#allocation2 + $0xf8] sm:$0xff] }
 0x217   : > { %v1310_v17 = vmul.f32 %v1180_v16, %v1054_v10  ;;  %v1311_v18 = vmul.f32 %v1180_v16, %v1055_v11  ;;  %1640 = vmatprep.mubr.f32.mxu1 %v1341_v13  ;;  %v1343_v23 = vmul.f32 %v1260_v14, %v1087_v15  ;;  %v1342_v29 = vmul.f32 %v1260_v14, %v1086_v22  ;;  %v1099_v11 = vld [vmem:[#allocation2 + $0x1f8] sm:$0xff]  ;;  %v1098_v16 = vld [vmem:[#allocation2 + $0x1f0] sm:$0xff]  ;;  %v1420_v22 = vld [vmem:[%s3050_s4] sm:$0x3] }
 0x219   : > { %1550 = vmatprep.mubr.f32.mxu0 %v1311_v18 }
 0x21a   : > { %v1265_v24 = vpop.permute.xlu1 %1264  ;;  %v1185_v26 = vpop.permute.xlu0 %1184  ;;  %1551 = vmatmul.mubr.f32.gmra.mrb[18].mxu0 %v1310_v17  ;;  %1641 = vmatmul.mubr.f32.gmra.mrb[16].mxu1 %v1340_v19  ;;  %v1422_v19 = vlaneseq }
 0x21b   : > { %v1312_v27 = vmul.f32 %v1185_v26, %v1056_v20  ;;  %v1313_v28 = vmul.f32 %v1185_v26, %v1057_v21  ;;  %1646 = vmatprep.mubr.f32.mxu1 %v1343_v23  ;;  %v1345_v33 = vmul.f32 %v1265_v24, %v1089_v25  ;;  %v1344_v39 = vmul.f32 %v1265_v24, %v1088_v32 }
 0x21c   : > { %v1423_v20 = vshrl.u32 %v1422_v19, 7 }
 0x21d   : > { %1556 = vmatprep.mubr.f32.mxu0 %v1313_v28 }
 0x21e   : > { %v1270_v34 = vpop.permute.xlu1 %1269  ;;  %v1190_v36 = vpop.permute.xlu0 %1189  ;;  %1557 = vmatmul.mubr.f32.gmra.mrb[20].mxu0 %v1312_v27  ;;  %1647 = vmatmul.mubr.f32.gmra.mrb[18].mxu1 %v1342_v29  ;;  %v1424_v21 = vsub.s32 0, %v1423_v20  ;;  %v1428_v23 = vsub.s32 1, %v1423_v20 }
 0x21f   : > { %v1314_v37 = vmul.f32 %v1190_v36, %v1058_v30  ;;  %v1315_v38 = vmul.f32 %v1190_v36, %v1059_v31  ;;  %1652 = vmatprep.mubr.f32.mxu1 %v1345_v33  ;;  %v1347_v44 = vmul.f32 %v1270_v34, %v1091_v35  ;;  %v1346_v50 = vmul.f32 %v1270_v34, %v1090_v43 }
 0x220   : > { %v2771_v24 = vrot.slane %v1420_v22, %v1424_v21  ;;  %v2773_v25 = vrot.slane %v1420_v22, %v1428_v23 }
 0x221   : > { %1562 = vmatprep.mubr.f32.mxu0 %v1315_v38 }
 0x222   : > { %v1275_v45 = vpop.permute.xlu1 %1274  ;;  %v1195_v47 = vpop.permute.xlu0 %1194  ;;  %1563 = vmatmul.mubr.f32.gmra.mrb[22].mxu0 %v1314_v37  ;;  %1653 = vmatmul.mubr.f32.gmra.mrb[20].mxu1 %v1344_v39 }
 0x223   : > { %v1316_v48 = vmul.f32 %v1195_v47, %v1060_v41  ;;  %v1317_v49 = vmul.f32 %v1195_v47, %v1061_v42  ;;  %1658 = vmatprep.mubr.f32.mxu1 %v1347_v44  ;;  %v1349_v54 = vmul.f32 %v1275_v45, %v1093_v46  ;;  %v1348_v60 = vmul.f32 %v1275_v45, %v1092_v53 }
 0x225   : > { %1568 = vmatprep.mubr.f32.mxu0 %v1317_v49 }
 0x226   : > { %v1280_v55 = vpop.permute.xlu1 %1279  ;;  %v1200_v57 = vpop.permute.xlu0 %1199  ;;  %1569 = vmatmul.mubr.f32.gmra.mrb[24].mxu0 %v1316_v48  ;;  %1659 = vmatmul.mubr.f32.gmra.mrb[22].mxu1 %v1346_v50 }
 0x227   : > { %v1318_v58 = vmul.f32 %v1200_v57, %v1062_v51  ;;  %v1319_v59 = vmul.f32 %v1200_v57, %v1063_v52  ;;  %1664 = vmatprep.mubr.f32.mxu1 %v1349_v54  ;;  %v1351_v0 = vmul.f32 %v1280_v55, %v1095_v56  ;;  %v1350_v5 = vmul.f32 %v1280_v55, %v1094_v63 }
 0x229   : > { %1574 = vmatprep.mubr.f32.mxu0 %v1319_v59 }
 0x22a   : > { %v1285_v40 = vpop.permute.xlu1 %1284  ;;  %v1205_v2 = vpop.permute.xlu0 %1204  ;;  %1575 = vmatmul.mubr.f32.gmra.mrb[26].mxu0 %v1318_v58  ;;  %1665 = vmatmul.mubr.f32.gmra.mrb[24].mxu1 %v1348_v60 }
 0x22b   : > { %v1320_v3 = vmul.f32 %v1205_v2, %v1064_v61  ;;  %v1321_v4 = vmul.f32 %v1205_v2, %v1065_v62  ;;  %1670 = vmatprep.mubr.f32.mxu1 %v1351_v0  ;;  %v1353_v9 = vmul.f32 %v1285_v40, %v1097_v1  ;;  %v1352_v15 = vmul.f32 %v1285_v40, %v1096_v8 }
 0x22d   : > { %1580 = vmatprep.mubr.f32.mxu0 %v1321_v4 }
 0x22e   : > { %v1290_v10 = vpop.permute.xlu1 %1289  ;;  %v1210_v12 = vpop.permute.xlu0 %1209  ;;  %1581 = vmatmul.mubr.f32.gmra.mrb[28].mxu0 %v1320_v3  ;;  %1671 = vmatmul.mubr.f32.gmra.mrb[26].mxu1 %v1350_v5 }
 0x22f   : > { %v1322_v13 = vmul.f32 %v1210_v12, %v1066_v6  ;;  %v1323_v14 = vmul.f32 %v1210_v12, %v1067_v7  ;;  %1676 = vmatprep.mubr.f32.mxu1 %v1353_v9  ;;  %v1355_v17 = vmul.f32 %v1290_v10, %v1099_v11  ;;  %v1354_v18 = vmul.f32 %v1290_v10, %v1098_v16 }
 0x231   : > { %1586 = vmatprep.mubr.f32.mxu0 %v1323_v14 }
 0x232   : > { %1587 = vmatmul.mubr.f32.gmra.mrb[30].mxu0 %v1322_v13  ;;  %1677 = vmatmul.mubr.f32.gmra.mrb[28].mxu1 %v1352_v15 }
 0x233   : > { %1682 = vmatprep.mubr.f32.mxu1 %v1355_v17 }
 0x236   : > { %1683 = vmatmul.mubr.f32.gmra.mrb[30].mxu1 %v1354_v18 }
 0x2c9   : > { %v1498_v26 = vpop.f32.mrb[0].mxu0 }
 0x2ca   : > { %v1499_v27 = vadd.f32 %v1498_v26, %v2771_v24  ;;  %v1500_v28 = vpop.f32.mrb[1].mxu0 }
 0x2cb   : > { %v1501_v29 = vadd.f32 %v1500_v28, %v2773_v25 }
 0x2cc   : > { %v1689_v30 = vmax.f32 %v1499_v27, 0.0 }
 0x2cd   : > { %v1690_v31 = vmax.f32 %v1501_v29, 0.0  ;;  %v1504_v32 = vpop.f32.mrb[2].mxu0  ;;  %v1594_v33 = vpop.f32.mrb[0].mxu1 }
 0x2ce   : > { %1753 = vst [vmem:[%s3051_s5] sm:$0xff] %v1689_v30  ;;  %v1505_v34 = vadd.f32 %v1504_v32, %v2771_v24  ;;  %v1595_v35 = vadd.f32 %v1594_v33, %v2771_v24  ;;  %v1506_v36 = vpop.f32.mrb[3].mxu0  ;;  %v1596_v37 = vpop.f32.mrb[1].mxu1 }
 0x2cf   : > { %1754 = vst [vmem:[%s3051_s5 + $0x8] sm:$0xff] %v1690_v31  ;;  %v1507_v38 = vadd.f32 %v1506_v36, %v2773_v25  ;;  %v1597_v39 = vadd.f32 %v1596_v37, %v2773_v25 }
 0x2d0   : > { %v1691_v41 = vmax.f32 %v1505_v34, 0.0  ;;  %v1721_v42 = vmax.f32 %v1595_v35, 0.0 }
 0x2d1   : > { %v1692_v43 = vmax.f32 %v1507_v38, 0.0  ;;  %v1722_v44 = vmax.f32 %v1597_v39, 0.0  ;;  %v1510_v45 = vpop.f32.mrb[4].mxu0  ;;  %v1600_v46 = vpop.f32.mrb[2].mxu1 }
 0x2d2   : > { %1755 = vst [vmem:[%s3051_s5 + $0x10] sm:$0xff] %v1691_v41  ;;  %1785 = vst [vmem:[%s3051_s5 + $0x100] sm:$0xff] %v1721_v42  ;;  %v1511_v47 = vadd.f32 %v1510_v45, %v2771_v24  ;;  %v1601_v48 = vadd.f32 %v1600_v46, %v2771_v24  ;;  %v1512_v49 = vpop.f32.mrb[5].mxu0  ;;  %v1602_v50 = vpop.f32.mrb[3].mxu1 }
 0x2d3   : > { %1756 = vst [vmem:[%s3051_s5 + $0x18] sm:$0xff] %v1692_v43  ;;  %1786 = vst [vmem:[%s3051_s5 + $0x108] sm:$0xff] %v1722_v44  ;;  %v1513_v51 = vadd.f32 %v1512_v49, %v2773_v25  ;;  %v1603_v52 = vadd.f32 %v1602_v50, %v2773_v25 }
 0x2d4   : > { %v1693_v53 = vmax.f32 %v1511_v47, 0.0  ;;  %v1723_v54 = vmax.f32 %v1601_v48, 0.0 }
 0x2d5   : > { %v1694_v55 = vmax.f32 %v1513_v51, 0.0  ;;  %v1724_v56 = vmax.f32 %v1603_v52, 0.0  ;;  %v1516_v57 = vpop.f32.mrb[6].mxu0  ;;  %v1606_v58 = vpop.f32.mrb[4].mxu1 }
 0x2d6   : > { %1757 = vst [vmem:[%s3051_s5 + $0x20] sm:$0xff] %v1693_v53  ;;  %1787 = vst [vmem:[%s3051_s5 + $0x110] sm:$0xff] %v1723_v54  ;;  %v1517_v59 = vadd.f32 %v1516_v57, %v2771_v24  ;;  %v1607_v60 = vadd.f32 %v1606_v58, %v2771_v24  ;;  %v1518_v61 = vpop.f32.mrb[7].mxu0  ;;  %v1608_v62 = vpop.f32.mrb[5].mxu1 }
 0x2d7   : > { %1758 = vst [vmem:[%s3051_s5 + $0x28] sm:$0xff] %v1694_v55  ;;  %1788 = vst [vmem:[%s3051_s5 + $0x118] sm:$0xff] %v1724_v56  ;;  %v1519_v63 = vadd.f32 %v1518_v61, %v2773_v25  ;;  %v1609_v0 = vadd.f32 %v1608_v62, %v2773_v25 }
 0x2d8   : > { %v1695_v40 = vmax.f32 %v1517_v59, 0.0  ;;  %v1725_v1 = vmax.f32 %v1607_v60, 0.0 }
 0x2d9   : > { %v1696_v2 = vmax.f32 %v1519_v63, 0.0  ;;  %v1726_v3 = vmax.f32 %v1609_v0, 0.0  ;;  %v1522_v4 = vpop.f32.mrb[8].mxu0  ;;  %v1612_v5 = vpop.f32.mrb[6].mxu1 }
 0x2da   : > { %1759 = vst [vmem:[%s3051_s5 + $0x30] sm:$0xff] %v1695_v40  ;;  %1789 = vst [vmem:[%s3051_s5 + $0x120] sm:$0xff] %v1725_v1  ;;  %v1523_v6 = vadd.f32 %v1522_v4, %v2771_v24  ;;  %v1613_v7 = vadd.f32 %v1612_v5, %v2771_v24  ;;  %v1524_v8 = vpop.f32.mrb[9].mxu0  ;;  %v1614_v9 = vpop.f32.mrb[7].mxu1 }
 0x2db   : > { %1760 = vst [vmem:[%s3051_s5 + $0x38] sm:$0xff] %v1696_v2  ;;  %1790 = vst [vmem:[%s3051_s5 + $0x128] sm:$0xff] %v1726_v3  ;;  %v1525_v10 = vadd.f32 %v1524_v8, %v2773_v25  ;;  %v1615_v11 = vadd.f32 %v1614_v9, %v2773_v25 }
 0x2dc   : > { %v1697_v12 = vmax.f32 %v1523_v6, 0.0  ;;  %v1727_v13 = vmax.f32 %v1613_v7, 0.0 }
 0x2dd   : > { %v1698_v14 = vmax.f32 %v1525_v10, 0.0  ;;  %v1728_v15 = vmax.f32 %v1615_v11, 0.0  ;;  %v1528_v16 = vpop.f32.mrb[10].mxu0  ;;  %v1618_v17 = vpop.f32.mrb[8].mxu1 }
 0x2de   : > { %1761 = vst [vmem:[%s3051_s5 + $0x40] sm:$0xff] %v1697_v12  ;;  %1791 = vst [vmem:[%s3051_s5 + $0x130] sm:$0xff] %v1727_v13  ;;  %v1529_v18 = vadd.f32 %v1528_v16, %v2771_v24  ;;  %v1619_v19 = vadd.f32 %v1618_v17, %v2771_v24  ;;  %v1530_v20 = vpop.f32.mrb[11].mxu0  ;;  %v1620_v21 = vpop.f32.mrb[9].mxu1 }
 0x2df   : > { %1762 = vst [vmem:[%s3051_s5 + $0x48] sm:$0xff] %v1698_v14  ;;  %1792 = vst [vmem:[%s3051_s5 + $0x138] sm:$0xff] %v1728_v15  ;;  %v1531_v22 = vadd.f32 %v1530_v20, %v2773_v25  ;;  %v1621_v23 = vadd.f32 %v1620_v21, %v2773_v25 }
 0x2e0   : > { %v1699_v26 = vmax.f32 %v1529_v18, 0.0  ;;  %v1729_v27 = vmax.f32 %v1619_v19, 0.0 }
 0x2e1   : > { %v1700_v28 = vmax.f32 %v1531_v22, 0.0  ;;  %v1730_v29 = vmax.f32 %v1621_v23, 0.0  ;;  %v1534_v30 = vpop.f32.mrb[12].mxu0  ;;  %v1624_v31 = vpop.f32.mrb[10].mxu1 }
 0x2e2   : > { %1763 = vst [vmem:[%s3051_s5 + $0x50] sm:$0xff] %v1699_v26  ;;  %1793 = vst [vmem:[%s3051_s5 + $0x140] sm:$0xff] %v1729_v27  ;;  %v1535_v32 = vadd.f32 %v1534_v30, %v2771_v24  ;;  %v1625_v33 = vadd.f32 %v1624_v31, %v2771_v24  ;;  %v1536_v34 = vpop.f32.mrb[13].mxu0  ;;  %v1626_v35 = vpop.f32.mrb[11].mxu1 }
 0x2e3   : > { %1764 = vst [vmem:[%s3051_s5 + $0x58] sm:$0xff] %v1700_v28  ;;  %1794 = vst [vmem:[%s3051_s5 + $0x148] sm:$0xff] %v1730_v29  ;;  %v1537_v36 = vadd.f32 %v1536_v34, %v2773_v25  ;;  %v1627_v37 = vadd.f32 %v1626_v35, %v2773_v25 }
 0x2e4   : > { %v1701_v38 = vmax.f32 %v1535_v32, 0.0  ;;  %v1731_v39 = vmax.f32 %v1625_v33, 0.0 }
 0x2e5   : > { %v1702_v41 = vmax.f32 %v1537_v36, 0.0  ;;  %v1732_v42 = vmax.f32 %v1627_v37, 0.0  ;;  %v1540_v43 = vpop.f32.mrb[14].mxu0  ;;  %v1630_v44 = vpop.f32.mrb[12].mxu1 }
 0x2e6   : > { %1765 = vst [vmem:[%s3051_s5 + $0x60] sm:$0xff] %v1701_v38  ;;  %1795 = vst [vmem:[%s3051_s5 + $0x150] sm:$0xff] %v1731_v39  ;;  %v1541_v45 = vadd.f32 %v1540_v43, %v2771_v24  ;;  %v1631_v46 = vadd.f32 %v1630_v44, %v2771_v24  ;;  %v1542_v47 = vpop.f32.mrb[15].mxu0  ;;  %v1632_v48 = vpop.f32.mrb[13].mxu1 }
 0x2e7   : > { %1766 = vst [vmem:[%s3051_s5 + $0x68] sm:$0xff] %v1702_v41  ;;  %1796 = vst [vmem:[%s3051_s5 + $0x158] sm:$0xff] %v1732_v42  ;;  %v1543_v49 = vadd.f32 %v1542_v47, %v2773_v25  ;;  %v1633_v50 = vadd.f32 %v1632_v48, %v2773_v25 }
 0x2e8   : > { %v1703_v51 = vmax.f32 %v1541_v45, 0.0  ;;  %v1733_v52 = vmax.f32 %v1631_v46, 0.0 }
 0x2e9   : > { %v1704_v53 = vmax.f32 %v1543_v49, 0.0  ;;  %v1734_v54 = vmax.f32 %v1633_v50, 0.0  ;;  %v1546_v55 = vpop.f32.mrb[16].mxu0  ;;  %v1636_v56 = vpop.f32.mrb[14].mxu1 }
 0x2ea   : > { %1767 = vst [vmem:[%s3051_s5 + $0x70] sm:$0xff] %v1703_v51  ;;  %1797 = vst [vmem:[%s3051_s5 + $0x160] sm:$0xff] %v1733_v52  ;;  %v1547_v57 = vadd.f32 %v1546_v55, %v2771_v24  ;;  %v1637_v58 = vadd.f32 %v1636_v56, %v2771_v24  ;;  %v1548_v59 = vpop.f32.mrb[17].mxu0  ;;  %v1638_v60 = vpop.f32.mrb[15].mxu1 }
 0x2eb   : > { %1768 = vst [vmem:[%s3051_s5 + $0x78] sm:$0xff] %v1704_v53  ;;  %1798 = vst [vmem:[%s3051_s5 + $0x168] sm:$0xff] %v1734_v54  ;;  %v1549_v61 = vadd.f32 %v1548_v59, %v2773_v25  ;;  %v1639_v62 = vadd.f32 %v1638_v60, %v2773_v25 }
 0x2ec   : > { %v1705_v63 = vmax.f32 %v1547_v57, 0.0  ;;  %v1735_v0 = vmax.f32 %v1637_v58, 0.0 }
 0x2ed   : > { %v1706_v40 = vmax.f32 %v1549_v61, 0.0  ;;  %v1736_v1 = vmax.f32 %v1639_v62, 0.0  ;;  %v1552_v2 = vpop.f32.mrb[18].mxu0  ;;  %v1642_v3 = vpop.f32.mrb[16].mxu1 }
 0x2ee   : > { %1769 = vst [vmem:[%s3051_s5 + $0x80] sm:$0xff] %v1705_v63  ;;  %1799 = vst [vmem:[%s3051_s5 + $0x170] sm:$0xff] %v1735_v0  ;;  %v1553_v4 = vadd.f32 %v1552_v2, %v2771_v24  ;;  %v1643_v5 = vadd.f32 %v1642_v3, %v2771_v24  ;;  %v1554_v6 = vpop.f32.mrb[19].mxu0  ;;  %v1644_v7 = vpop.f32.mrb[17].mxu1 }
 0x2ef   : > { %1770 = vst [vmem:[%s3051_s5 + $0x88] sm:$0xff] %v1706_v40  ;;  %1800 = vst [vmem:[%s3051_s5 + $0x178] sm:$0xff] %v1736_v1  ;;  %v1555_v8 = vadd.f32 %v1554_v6, %v2773_v25  ;;  %v1645_v9 = vadd.f32 %v1644_v7, %v2773_v25 }
 0x2f0   : > { %v1707_v10 = vmax.f32 %v1553_v4, 0.0  ;;  %v1737_v11 = vmax.f32 %v1643_v5, 0.0 }
 0x2f1   : > { %v1708_v12 = vmax.f32 %v1555_v8, 0.0  ;;  %v1738_v13 = vmax.f32 %v1645_v9, 0.0  ;;  %v1558_v14 = vpop.f32.mrb[20].mxu0  ;;  %v1648_v15 = vpop.f32.mrb[18].mxu1 }
 0x2f2   : > { %1771 = vst [vmem:[%s3051_s5 + $0x90] sm:$0xff] %v1707_v10  ;;  %1801 = vst [vmem:[%s3051_s5 + $0x180] sm:$0xff] %v1737_v11  ;;  %v1559_v16 = vadd.f32 %v1558_v14, %v2771_v24  ;;  %v1649_v17 = vadd.f32 %v1648_v15, %v2771_v24  ;;  %v1560_v18 = vpop.f32.mrb[21].mxu0  ;;  %v1650_v19 = vpop.f32.mrb[19].mxu1 }
 0x2f3   : > { %1772 = vst [vmem:[%s3051_s5 + $0x98] sm:$0xff] %v1708_v12  ;;  %1802 = vst [vmem:[%s3051_s5 + $0x188] sm:$0xff] %v1738_v13  ;;  %v1561_v20 = vadd.f32 %v1560_v18, %v2773_v25  ;;  %v1651_v21 = vadd.f32 %v1650_v19, %v2773_v25 }
 0x2f4   : > { %v1709_v22 = vmax.f32 %v1559_v16, 0.0  ;;  %v1739_v23 = vmax.f32 %v1649_v17, 0.0 }
 0x2f5   : > { %v1710_v26 = vmax.f32 %v1561_v20, 0.0  ;;  %v1740_v27 = vmax.f32 %v1651_v21, 0.0  ;;  %v1564_v28 = vpop.f32.mrb[22].mxu0  ;;  %v1654_v29 = vpop.f32.mrb[20].mxu1 }
 0x2f6   : > { %1773 = vst [vmem:[%s3051_s5 + $0xa0] sm:$0xff] %v1709_v22  ;;  %1803 = vst [vmem:[%s3051_s5 + $0x190] sm:$0xff] %v1739_v23  ;;  %v1565_v30 = vadd.f32 %v1564_v28, %v2771_v24  ;;  %v1655_v31 = vadd.f32 %v1654_v29, %v2771_v24  ;;  %v1566_v32 = vpop.f32.mrb[23].mxu0  ;;  %v1656_v33 = vpop.f32.mrb[21].mxu1 }
 0x2f7   : > { %1774 = vst [vmem:[%s3051_s5 + $0xa8] sm:$0xff] %v1710_v26  ;;  %1804 = vst [vmem:[%s3051_s5 + $0x198] sm:$0xff] %v1740_v27  ;;  %v1567_v34 = vadd.f32 %v1566_v32, %v2773_v25  ;;  %v1657_v35 = vadd.f32 %v1656_v33, %v2773_v25 }
 0x2f8   : > { %v1711_v36 = vmax.f32 %v1565_v30, 0.0  ;;  %v1741_v37 = vmax.f32 %v1655_v31, 0.0 }
 0x2f9   : > { %v1712_v38 = vmax.f32 %v1567_v34, 0.0  ;;  %v1742_v39 = vmax.f32 %v1657_v35, 0.0  ;;  %v1570_v41 = vpop.f32.mrb[24].mxu0  ;;  %v1660_v42 = vpop.f32.mrb[22].mxu1 }
 0x2fa   : > { %1775 = vst [vmem:[%s3051_s5 + $0xb0] sm:$0xff] %v1711_v36  ;;  %1805 = vst [vmem:[%s3051_s5 + $0x1a0] sm:$0xff] %v1741_v37  ;;  %v1571_v43 = vadd.f32 %v1570_v41, %v2771_v24  ;;  %v1661_v44 = vadd.f32 %v1660_v42, %v2771_v24  ;;  %v1572_v45 = vpop.f32.mrb[25].mxu0  ;;  %v1662_v46 = vpop.f32.mrb[23].mxu1 }
 0x2fb   : > { %1776 = vst [vmem:[%s3051_s5 + $0xb8] sm:$0xff] %v1712_v38  ;;  %1806 = vst [vmem:[%s3051_s5 + $0x1a8] sm:$0xff] %v1742_v39  ;;  %v1573_v47 = vadd.f32 %v1572_v45, %v2773_v25  ;;  %v1663_v48 = vadd.f32 %v1662_v46, %v2773_v25 }
 0x2fc   : > { %v1713_v49 = vmax.f32 %v1571_v43, 0.0  ;;  %v1743_v50 = vmax.f32 %v1661_v44, 0.0 }
 0x2fd   : > { %v1714_v51 = vmax.f32 %v1573_v47, 0.0  ;;  %v1744_v52 = vmax.f32 %v1663_v48, 0.0  ;;  %v1576_v53 = vpop.f32.mrb[26].mxu0  ;;  %v1666_v54 = vpop.f32.mrb[24].mxu1 }
 0x2fe   : > { %1777 = vst [vmem:[%s3051_s5 + $0xc0] sm:$0xff] %v1713_v49  ;;  %1807 = vst [vmem:[%s3051_s5 + $0x1b0] sm:$0xff] %v1743_v50  ;;  %v1577_v55 = vadd.f32 %v1576_v53, %v2771_v24  ;;  %v1667_v56 = vadd.f32 %v1666_v54, %v2771_v24  ;;  %v1578_v57 = vpop.f32.mrb[27].mxu0  ;;  %v1668_v58 = vpop.f32.mrb[25].mxu1 }
 0x2ff   : > { %1778 = vst [vmem:[%s3051_s5 + $0xc8] sm:$0xff] %v1714_v51  ;;  %1808 = vst [vmem:[%s3051_s5 + $0x1b8] sm:$0xff] %v1744_v52  ;;  %v1579_v59 = vadd.f32 %v1578_v57, %v2773_v25  ;;  %v1669_v60 = vadd.f32 %v1668_v58, %v2773_v25 }
 0x300   : > { %v1715_v61 = vmax.f32 %v1577_v55, 0.0  ;;  %v1745_v62 = vmax.f32 %v1667_v56, 0.0 }
 0x301   : > { %v1716_v63 = vmax.f32 %v1579_v59, 0.0  ;;  %v1746_v0 = vmax.f32 %v1669_v60, 0.0  ;;  %v1582_v40 = vpop.f32.mrb[28].mxu0  ;;  %v1672_v1 = vpop.f32.mrb[26].mxu1 }
 0x302   : > { %1779 = vst [vmem:[%s3051_s5 + $0xd0] sm:$0xff] %v1715_v61  ;;  %1809 = vst [vmem:[%s3051_s5 + $0x1c0] sm:$0xff] %v1745_v62  ;;  %v1583_v2 = vadd.f32 %v1582_v40, %v2771_v24  ;;  %v1673_v3 = vadd.f32 %v1672_v1, %v2771_v24  ;;  %v1584_v4 = vpop.f32.mrb[29].mxu0  ;;  %v1674_v5 = vpop.f32.mrb[27].mxu1 }
 0x303   : > { %1780 = vst [vmem:[%s3051_s5 + $0xd8] sm:$0xff] %v1716_v63  ;;  %1810 = vst [vmem:[%s3051_s5 + $0x1c8] sm:$0xff] %v1746_v0  ;;  %v1585_v6 = vadd.f32 %v1584_v4, %v2773_v25  ;;  %v1675_v7 = vadd.f32 %v1674_v5, %v2773_v25 }
 0x304   : > { %v1717_v8 = vmax.f32 %v1583_v2, 0.0  ;;  %v1747_v9 = vmax.f32 %v1673_v3, 0.0 }
 0x305   : > { %v1718_v10 = vmax.f32 %v1585_v6, 0.0  ;;  %v1748_v11 = vmax.f32 %v1675_v7, 0.0  ;;  %v1588_v12 = vpop.f32.mrb[30].mxu0  ;;  %v1678_v13 = vpop.f32.mrb[28].mxu1 }
 0x306   : > { %1781 = vst [vmem:[%s3051_s5 + $0xe0] sm:$0xff] %v1717_v8  ;;  %1811 = vst [vmem:[%s3051_s5 + $0x1d0] sm:$0xff] %v1747_v9  ;;  %v1589_v14 = vadd.f32 %v1588_v12, %v2771_v24  ;;  %v1679_v15 = vadd.f32 %v1678_v13, %v2771_v24  ;;  %v1590_v16 = vpop.f32.mrb[31].mxu0  ;;  %v1680_v17 = vpop.f32.mrb[29].mxu1 }
 0x307   : > { %1782 = vst [vmem:[%s3051_s5 + $0xe8] sm:$0xff] %v1718_v10  ;;  %1812 = vst [vmem:[%s3051_s5 + $0x1d8] sm:$0xff] %v1748_v11  ;;  %v1591_v18 = vadd.f32 %v1590_v16, %v2773_v25  ;;  %v1681_v19 = vadd.f32 %v1680_v17, %v2773_v25 }
 0x308   : > { %v1719_v20 = vmax.f32 %v1589_v14, 0.0  ;;  %v1749_v21 = vmax.f32 %v1679_v15, 0.0 }
 0x309   : > { %v1720_v22 = vmax.f32 %v1591_v18, 0.0  ;;  %v1750_v23 = vmax.f32 %v1681_v19, 0.0  ;;  %v1684_v26 = vpop.f32.mrb[30].mxu1 }
 0x30a   : > { %1783 = vst [vmem:[%s3051_s5 + $0xf0] sm:$0xff] %v1719_v20  ;;  %1813 = vst [vmem:[%s3051_s5 + $0x1e0] sm:$0xff] %v1749_v21  ;;  %v1685_v27 = vadd.f32 %v1684_v26, %v2771_v24  ;;  %v1686_v28 = vpop.f32.mrb[31].mxu1 }
 0x30b   : > { %1784 = vst [vmem:[%s3051_s5 + $0xf8] sm:$0xff] %v1720_v22  ;;  %1814 = vst [vmem:[%s3051_s5 + $0x1e8] sm:$0xff] %v1750_v23  ;;  %v1687_v29 = vadd.f32 %v1686_v28, %v2773_v25 }
 0x30c   : > { %v1751_v30 = vmax.f32 %v1685_v27, 0.0 }
 0x30d   : > { %v1752_v31 = vmax.f32 %v1687_v29, 0.0 }
 0x30e   : > { %1815 = vst [vmem:[%s3051_s5 + $0x1f0] sm:$0xff] %v1751_v30 }
 0x30f   : > { %1816 = vst [vmem:[%s3051_s5 + $0x1f8] sm:$0xff] %v1752_v31 }
 0x310 PF: > { %s15_s22 = sadd.s32 1, %s2161_s22   ;;  %s3052_s18 = smov %s2149_s19 }
 0x311   : > { %p12_p12 = scmp.ge.s32.totalorder %s15_s22, 5   ;;  %s3053_s19 = smov %s2231_s26 }
 0x312   : > { %s3054_s20 = smov %s2157_s21  ;;  %s3055_s21 = smov %s3057_s23 }
 0x313   :  { %14 = sbr.rel (!%p12_p12) target bundleno = 3 (0x3), region = 127 }

</bundles_post_ra>
